<compile_context>
chip_gen: v5e
topology: v5e:2x2
jax: 0.10.0
libtpu: 0.0.40
codegen_flags: <defaults>
</compile_context>

<pallas_src>
import functools

import jax
import jax.numpy as jnp
from jax.experimental import pallas as pl
from jax.experimental.pallas import tpu as pltpu


# ------------------------------ fused kernel ------------------------------
def _updecoder_kernel(x_ref, n1g_ref, n1b_ref, m1_ref, w1_ref, b1_ref,
                      n2g_ref, n2b_ref, m2_ref, w2_ref, b2_ref,
                      ws_ref, bs_ref, wu_ref, bu_ref,
                      o_ref, pad1_ref, pad2_ref, *, H, W, eps):
    Cin = x_ref.shape[-1]
    Cout = w1_ref.shape[-1]
    HW = H * W

    def group_norm(xf, m_ref, gamma_ref, beta_ref):
        # xf: (HW, C) f32.  m_ref is the (C, C) group-averaging matrix with the
        # 1/(H*W*cpg) factor folded in.  Two-pass (x - mean) variance.
        mean = jnp.dot(jnp.sum(xf, axis=0, keepdims=True), m_ref[...],
                       preferred_element_type=jnp.float32)          # (1, C)
        xc = xf - mean
        var = jnp.dot(jnp.sum(xc * xc, axis=0, keepdims=True), m_ref[...],
                      preferred_element_type=jnp.float32)            # (1, C)
        inv = jax.lax.rsqrt(var + eps)
        return xc * inv * gamma_ref[...] + beta_ref[...]

    def conv3x3(pad_ref, w_ref, b_ref):
        # pad_ref holds the zero-bordered input (H+2, W+2, C); 9 shifted MXU
        # matmuls accumulated in f32.  Returns (HW, Cout) with bias added.
        cin_l = pad_ref.shape[-1]
        co = w_ref.shape[-1]
        acc = jnp.zeros((HW, co), jnp.float32)
        for dy in range(3):
            for dx in range(3):
                patch = pad_ref[dy:dy + H, dx:dx + W, :].reshape(HW, cin_l)
                acc = acc + jnp.dot(patch, w_ref[dy, dx],
                                    preferred_element_type=jnp.float32)
        return acc + b_ref[...]

    # zero the halo borders of the scratch buffers (interiors overwritten below)
    pad1_ref[...] = jnp.zeros_like(pad1_ref)
    pad2_ref[...] = jnp.zeros_like(pad2_ref)

    x = x_ref[0].astype(jnp.float32)                     # (H, W, Cin)
    xf = x.reshape(HW, Cin)

    # ---- GroupNorm1 -> conv1 (3x3, pad 1) ----
    h = group_norm(xf, m1_ref, n1g_ref, n1b_ref)
    pad1_ref[1:H + 1, 1:W + 1, :] = h.reshape(H, W, Cin)
    h = conv3x3(pad1_ref, w1_ref, b1_ref)                # (HW, Cout)

    # ---- GroupNorm2 (Dropout p=0 is identity) -> conv2 (3x3, pad 1) -> SiLU ----
    h = group_norm(h, m2_ref, n2g_ref, n2b_ref)
    pad2_ref[1:H + 1, 1:W + 1, :] = h.reshape(H, W, Cout)
    h = conv3x3(pad2_ref, w2_ref, b2_ref)
    h = h * jax.nn.sigmoid(h)                            # SiLU

    # ---- 1x1 shortcut on the raw input + residual add (scale factor 1.0) ----
    sc = jnp.dot(xf, ws_ref[...], preferred_element_type=jnp.float32) + bs_ref[...]
    y = h + sc                                           # (HW, Cout)

    # ---- ConvTranspose2d(4, stride 2, pad 1) via 4-phase decomposition ----
    # out[2r+py, 2c+px] = sum_{a,b in {0,1}} y_pad[r+py+a, c+px+b] @ w[py+2a, px+2b]
    pad2_ref[1:H + 1, 1:W + 1, :] = y.reshape(H, W, Cout)   # reuse zero-bordered scratch
    for py in range(2):
        for px in range(2):
            acc = jnp.zeros((HW, Cout), jnp.float32)
            for a in range(2):
                for b in range(2):
                    patch = pad2_ref[py + a:py + a + H,
                                     px + b:px + b + W, :].reshape(HW, Cout)
                    acc = acc + jnp.dot(patch, wu_ref[py * 2 + px, a * 2 + b],
                                        preferred_element_type=jnp.float32)
            acc = acc + bu_ref[...]
            # output is laid out (1, H, 2, W, 2*Cout): [n, r, py, c, px*Cout+ch]
            o_ref[0, :, py, :, px * Cout:(px + 1) * Cout] = (
                acc.reshape(H, W, Cout).astype(o_ref.dtype))


# ------------------------------ wrapper ------------------------------
def oihw_to_hwio(w):
    return jnp.transpose(w, (2, 3, 1, 0))


def up_decoder_block_forward(x_nhwc, p, groups, eps=1e-6):
    N, H, W, Cin = x_nhwc.shape
    Cout = p["conv1_w"].shape[0]

    def gmat(C):
        cpg = C // groups
        gid = jnp.arange(C) // cpg
        return (gid[:, None] == gid[None, :]).astype(jnp.float32) / float(H * W * cpg)

    m1 = gmat(Cin)
    m2 = gmat(Cout)
    w1 = oihw_to_hwio(p["conv1_w"])                      # (3, 3, Cin, Cout)
    w2 = oihw_to_hwio(p["conv2_w"])                      # (3, 3, Cout, Cout)

    if Cin != Cout:                                      # module: use_in_shortcut
        ws = p["short_w"][:, :, 0, 0].T                  # (Cin, Cout)
        bs = p["short_b"].reshape(1, Cout)
    else:                                                # identity shortcut
        ws = jnp.eye(Cin, dtype=jnp.float32)
        bs = jnp.zeros((1, Cout), jnp.float32)

    # ConvTranspose weight -> equivalent forward-conv weight, regrouped by
    # output parity phase:  wu4[py*2+px, a*2+b] = w_conv[py+2a, px+2b]
    w_conv = jnp.transpose(p["up_w"][:, :, ::-1, ::-1], (2, 3, 0, 1))  # (4,4,Cout,Cout)
    wu4 = jnp.stack(
        [jnp.stack([w_conv[py + 2 * a, px + 2 * b]
                    for a in range(2) for b in range(2)], axis=0)
         for py in range(2) for px in range(2)], axis=0)               # (4,4,Cout,Cout)

    kernel = functools.partial(_updecoder_kernel, H=H, W=W, eps=eps)

    out6 = pl.pallas_call(
        kernel,
        out_shape=jax.ShapeDtypeStruct((N, H, 2, W, 2 * Cout), x_nhwc.dtype),
        grid=(N,),
        in_specs=[
            pl.BlockSpec((1, H, W, Cin), lambda n: (n, 0, 0, 0)),
            pl.BlockSpec((1, Cin), lambda n: (0, 0)),
            pl.BlockSpec((1, Cin), lambda n: (0, 0)),
            pl.BlockSpec((Cin, Cin), lambda n: (0, 0)),
            pl.BlockSpec((3, 3, Cin, Cout), lambda n: (0, 0, 0, 0)),
            pl.BlockSpec((1, Cout), lambda n: (0, 0)),
            pl.BlockSpec((1, Cout), lambda n: (0, 0)),
            pl.BlockSpec((1, Cout), lambda n: (0, 0)),
            pl.BlockSpec((Cout, Cout), lambda n: (0, 0)),
            pl.BlockSpec((3, 3, Cout, Cout), lambda n: (0, 0, 0, 0)),
            pl.BlockSpec((1, Cout), lambda n: (0, 0)),
            pl.BlockSpec((Cin, Cout), lambda n: (0, 0)),
            pl.BlockSpec((1, Cout), lambda n: (0, 0)),
            pl.BlockSpec((4, 4, Cout, Cout), lambda n: (0, 0, 0, 0)),
            pl.BlockSpec((1, Cout), lambda n: (0, 0)),
        ],
        out_specs=pl.BlockSpec((1, H, 2, W, 2 * Cout), lambda n: (n, 0, 0, 0, 0)),
        scratch_shapes=[
            pltpu.VMEM((H + 2, W + 2, Cin), jnp.float32),   # padded GN1 output
            pltpu.VMEM((H + 2, W + 2, Cout), jnp.float32),  # padded GN2 output / resnet out
        ],
        compiler_params=pltpu.CompilerParams(dimension_semantics=("parallel",)),
    )(x_nhwc,
      p["norm1_g"].reshape(1, Cin), p["norm1_b"].reshape(1, Cin), m1,
      w1, p["conv1_b"].reshape(1, Cout),
      p["norm2_g"].reshape(1, Cout), p["norm2_b"].reshape(1, Cout), m2,
      w2, p["conv2_b"].reshape(1, Cout),
      ws, bs,
      wu4, p["up_b"].reshape(1, Cout))

    # (N, H, 2, W, 2*Cout) is row-major identical to (N, 2H, 2W, Cout): free view.
    return out6.reshape(N, 2 * H, 2 * W, Cout)


# --------------------------- parameters ---------------------------
def init_params(key, cin, cout):
    ks = jax.random.split(key, 12)

    def w(k, shape, scale=0.1):
        return scale * jax.random.normal(k, shape, jnp.float32)

    p = {}
    p["norm1_g"] = 1.0 + 0.1 * jax.random.normal(ks[0], (cin,), jnp.float32)
    p["norm1_b"] = 0.1 * jax.random.normal(ks[1], (cin,), jnp.float32)
    p["conv1_w"] = w(ks[2], (cout, cin, 3, 3))            # torch OIHW
    p["conv1_b"] = w(ks[3], (cout,), 0.05)
    p["norm2_g"] = 1.0 + 0.1 * jax.random.normal(ks[4], (cout,), jnp.float32)
    p["norm2_b"] = 0.1 * jax.random.normal(ks[5], (cout,), jnp.float32)
    p["conv2_w"] = w(ks[6], (cout, cout, 3, 3))
    p["conv2_b"] = w(ks[7], (cout,), 0.05)
    p["short_w"] = w(ks[8], (cout, cin, 1, 1))            # conv_shortcut (cin != cout)
    p["short_b"] = w(ks[9], (cout,), 0.05)
    p["up_w"] = w(ks[10], (cout, cout, 4, 4))             # torch ConvTranspose2d (in,out,kH,kW)
    p["up_b"] = w(ks[11], (cout,), 0.05)
    return p


# --------------------------- pure-JAX reference ---------------------------
def ref_forward(x_nhwc, p, groups, eps=1e-6):
    def gn(x, g, b):
        N, H, W, C = x.shape
        cpg = C // groups
        xr = x.reshape(N, H, W, groups, cpg)
        m = xr.mean(axis=(1, 2, 4), keepdims=True)
        v = ((xr - m) ** 2).mean(axis=(1, 2, 4), keepdims=True)
        y = ((xr - m) / jnp.sqrt(v + eps)).reshape(N, H, W, C)
        return y * g.reshape(1, 1, 1, C) + b.reshape(1, 1, 1, C)

    def conv(x, w_oihw, b, pad):
        y = jax.lax.conv_general_dilated(
            x, jnp.transpose(w_oihw, (2, 3, 1, 0)), (1, 1), [(pad, pad), (pad, pad)],
            dimension_numbers=("NHWC", "HWIO", "NHWC"),
            precision=jax.lax.Precision.HIGHEST)
        return y + b.reshape(1, 1, 1, -1)

    def conv_t(x, wt, b, stride=2, pad=1):
        K = wt.shape[2]
        w_conv = jnp.transpose(wt[:, :, ::-1, ::-1], (2, 3, 0, 1))
        y = jax.lax.conv_general_dilated(
            x, w_conv, (1, 1), [(K - 1 - pad, K - 1 - pad), (K - 1 - pad, K - 1 - pad)],
            lhs_dilation=(stride, stride),
            dimension_numbers=("NHWC", "HWIO", "NHWC"),
            precision=jax.lax.Precision.HIGHEST)
        return y + b.reshape(1, 1, 1, -1)

    h = gn(x_nhwc, p["norm1_g"], p["norm1_b"])
    h = conv(h, p["conv1_w"], p["conv1_b"], 1)
    h = gn(h, p["norm2_g"], p["norm2_b"])
    h = conv(h, p["conv2_w"], p["conv2_b"], 1)
    h = h * jax.nn.sigmoid(h)
    sc = conv(x_nhwc, p["short_w"], p["short_b"], 0)
    h = sc + h
    return conv_t(h, p["up_w"], p["up_b"])


if __name__ == "__main__":
    # Small shapes consistent with the module: in_channels=16, out_channels=32,
    # resnet_groups=8 (divides both channel counts), spatial 8x8, batch 2.
    N, CIN, COUT, H, W, GROUPS = 2, 16, 32, 8, 8, 8

    key = jax.random.PRNGKey(0)
    kx, kp = jax.random.split(key)
    x_nchw = jax.random.normal(kx, (N, CIN, H, W), jnp.float32)   # PyTorch-style input
    x_nhwc = jnp.transpose(x_nchw, (0, 2, 3, 1))
    params = init_params(kp, CIN, COUT)

    out_nhwc = up_decoder_block_forward(x_nhwc, params, GROUPS)
    out_nhwc = jax.block_until_ready(out_nhwc)
    out_nchw = jnp.transpose(out_nhwc, (0, 3, 1, 2))
    assert out_nchw.shape == (N, COUT, 2 * H, 2 * W), out_nchw.shape

    ref = ref_forward(x_nhwc, params, GROUPS)
    err = float(jnp.max(jnp.abs(out_nhwc - ref)))
    assert err < 1e-2, f"max abs err too large: {err}"

    print("KERNEL_OK")
</pallas_src>

<mosaic_0001>
module attributes {stable_mosaic.version = 11 : i64} {
  func.func @_updecoder_kernel(%arg0: i32, %arg1: memref<1x8x8x16xf32, #tpu.memory_space<vmem>>, %arg2: memref<1x16xf32, #tpu.memory_space<vmem>>, %arg3: memref<1x16xf32, #tpu.memory_space<vmem>>, %arg4: memref<16x16xf32, #tpu.memory_space<vmem>>, %arg5: memref<3x3x16x32xf32, #tpu.memory_space<vmem>>, %arg6: memref<1x32xf32, #tpu.memory_space<vmem>>, %arg7: memref<1x32xf32, #tpu.memory_space<vmem>>, %arg8: memref<1x32xf32, #tpu.memory_space<vmem>>, %arg9: memref<32x32xf32, #tpu.memory_space<vmem>>, %arg10: memref<3x3x32x32xf32, #tpu.memory_space<vmem>>, %arg11: memref<1x32xf32, #tpu.memory_space<vmem>>, %arg12: memref<16x32xf32, #tpu.memory_space<vmem>>, %arg13: memref<1x32xf32, #tpu.memory_space<vmem>>, %arg14: memref<4x4x32x32xf32, #tpu.memory_space<vmem>>, %arg15: memref<1x32xf32, #tpu.memory_space<vmem>>, %arg16: memref<1x8x2x8x64xf32, #tpu.memory_space<vmem>>, %arg17: memref<10x10x16xf32, #tpu.memory_space<vmem>>, %arg18: memref<10x10x32xf32, #tpu.memory_space<vmem>>) attributes {dimension_semantics = [#tpu.dimension_semantics<parallel>], iteration_bounds = array<i64: 2>, scalar_prefetch = 0 : i64, scratch_operands = 2 : i64, tpu.core_type = #tpu.core_type<tc>, window_params = [{transform_indices = @transform_0, window_bounds = array<i64: 1, 8, 8, 16>}, {pipeline_mode = #tpu.pipeline_mode<synchronous>, transform_indices = @transform_1, window_bounds = array<i64: 1, 16>}, {pipeline_mode = #tpu.pipeline_mode<synchronous>, transform_indices = @transform_2, window_bounds = array<i64: 1, 16>}, {pipeline_mode = #tpu.pipeline_mode<synchronous>, transform_indices = @transform_3, window_bounds = array<i64: 16, 16>}, {pipeline_mode = #tpu.pipeline_mode<synchronous>, transform_indices = @transform_4, window_bounds = array<i64: 3, 3, 16, 32>}, {pipeline_mode = #tpu.pipeline_mode<synchronous>, transform_indices = @transform_5, window_bounds = array<i64: 1, 32>}, {pipeline_mode = #tpu.pipeline_mode<synchronous>, transform_indices = @transform_6, window_bounds = array<i64: 1, 32>}, {pipeline_mode = #tpu.pipeline_mode<synchronous>, transform_indices = @transform_7, window_bounds = array<i64: 1, 32>}, {pipeline_mode = #tpu.pipeline_mode<synchronous>, transform_indices = @transform_8, window_bounds = array<i64: 32, 32>}, {pipeline_mode = #tpu.pipeline_mode<synchronous>, transform_indices = @transform_9, window_bounds = array<i64: 3, 3, 32, 32>}, {pipeline_mode = #tpu.pipeline_mode<synchronous>, transform_indices = @transform_10, window_bounds = array<i64: 1, 32>}, {pipeline_mode = #tpu.pipeline_mode<synchronous>, transform_indices = @transform_11, window_bounds = array<i64: 16, 32>}, {pipeline_mode = #tpu.pipeline_mode<synchronous>, transform_indices = @transform_12, window_bounds = array<i64: 1, 32>}, {pipeline_mode = #tpu.pipeline_mode<synchronous>, transform_indices = @transform_13, window_bounds = array<i64: 4, 4, 32, 32>}, {pipeline_mode = #tpu.pipeline_mode<synchronous>, transform_indices = @transform_14, window_bounds = array<i64: 1, 32>}, {transform_indices = @transform_15, window_bounds = array<i64: 1, 8, 2, 8, 64>}]} {
    %cst = arith.constant 0.000000e+00 : f32
    %0 = vector.broadcast %cst : f32 to vector<10x10x16xf32>
    %c0 = arith.constant 0 : index
    %c0_0 = arith.constant 0 : index
    %c0_1 = arith.constant 0 : index
    %1 = vector.load %arg17[%c0, %c0_0, %c0_1] : memref<10x10x16xf32, #tpu.memory_space<vmem>>, vector<10x10x16xf32>
    tpu.vector_store %arg17[%c0, %c0_0, %c0_1], %0 {strides = array<i32>} : memref<10x10x16xf32, #tpu.memory_space<vmem>>, vector<10x10x16xf32>,
    %cst_2 = arith.constant 0.000000e+00 : f32
    %2 = vector.broadcast %cst_2 : f32 to vector<10x10x32xf32>
    %c0_3 = arith.constant 0 : index
    %c0_4 = arith.constant 0 : index
    %c0_5 = arith.constant 0 : index
    %3 = vector.load %arg18[%c0_3, %c0_4, %c0_5] : memref<10x10x32xf32, #tpu.memory_space<vmem>>, vector<10x10x32xf32>
    tpu.vector_store %arg18[%c0_3, %c0_4, %c0_5], %2 {strides = array<i32>} : memref<10x10x32xf32, #tpu.memory_space<vmem>>, vector<10x10x32xf32>,
    %c0_6 = arith.constant 0 : index
    %c0_7 = arith.constant 0 : index
    %c0_8 = arith.constant 0 : index
    %c0_9 = arith.constant 0 : index
    %4 = vector.load %arg1[%c0_6, %c0_7, %c0_8, %c0_9] : memref<1x8x8x16xf32, #tpu.memory_space<vmem>>, vector<1x8x8x16xf32>
    %5 = vector.shape_cast %4 : vector<1x8x8x16xf32> to vector<8x8x16xf32>
    %6 = vector.shape_cast %5 : vector<8x8x16xf32> to vector<64x16xf32>
    %cst_10 = arith.constant dense<0.000000e+00> : vector<16xf32>
    %7 = vector.multi_reduction <add>, %6, %cst_10 [0] : vector<64x16xf32> to vector<16xf32>
    %8 = vector.shape_cast %7 : vector<16xf32> to vector<1x16xf32>
    %c0_11 = arith.constant 0 : index
    %c0_12 = arith.constant 0 : index
    %9 = vector.load %arg4[%c0_11, %c0_12] : memref<16x16xf32, #tpu.memory_space<vmem>>, vector<16x16xf32>
    %cst_13 = arith.constant dense<0.000000e+00> : vector<1x16xf32>
    %10 = tpu.matmul %8, %9, %cst_13 {dimension_numbers = #tpu.dot_dimension_numbers<[1], [0], [0], [1], [0, 0, 1, 1], [], []>} : vector<1x16xf32>, vector<16x16xf32>, vector<1x16xf32> -> vector<1x16xf32>
    %11 = vector.broadcast %10 : vector<1x16xf32> to vector<64x16xf32>
    %12 = arith.subf %6, %11 : vector<64x16xf32>
    %13 = arith.mulf %12, %12 : vector<64x16xf32>
    %cst_14 = arith.constant dense<0.000000e+00> : vector<16xf32>
    %14 = vector.multi_reduction <add>, %13, %cst_14 [0] : vector<64x16xf32> to vector<16xf32>
    %15 = vector.shape_cast %14 : vector<16xf32> to vector<1x16xf32>
    %c0_15 = arith.constant 0 : index
    %c0_16 = arith.constant 0 : index
    %16 = vector.load %arg4[%c0_15, %c0_16] : memref<16x16xf32, #tpu.memory_space<vmem>>, vector<16x16xf32>
    %cst_17 = arith.constant dense<0.000000e+00> : vector<1x16xf32>
    %17 = tpu.matmul %15, %16, %cst_17 {dimension_numbers = #tpu.dot_dimension_numbers<[1], [0], [0], [1], [0, 0, 1, 1], [], []>} : vector<1x16xf32>, vector<16x16xf32>, vector<1x16xf32> -> vector<1x16xf32>
    %cst_18 = arith.constant 9.99999997E-7 : f32
    %18 = vector.broadcast %cst_18 : f32 to vector<1x16xf32>
    %19 = arith.addf %17, %18 : vector<1x16xf32>
    %20 = math.rsqrt %19 : vector<1x16xf32>
    %21 = vector.broadcast %20 : vector<1x16xf32> to vector<64x16xf32>
    %22 = arith.mulf %12, %21 : vector<64x16xf32>
    %c0_19 = arith.constant 0 : index
    %c0_20 = arith.constant 0 : index
    %23 = vector.load %arg2[%c0_19, %c0_20] : memref<1x16xf32, #tpu.memory_space<vmem>>, vector<1x16xf32>
    %24 = vector.broadcast %23 : vector<1x16xf32> to vector<64x16xf32>
    %25 = arith.mulf %22, %24 : vector<64x16xf32>
    %c0_21 = arith.constant 0 : index
    %c0_22 = arith.constant 0 : index
    %26 = vector.load %arg3[%c0_21, %c0_22] : memref<1x16xf32, #tpu.memory_space<vmem>>, vector<1x16xf32>
    %27 = vector.broadcast %26 : vector<1x16xf32> to vector<64x16xf32>
    %28 = arith.addf %25, %27 : vector<64x16xf32>
    %29 = vector.shape_cast %28 : vector<64x16xf32> to vector<8x8x16xf32>
    %c1 = arith.constant 1 : index
    %c1_23 = arith.constant 1 : index
    %c0_24 = arith.constant 0 : index
    %30 = vector.load %arg17[%c1, %c1_23, %c0_24] : memref<10x10x16xf32, #tpu.memory_space<vmem>>, vector<8x8x16xf32>
    tpu.vector_store %arg17[%c1, %c1_23, %c0_24], %29 {strides = array<i32>} : memref<10x10x16xf32, #tpu.memory_space<vmem>>, vector<8x8x16xf32>,
    %cst_25 = arith.constant 0.000000e+00 : f32
    %31 = vector.broadcast %cst_25 : f32 to vector<64x32xf32>
    %c0_26 = arith.constant 0 : index
    %c0_27 = arith.constant 0 : index
    %c0_28 = arith.constant 0 : index
    %32 = vector.load %arg17[%c0_26, %c0_27, %c0_28] : memref<10x10x16xf32, #tpu.memory_space<vmem>>, vector<8x8x16xf32>
    %33 = vector.shape_cast %32 : vector<8x8x16xf32> to vector<64x16xf32>
    %c0_29 = arith.constant 0 : index
    %c0_30 = arith.constant 0 : index
    %c0_31 = arith.constant 0 : index
    %c0_32 = arith.constant 0 : index
    %34 = vector.load %arg5[%c0_29, %c0_30, %c0_31, %c0_32] : memref<3x3x16x32xf32, #tpu.memory_space<vmem>>, vector<1x1x16x32xf32>
    %35 = vector.shape_cast %34 : vector<1x1x16x32xf32> to vector<16x32xf32>
    %cst_33 = arith.constant dense<0.000000e+00> : vector<64x32xf32>
    %36 = tpu.matmul %33, %35, %cst_33 {dimension_numbers = #tpu.dot_dimension_numbers<[1], [0], [0], [1], [0, 0, 1, 1], [], []>} : vector<64x16xf32>, vector<16x32xf32>, vector<64x32xf32> -> vector<64x32xf32>
    %37 = arith.addf %31, %36 : vector<64x32xf32>
    %c0_34 = arith.constant 0 : index
    %c1_35 = arith.constant 1 : index
    %c0_36 = arith.constant 0 : index
    %38 = vector.load %arg17[%c0_34, %c1_35, %c0_36] : memref<10x10x16xf32, #tpu.memory_space<vmem>>, vector<8x8x16xf32>
    %39 = vector.shape_cast %38 : vector<8x8x16xf32> to vector<64x16xf32>
    %c0_37 = arith.constant 0 : index
    %c1_38 = arith.constant 1 : index
    %c0_39 = arith.constant 0 : index
    %c0_40 = arith.constant 0 : index
    %40 = vector.load %arg5[%c0_37, %c1_38, %c0_39, %c0_40] : memref<3x3x16x32xf32, #tpu.memory_space<vmem>>, vector<1x1x16x32xf32>
    %41 = vector.shape_cast %40 : vector<1x1x16x32xf32> to vector<16x32xf32>
    %cst_41 = arith.constant dense<0.000000e+00> : vector<64x32xf32>
    %42 = tpu.matmul %39, %41, %cst_41 {dimension_numbers = #tpu.dot_dimension_numbers<[1], [0], [0], [1], [0, 0, 1, 1], [], []>} : vector<64x16xf32>, vector<16x32xf32>, vector<64x32xf32> -> vector<64x32xf32>
    %43 = arith.addf %37, %42 : vector<64x32xf32>
    %c0_42 = arith.constant 0 : index
    %c2 = arith.constant 2 : index
    %c0_43 = arith.constant 0 : index
    %44 = vector.load %arg17[%c0_42, %c2, %c0_43] : memref<10x10x16xf32, #tpu.memory_space<vmem>>, vector<8x8x16xf32>
    %45 = vector.shape_cast %44 : vector<8x8x16xf32> to vector<64x16xf32>
    %c0_44 = arith.constant 0 : index
    %c2_45 = arith.constant 2 : index
    %c0_46 = arith.constant 0 : index
    %c0_47 = arith.constant 0 : index
    %46 = vector.load %arg5[%c0_44, %c2_45, %c0_46, %c0_47] : memref<3x3x16x32xf32, #tpu.memory_space<vmem>>, vector<1x1x16x32xf32>
    %47 = vector.shape_cast %46 : vector<1x1x16x32xf32> to vector<16x32xf32>
    %cst_48 = arith.constant dense<0.000000e+00> : vector<64x32xf32>
    %48 = tpu.matmul %45, %47, %cst_48 {dimension_numbers = #tpu.dot_dimension_numbers<[1], [0], [0], [1], [0, 0, 1, 1], [], []>} : vector<64x16xf32>, vector<16x32xf32>, vector<64x32xf32> -> vector<64x32xf32>
    %49 = arith.addf %43, %48 : vector<64x32xf32>
    %c1_49 = arith.constant 1 : index
    %c0_50 = arith.constant 0 : index
    %c0_51 = arith.constant 0 : index
    %50 = vector.load %arg17[%c1_49, %c0_50, %c0_51] : memref<10x10x16xf32, #tpu.memory_space<vmem>>, vector<8x8x16xf32>
    %51 = vector.shape_cast %50 : vector<8x8x16xf32> to vector<64x16xf32>
    %c1_52 = arith.constant 1 : index
    %c0_53 = arith.constant 0 : index
    %c0_54 = arith.constant 0 : index
    %c0_55 = arith.constant 0 : index
    %52 = vector.load %arg5[%c1_52, %c0_53, %c0_54, %c0_55] : memref<3x3x16x32xf32, #tpu.memory_space<vmem>>, vector<1x1x16x32xf32>
    %53 = vector.shape_cast %52 : vector<1x1x16x32xf32> to vector<16x32xf32>
    %cst_56 = arith.constant dense<0.000000e+00> : vector<64x32xf32>
    %54 = tpu.matmul %51, %53, %cst_56 {dimension_numbers = #tpu.dot_dimension_numbers<[1], [0], [0], [1], [0, 0, 1, 1], [], []>} : vector<64x16xf32>, vector<16x32xf32>, vector<64x32xf32> -> vector<64x32xf32>
    %55 = arith.addf %49, %54 : vector<64x32xf32>
    %c1_57 = arith.constant 1 : index
    %c1_58 = arith.constant 1 : index
    %c0_59 = arith.constant 0 : index
    %56 = vector.load %arg17[%c1_57, %c1_58, %c0_59] : memref<10x10x16xf32, #tpu.memory_space<vmem>>, vector<8x8x16xf32>
    %57 = vector.shape_cast %56 : vector<8x8x16xf32> to vector<64x16xf32>
    %c1_60 = arith.constant 1 : index
    %c1_61 = arith.constant 1 : index
    %c0_62 = arith.constant 0 : index
    %c0_63 = arith.constant 0 : index
    %58 = vector.load %arg5[%c1_60, %c1_61, %c0_62, %c0_63] : memref<3x3x16x32xf32, #tpu.memory_space<vmem>>, vector<1x1x16x32xf32>
    %59 = vector.shape_cast %58 : vector<1x1x16x32xf32> to vector<16x32xf32>
    %cst_64 = arith.constant dense<0.000000e+00> : vector<64x32xf32>
    %60 = tpu.matmul %57, %59, %cst_64 {dimension_numbers = #tpu.dot_dimension_numbers<[1], [0], [0], [1], [0, 0, 1, 1], [], []>} : vector<64x16xf32>, vector<16x32xf32>, vector<64x32xf32> -> vector<64x32xf32>
    %61 = arith.addf %55, %60 : vector<64x32xf32>
    %c1_65 = arith.constant 1 : index
    %c2_66 = arith.constant 2 : index
    %c0_67 = arith.constant 0 : index
    %62 = vector.load %arg17[%c1_65, %c2_66, %c0_67] : memref<10x10x16xf32, #tpu.memory_space<vmem>>, vector<8x8x16xf32>
    %63 = vector.shape_cast %62 : vector<8x8x16xf32> to vector<64x16xf32>
    %c1_68 = arith.constant 1 : index
    %c2_69 = arith.constant 2 : index
    %c0_70 = arith.constant 0 : index
    %c0_71 = arith.constant 0 : index
    %64 = vector.load %arg5[%c1_68, %c2_69, %c0_70, %c0_71] : memref<3x3x16x32xf32, #tpu.memory_space<vmem>>, vector<1x1x16x32xf32>
    %65 = vector.shape_cast %64 : vector<1x1x16x32xf32> to vector<16x32xf32>
    %cst_72 = arith.constant dense<0.000000e+00> : vector<64x32xf32>
    %66 = tpu.matmul %63, %65, %cst_72 {dimension_numbers = #tpu.dot_dimension_numbers<[1], [0], [0], [1], [0, 0, 1, 1], [], []>} : vector<64x16xf32>, vector<16x32xf32>, vector<64x32xf32> -> vector<64x32xf32>
    %67 = arith.addf %61, %66 : vector<64x32xf32>
    %c2_73 = arith.constant 2 : index
    %c0_74 = arith.constant 0 : index
    %c0_75 = arith.constant 0 : index
    %68 = vector.load %arg17[%c2_73, %c0_74, %c0_75] : memref<10x10x16xf32, #tpu.memory_space<vmem>>, vector<8x8x16xf32>
    %69 = vector.shape_cast %68 : vector<8x8x16xf32> to vector<64x16xf32>
    %c2_76 = arith.constant 2 : index
    %c0_77 = arith.constant 0 : index
    %c0_78 = arith.constant 0 : index
    %c0_79 = arith.constant 0 : index
    %70 = vector.load %arg5[%c2_76, %c0_77, %c0_78, %c0_79] : memref<3x3x16x32xf32, #tpu.memory_space<vmem>>, vector<1x1x16x32xf32>
    %71 = vector.shape_cast %70 : vector<1x1x16x32xf32> to vector<16x32xf32>
    %cst_80 = arith.constant dense<0.000000e+00> : vector<64x32xf32>
    %72 = tpu.matmul %69, %71, %cst_80 {dimension_numbers = #tpu.dot_dimension_numbers<[1], [0], [0], [1], [0, 0, 1, 1], [], []>} : vector<64x16xf32>, vector<16x32xf32>, vector<64x32xf32> -> vector<64x32xf32>
    %73 = arith.addf %67, %72 : vector<64x32xf32>
    %c2_81 = arith.constant 2 : index
    %c1_82 = arith.constant 1 : index
    %c0_83 = arith.constant 0 : index
    %74 = vector.load %arg17[%c2_81, %c1_82, %c0_83] : memref<10x10x16xf32, #tpu.memory_space<vmem>>, vector<8x8x16xf32>
    %75 = vector.shape_cast %74 : vector<8x8x16xf32> to vector<64x16xf32>
    %c2_84 = arith.constant 2 : index
    %c1_85 = arith.constant 1 : index
    %c0_86 = arith.constant 0 : index
    %c0_87 = arith.constant 0 : index
    %76 = vector.load %arg5[%c2_84, %c1_85, %c0_86, %c0_87] : memref<3x3x16x32xf32, #tpu.memory_space<vmem>>, vector<1x1x16x32xf32>
    %77 = vector.shape_cast %76 : vector<1x1x16x32xf32> to vector<16x32xf32>
    %cst_88 = arith.constant dense<0.000000e+00> : vector<64x32xf32>
    %78 = tpu.matmul %75, %77, %cst_88 {dimension_numbers = #tpu.dot_dimension_numbers<[1], [0], [0], [1], [0, 0, 1, 1], [], []>} : vector<64x16xf32>, vector<16x32xf32>, vector<64x32xf32> -> vector<64x32xf32>
    %79 = arith.addf %73, %78 : vector<64x32xf32>
    %c2_89 = arith.constant 2 : index
    %c2_90 = arith.constant 2 : index
    %c0_91 = arith.constant 0 : index
    %80 = vector.load %arg17[%c2_89, %c2_90, %c0_91] : memref<10x10x16xf32, #tpu.memory_space<vmem>>, vector<8x8x16xf32>
    %81 = vector.shape_cast %80 : vector<8x8x16xf32> to vector<64x16xf32>
    %c2_92 = arith.constant 2 : index
    %c2_93 = arith.constant 2 : index
    %c0_94 = arith.constant 0 : index
    %c0_95 = arith.constant 0 : index
    %82 = vector.load %arg5[%c2_92, %c2_93, %c0_94, %c0_95] : memref<3x3x16x32xf32, #tpu.memory_space<vmem>>, vector<1x1x16x32xf32>
    %83 = vector.shape_cast %82 : vector<1x1x16x32xf32> to vector<16x32xf32>
    %cst_96 = arith.constant dense<0.000000e+00> : vector<64x32xf32>
    %84 = tpu.matmul %81, %83, %cst_96 {dimension_numbers = #tpu.dot_dimension_numbers<[1], [0], [0], [1], [0, 0, 1, 1], [], []>} : vector<64x16xf32>, vector<16x32xf32>, vector<64x32xf32> -> vector<64x32xf32>
    %85 = arith.addf %79, %84 : vector<64x32xf32>
    %c0_97 = arith.constant 0 : index
    %c0_98 = arith.constant 0 : index
    %86 = vector.load %arg6[%c0_97, %c0_98] : memref<1x32xf32, #tpu.memory_space<vmem>>, vector<1x32xf32>
    %87 = vector.broadcast %86 : vector<1x32xf32> to vector<64x32xf32>
    %88 = arith.addf %85, %87 : vector<64x32xf32>
    %cst_99 = arith.constant dense<0.000000e+00> : vector<32xf32>
    %89 = vector.multi_reduction <add>, %88, %cst_99 [0] : vector<64x32xf32> to vector<32xf32>
    %90 = vector.shape_cast %89 : vector<32xf32> to vector<1x32xf32>
    %c0_100 = arith.constant 0 : index
    %c0_101 = arith.constant 0 : index
    %91 = vector.load %arg9[%c0_100, %c0_101] : memref<32x32xf32, #tpu.memory_space<vmem>>, vector<32x32xf32>
    %cst_102 = arith.constant dense<0.000000e+00> : vector<1x32xf32>
    %92 = tpu.matmul %90, %91, %cst_102 {dimension_numbers = #tpu.dot_dimension_numbers<[1], [0], [0], [1], [0, 0, 1, 1], [], []>} : vector<1x32xf32>, vector<32x32xf32>, vector<1x32xf32> -> vector<1x32xf32>
    %93 = vector.broadcast %92 : vector<1x32xf32> to vector<64x32xf32>
    %94 = arith.subf %88, %93 : vector<64x32xf32>
    %95 = arith.mulf %94, %94 : vector<64x32xf32>
    %cst_103 = arith.constant dense<0.000000e+00> : vector<32xf32>
    %96 = vector.multi_reduction <add>, %95, %cst_103 [0] : vector<64x32xf32> to vector<32xf32>
    %97 = vector.shape_cast %96 : vector<32xf32> to vector<1x32xf32>
    %c0_104 = arith.constant 0 : index
    %c0_105 = arith.constant 0 : index
    %98 = vector.load %arg9[%c0_104, %c0_105] : memref<32x32xf32, #tpu.memory_space<vmem>>, vector<32x32xf32>
    %cst_106 = arith.constant dense<0.000000e+00> : vector<1x32xf32>
    %99 = tpu.matmul %97, %98, %cst_106 {dimension_numbers = #tpu.dot_dimension_numbers<[1], [0], [0], [1], [0, 0, 1, 1], [], []>} : vector<1x32xf32>, vector<32x32xf32>, vector<1x32xf32> -> vector<1x32xf32>
    %cst_107 = arith.constant 9.99999997E-7 : f32
    %100 = vector.broadcast %cst_107 : f32 to vector<1x32xf32>
    %101 = arith.addf %99, %100 : vector<1x32xf32>
    %102 = math.rsqrt %101 : vector<1x32xf32>
    %103 = vector.broadcast %102 : vector<1x32xf32> to vector<64x32xf32>
    %104 = arith.mulf %94, %103 : vector<64x32xf32>
    %c0_108 = arith.constant 0 : index
    %c0_109 = arith.constant 0 : index
    %105 = vector.load %arg7[%c0_108, %c0_109] : memref<1x32xf32, #tpu.memory_space<vmem>>, vector<1x32xf32>
    %106 = vector.broadcast %105 : vector<1x32xf32> to vector<64x32xf32>
    %107 = arith.mulf %104, %106 : vector<64x32xf32>
    %c0_110 = arith.constant 0 : index
    %c0_111 = arith.constant 0 : index
    %108 = vector.load %arg8[%c0_110, %c0_111] : memref<1x32xf32, #tpu.memory_space<vmem>>, vector<1x32xf32>
    %109 = vector.broadcast %108 : vector<1x32xf32> to vector<64x32xf32>
    %110 = arith.addf %107, %109 : vector<64x32xf32>
    %111 = vector.shape_cast %110 : vector<64x32xf32> to vector<8x8x32xf32>
    %c1_112 = arith.constant 1 : index
    %c1_113 = arith.constant 1 : index
    %c0_114 = arith.constant 0 : index
    %112 = vector.load %arg18[%c1_112, %c1_113, %c0_114] : memref<10x10x32xf32, #tpu.memory_space<vmem>>, vector<8x8x32xf32>
    tpu.vector_store %arg18[%c1_112, %c1_113, %c0_114], %111 {strides = array<i32>} : memref<10x10x32xf32, #tpu.memory_space<vmem>>, vector<8x8x32xf32>,
    %cst_115 = arith.constant 0.000000e+00 : f32
    %113 = vector.broadcast %cst_115 : f32 to vector<64x32xf32>
    %c0_116 = arith.constant 0 : index
    %c0_117 = arith.constant 0 : index
    %c0_118 = arith.constant 0 : index
    %114 = vector.load %arg18[%c0_116, %c0_117, %c0_118] : memref<10x10x32xf32, #tpu.memory_space<vmem>>, vector<8x8x32xf32>
    %115 = vector.shape_cast %114 : vector<8x8x32xf32> to vector<64x32xf32>
    %c0_119 = arith.constant 0 : index
    %c0_120 = arith.constant 0 : index
    %c0_121 = arith.constant 0 : index
    %c0_122 = arith.constant 0 : index
    %116 = vector.load %arg10[%c0_119, %c0_120, %c0_121, %c0_122] : memref<3x3x32x32xf32, #tpu.memory_space<vmem>>, vector<1x1x32x32xf32>
    %117 = vector.shape_cast %116 : vector<1x1x32x32xf32> to vector<32x32xf32>
    %cst_123 = arith.constant dense<0.000000e+00> : vector<64x32xf32>
    %118 = tpu.matmul %115, %117, %cst_123 {dimension_numbers = #tpu.dot_dimension_numbers<[1], [0], [0], [1], [0, 0, 1, 1], [], []>} : vector<64x32xf32>, vector<32x32xf32>, vector<64x32xf32> -> vector<64x32xf32>
    %119 = arith.addf %113, %118 : vector<64x32xf32>
    %c0_124 = arith.constant 0 : index
    %c1_125 = arith.constant 1 : index
    %c0_126 = arith.constant 0 : index
    %120 = vector.load %arg18[%c0_124, %c1_125, %c0_126] : memref<10x10x32xf32, #tpu.memory_space<vmem>>, vector<8x8x32xf32>
    %121 = vector.shape_cast %120 : vector<8x8x32xf32> to vector<64x32xf32>
    %c0_127 = arith.constant 0 : index
    %c1_128 = arith.constant 1 : index
    %c0_129 = arith.constant 0 : index
    %c0_130 = arith.constant 0 : index
    %122 = vector.load %arg10[%c0_127, %c1_128, %c0_129, %c0_130] : memref<3x3x32x32xf32, #tpu.memory_space<vmem>>, vector<1x1x32x32xf32>
    %123 = vector.shape_cast %122 : vector<1x1x32x32xf32> to vector<32x32xf32>
    %cst_131 = arith.constant dense<0.000000e+00> : vector<64x32xf32>
    %124 = tpu.matmul %121, %123, %cst_131 {dimension_numbers = #tpu.dot_dimension_numbers<[1], [0], [0], [1], [0, 0, 1, 1], [], []>} : vector<64x32xf32>, vector<32x32xf32>, vector<64x32xf32> -> vector<64x32xf32>
    %125 = arith.addf %119, %124 : vector<64x32xf32>
    %c0_132 = arith.constant 0 : index
    %c2_133 = arith.constant 2 : index
    %c0_134 = arith.constant 0 : index
    %126 = vector.load %arg18[%c0_132, %c2_133, %c0_134] : memref<10x10x32xf32, #tpu.memory_space<vmem>>, vector<8x8x32xf32>
    %127 = vector.shape_cast %126 : vector<8x8x32xf32> to vector<64x32xf32>
    %c0_135 = arith.constant 0 : index
    %c2_136 = arith.constant 2 : index
    %c0_137 = arith.constant 0 : index
    %c0_138 = arith.constant 0 : index
    %128 = vector.load %arg10[%c0_135, %c2_136, %c0_137, %c0_138] : memref<3x3x32x32xf32, #tpu.memory_space<vmem>>, vector<1x1x32x32xf32>
    %129 = vector.shape_cast %128 : vector<1x1x32x32xf32> to vector<32x32xf32>
    %cst_139 = arith.constant dense<0.000000e+00> : vector<64x32xf32>
    %130 = tpu.matmul %127, %129, %cst_139 {dimension_numbers = #tpu.dot_dimension_numbers<[1], [0], [0], [1], [0, 0, 1, 1], [], []>} : vector<64x32xf32>, vector<32x32xf32>, vector<64x32xf32> -> vector<64x32xf32>
    %131 = arith.addf %125, %130 : vector<64x32xf32>
    %c1_140 = arith.constant 1 : index
    %c0_141 = arith.constant 0 : index
    %c0_142 = arith.constant 0 : index
    %132 = vector.load %arg18[%c1_140, %c0_141, %c0_142] : memref<10x10x32xf32, #tpu.memory_space<vmem>>, vector<8x8x32xf32>
    %133 = vector.shape_cast %132 : vector<8x8x32xf32> to vector<64x32xf32>
    %c1_143 = arith.constant 1 : index
    %c0_144 = arith.constant 0 : index
    %c0_145 = arith.constant 0 : index
    %c0_146 = arith.constant 0 : index
    %134 = vector.load %arg10[%c1_143, %c0_144, %c0_145, %c0_146] : memref<3x3x32x32xf32, #tpu.memory_space<vmem>>, vector<1x1x32x32xf32>
    %135 = vector.shape_cast %134 : vector<1x1x32x32xf32> to vector<32x32xf32>
    %cst_147 = arith.constant dense<0.000000e+00> : vector<64x32xf32>
    %136 = tpu.matmul %133, %135, %cst_147 {dimension_numbers = #tpu.dot_dimension_numbers<[1], [0], [0], [1], [0, 0, 1, 1], [], []>} : vector<64x32xf32>, vector<32x32xf32>, vector<64x32xf32> -> vector<64x32xf32>
    %137 = arith.addf %131, %136 : vector<64x32xf32>
    %c1_148 = arith.constant 1 : index
    %c1_149 = arith.constant 1 : index
    %c0_150 = arith.constant 0 : index
    %138 = vector.load %arg18[%c1_148, %c1_149, %c0_150] : memref<10x10x32xf32, #tpu.memory_space<vmem>>, vector<8x8x32xf32>
    %139 = vector.shape_cast %138 : vector<8x8x32xf32> to vector<64x32xf32>
    %c1_151 = arith.constant 1 : index
    %c1_152 = arith.constant 1 : index
    %c0_153 = arith.constant 0 : index
    %c0_154 = arith.constant 0 : index
    %140 = vector.load %arg10[%c1_151, %c1_152, %c0_153, %c0_154] : memref<3x3x32x32xf32, #tpu.memory_space<vmem>>, vector<1x1x32x32xf32>
    %141 = vector.shape_cast %140 : vector<1x1x32x32xf32> to vector<32x32xf32>
    %cst_155 = arith.constant dense<0.000000e+00> : vector<64x32xf32>
    %142 = tpu.matmul %139, %141, %cst_155 {dimension_numbers = #tpu.dot_dimension_numbers<[1], [0], [0], [1], [0, 0, 1, 1], [], []>} : vector<64x32xf32>, vector<32x32xf32>, vector<64x32xf32> -> vector<64x32xf32>
    %143 = arith.addf %137, %142 : vector<64x32xf32>
    %c1_156 = arith.constant 1 : index
    %c2_157 = arith.constant 2 : index
    %c0_158 = arith.constant 0 : index
    %144 = vector.load %arg18[%c1_156, %c2_157, %c0_158] : memref<10x10x32xf32, #tpu.memory_space<vmem>>, vector<8x8x32xf32>
    %145 = vector.shape_cast %144 : vector<8x8x32xf32> to vector<64x32xf32>
    %c1_159 = arith.constant 1 : index
    %c2_160 = arith.constant 2 : index
    %c0_161 = arith.constant 0 : index
    %c0_162 = arith.constant 0 : index
    %146 = vector.load %arg10[%c1_159, %c2_160, %c0_161, %c0_162] : memref<3x3x32x32xf32, #tpu.memory_space<vmem>>, vector<1x1x32x32xf32>
    %147 = vector.shape_cast %146 : vector<1x1x32x32xf32> to vector<32x32xf32>
    %cst_163 = arith.constant dense<0.000000e+00> : vector<64x32xf32>
    %148 = tpu.matmul %145, %147, %cst_163 {dimension_numbers = #tpu.dot_dimension_numbers<[1], [0], [0], [1], [0, 0, 1, 1], [], []>} : vector<64x32xf32>, vector<32x32xf32>, vector<64x32xf32> -> vector<64x32xf32>
    %149 = arith.addf %143, %148 : vector<64x32xf32>
    %c2_164 = arith.constant 2 : index
    %c0_165 = arith.constant 0 : index
    %c0_166 = arith.constant 0 : index
    %150 = vector.load %arg18[%c2_164, %c0_165, %c0_166] : memref<10x10x32xf32, #tpu.memory_space<vmem>>, vector<8x8x32xf32>
    %151 = vector.shape_cast %150 : vector<8x8x32xf32> to vector<64x32xf32>
    %c2_167 = arith.constant 2 : index
    %c0_168 = arith.constant 0 : index
    %c0_169 = arith.constant 0 : index
    %c0_170 = arith.constant 0 : index
    %152 = vector.load %arg10[%c2_167, %c0_168, %c0_169, %c0_170] : memref<3x3x32x32xf32, #tpu.memory_space<vmem>>, vector<1x1x32x32xf32>
    %153 = vector.shape_cast %152 : vector<1x1x32x32xf32> to vector<32x32xf32>
    %cst_171 = arith.constant dense<0.000000e+00> : vector<64x32xf32>
    %154 = tpu.matmul %151, %153, %cst_171 {dimension_numbers = #tpu.dot_dimension_numbers<[1], [0], [0], [1], [0, 0, 1, 1], [], []>} : vector<64x32xf32>, vector<32x32xf32>, vector<64x32xf32> -> vector<64x32xf32>
    %155 = arith.addf %149, %154 : vector<64x32xf32>
    %c2_172 = arith.constant 2 : index
    %c1_173 = arith.constant 1 : index
    %c0_174 = arith.constant 0 : index
    %156 = vector.load %arg18[%c2_172, %c1_173, %c0_174] : memref<10x10x32xf32, #tpu.memory_space<vmem>>, vector<8x8x32xf32>
    %157 = vector.shape_cast %156 : vector<8x8x32xf32> to vector<64x32xf32>
    %c2_175 = arith.constant 2 : index
    %c1_176 = arith.constant 1 : index
    %c0_177 = arith.constant 0 : index
    %c0_178 = arith.constant 0 : index
    %158 = vector.load %arg10[%c2_175, %c1_176, %c0_177, %c0_178] : memref<3x3x32x32xf32, #tpu.memory_space<vmem>>, vector<1x1x32x32xf32>
    %159 = vector.shape_cast %158 : vector<1x1x32x32xf32> to vector<32x32xf32>
    %cst_179 = arith.constant dense<0.000000e+00> : vector<64x32xf32>
    %160 = tpu.matmul %157, %159, %cst_179 {dimension_numbers = #tpu.dot_dimension_numbers<[1], [0], [0], [1], [0, 0, 1, 1], [], []>} : vector<64x32xf32>, vector<32x32xf32>, vector<64x32xf32> -> vector<64x32xf32>
    %161 = arith.addf %155, %160 : vector<64x32xf32>
    %c2_180 = arith.constant 2 : index
    %c2_181 = arith.constant 2 : index
    %c0_182 = arith.constant 0 : index
    %162 = vector.load %arg18[%c2_180, %c2_181, %c0_182] : memref<10x10x32xf32, #tpu.memory_space<vmem>>, vector<8x8x32xf32>
    %163 = vector.shape_cast %162 : vector<8x8x32xf32> to vector<64x32xf32>
    %c2_183 = arith.constant 2 : index
    %c2_184 = arith.constant 2 : index
    %c0_185 = arith.constant 0 : index
    %c0_186 = arith.constant 0 : index
    %164 = vector.load %arg10[%c2_183, %c2_184, %c0_185, %c0_186] : memref<3x3x32x32xf32, #tpu.memory_space<vmem>>, vector<1x1x32x32xf32>
    %165 = vector.shape_cast %164 : vector<1x1x32x32xf32> to vector<32x32xf32>
    %cst_187 = arith.constant dense<0.000000e+00> : vector<64x32xf32>
    %166 = tpu.matmul %163, %165, %cst_187 {dimension_numbers = #tpu.dot_dimension_numbers<[1], [0], [0], [1], [0, 0, 1, 1], [], []>} : vector<64x32xf32>, vector<32x32xf32>, vector<64x32xf32> -> vector<64x32xf32>
    %167 = arith.addf %161, %166 : vector<64x32xf32>
    %c0_188 = arith.constant 0 : index
    %c0_189 = arith.constant 0 : index
    %168 = vector.load %arg11[%c0_188, %c0_189] : memref<1x32xf32, #tpu.memory_space<vmem>>, vector<1x32xf32>
    %169 = vector.broadcast %168 : vector<1x32xf32> to vector<64x32xf32>
    %170 = arith.addf %167, %169 : vector<64x32xf32>
    %171 = arith.negf %170 : vector<64x32xf32>
    %172 = math.exp %171 : vector<64x32xf32>
    %cst_190 = arith.constant 1.000000e+00 : f32
    %173 = vector.broadcast %cst_190 : f32 to vector<64x32xf32>
    %174 = arith.addf %173, %172 : vector<64x32xf32>
    %175 = arith.divf %173, %174 : vector<64x32xf32>
    %176 = arith.mulf %170, %175 : vector<64x32xf32>
    %c0_191 = arith.constant 0 : index
    %c0_192 = arith.constant 0 : index
    %177 = vector.load %arg12[%c0_191, %c0_192] : memref<16x32xf32, #tpu.memory_space<vmem>>, vector<16x32xf32>
    %cst_193 = arith.constant dense<0.000000e+00> : vector<64x32xf32>
    %178 = tpu.matmul %6, %177, %cst_193 {dimension_numbers = #tpu.dot_dimension_numbers<[1], [0], [0], [1], [0, 0, 1, 1], [], []>} : vector<64x16xf32>, vector<16x32xf32>, vector<64x32xf32> -> vector<64x32xf32>
    %c0_194 = arith.constant 0 : index
    %c0_195 = arith.constant 0 : index
    %179 = vector.load %arg13[%c0_194, %c0_195] : memref<1x32xf32, #tpu.memory_space<vmem>>, vector<1x32xf32>
    %180 = vector.broadcast %179 : vector<1x32xf32> to vector<64x32xf32>
    %181 = arith.addf %178, %180 : vector<64x32xf32>
    %182 = arith.addf %176, %181 : vector<64x32xf32>
    %183 = vector.shape_cast %182 : vector<64x32xf32> to vector<8x8x32xf32>
    %c1_196 = arith.constant 1 : index
    %c1_197 = arith.constant 1 : index
    %c0_198 = arith.constant 0 : index
    %184 = vector.load %arg18[%c1_196, %c1_197, %c0_198] : memref<10x10x32xf32, #tpu.memory_space<vmem>>, vector<8x8x32xf32>
    tpu.vector_store %arg18[%c1_196, %c1_197, %c0_198], %183 {strides = array<i32>} : memref<10x10x32xf32, #tpu.memory_space<vmem>>, vector<8x8x32xf32>,
    %cst_199 = arith.constant 0.000000e+00 : f32
    %185 = vector.broadcast %cst_199 : f32 to vector<64x32xf32>
    %c0_200 = arith.constant 0 : index
    %c0_201 = arith.constant 0 : index
    %c0_202 = arith.constant 0 : index
    %186 = vector.load %arg18[%c0_200, %c0_201, %c0_202] : memref<10x10x32xf32, #tpu.memory_space<vmem>>, vector<8x8x32xf32>
    %187 = vector.shape_cast %186 : vector<8x8x32xf32> to vector<64x32xf32>
    %c0_203 = arith.constant 0 : index
    %c0_204 = arith.constant 0 : index
    %c0_205 = arith.constant 0 : index
    %c0_206 = arith.constant 0 : index
    %188 = vector.load %arg14[%c0_203, %c0_204, %c0_205, %c0_206] : memref<4x4x32x32xf32, #tpu.memory_space<vmem>>, vector<1x1x32x32xf32>
    %189 = vector.shape_cast %188 : vector<1x1x32x32xf32> to vector<32x32xf32>
    %cst_207 = arith.constant dense<0.000000e+00> : vector<64x32xf32>
    %190 = tpu.matmul %187, %189, %cst_207 {dimension_numbers = #tpu.dot_dimension_numbers<[1], [0], [0], [1], [0, 0, 1, 1], [], []>} : vector<64x32xf32>, vector<32x32xf32>, vector<64x32xf32> -> vector<64x32xf32>
    %191 = arith.addf %185, %190 : vector<64x32xf32>
    %c0_208 = arith.constant 0 : index
    %c1_209 = arith.constant 1 : index
    %c0_210 = arith.constant 0 : index
    %192 = vector.load %arg18[%c0_208, %c1_209, %c0_210] : memref<10x10x32xf32, #tpu.memory_space<vmem>>, vector<8x8x32xf32>
    %193 = vector.shape_cast %192 : vector<8x8x32xf32> to vector<64x32xf32>
    %c0_211 = arith.constant 0 : index
    %c1_212 = arith.constant 1 : index
    %c0_213 = arith.constant 0 : index
    %c0_214 = arith.constant 0 : index
    %194 = vector.load %arg14[%c0_211, %c1_212, %c0_213, %c0_214] : memref<4x4x32x32xf32, #tpu.memory_space<vmem>>, vector<1x1x32x32xf32>
    %195 = vector.shape_cast %194 : vector<1x1x32x32xf32> to vector<32x32xf32>
    %cst_215 = arith.constant dense<0.000000e+00> : vector<64x32xf32>
    %196 = tpu.matmul %193, %195, %cst_215 {dimension_numbers = #tpu.dot_dimension_numbers<[1], [0], [0], [1], [0, 0, 1, 1], [], []>} : vector<64x32xf32>, vector<32x32xf32>, vector<64x32xf32> -> vector<64x32xf32>
    %197 = arith.addf %191, %196 : vector<64x32xf32>
    %c1_216 = arith.constant 1 : index
    %c0_217 = arith.constant 0 : index
    %c0_218 = arith.constant 0 : index
    %198 = vector.load %arg18[%c1_216, %c0_217, %c0_218] : memref<10x10x32xf32, #tpu.memory_space<vmem>>, vector<8x8x32xf32>
    %199 = vector.shape_cast %198 : vector<8x8x32xf32> to vector<64x32xf32>
    %c0_219 = arith.constant 0 : index
    %c2_220 = arith.constant 2 : index
    %c0_221 = arith.constant 0 : index
    %c0_222 = arith.constant 0 : index
    %200 = vector.load %arg14[%c0_219, %c2_220, %c0_221, %c0_222] : memref<4x4x32x32xf32, #tpu.memory_space<vmem>>, vector<1x1x32x32xf32>
    %201 = vector.shape_cast %200 : vector<1x1x32x32xf32> to vector<32x32xf32>
    %cst_223 = arith.constant dense<0.000000e+00> : vector<64x32xf32>
    %202 = tpu.matmul %199, %201, %cst_223 {dimension_numbers = #tpu.dot_dimension_numbers<[1], [0], [0], [1], [0, 0, 1, 1], [], []>} : vector<64x32xf32>, vector<32x32xf32>, vector<64x32xf32> -> vector<64x32xf32>
    %203 = arith.addf %197, %202 : vector<64x32xf32>
    %c1_224 = arith.constant 1 : index
    %c1_225 = arith.constant 1 : index
    %c0_226 = arith.constant 0 : index
    %204 = vector.load %arg18[%c1_224, %c1_225, %c0_226] : memref<10x10x32xf32, #tpu.memory_space<vmem>>, vector<8x8x32xf32>
    %205 = vector.shape_cast %204 : vector<8x8x32xf32> to vector<64x32xf32>
    %c0_227 = arith.constant 0 : index
    %c3 = arith.constant 3 : index
    %c0_228 = arith.constant 0 : index
    %c0_229 = arith.constant 0 : index
    %206 = vector.load %arg14[%c0_227, %c3, %c0_228, %c0_229] : memref<4x4x32x32xf32, #tpu.memory_space<vmem>>, vector<1x1x32x32xf32>
    %207 = vector.shape_cast %206 : vector<1x1x32x32xf32> to vector<32x32xf32>
    %cst_230 = arith.constant dense<0.000000e+00> : vector<64x32xf32>
    %208 = tpu.matmul %205, %207, %cst_230 {dimension_numbers = #tpu.dot_dimension_numbers<[1], [0], [0], [1], [0, 0, 1, 1], [], []>} : vector<64x32xf32>, vector<32x32xf32>, vector<64x32xf32> -> vector<64x32xf32>
    %209 = arith.addf %203, %208 : vector<64x32xf32>
    %c0_231 = arith.constant 0 : index
    %c0_232 = arith.constant 0 : index
    %210 = vector.load %arg15[%c0_231, %c0_232] : memref<1x32xf32, #tpu.memory_space<vmem>>, vector<1x32xf32>
    %211 = vector.broadcast %210 : vector<1x32xf32> to vector<64x32xf32>
    %212 = arith.addf %209, %211 : vector<64x32xf32>
    %213 = vector.shape_cast %212 : vector<64x32xf32> to vector<8x8x32xf32>
    %c0_233 = arith.constant 0 : index
    %c0_234 = arith.constant 0 : index
    %c0_235 = arith.constant 0 : index
    %c0_236 = arith.constant 0 : index
    %c0_237 = arith.constant 0 : index
    %214 = vector.load %arg16[%c0_233, %c0_234, %c0_235, %c0_236, %c0_237] : memref<1x8x2x8x64xf32, #tpu.memory_space<vmem>>, vector<1x8x1x8x32xf32>
    %215 = vector.shape_cast %214 : vector<1x8x1x8x32xf32> to vector<8x8x32xf32>
    %216 = vector.shape_cast %213 : vector<8x8x32xf32> to vector<1x8x1x8x32xf32>
    tpu.vector_store %arg16[%c0_233, %c0_234, %c0_235, %c0_236, %c0_237], %216 {strides = array<i32>} : memref<1x8x2x8x64xf32, #tpu.memory_space<vmem>>, vector<1x8x1x8x32xf32>,
    %cst_238 = arith.constant 0.000000e+00 : f32
    %217 = vector.broadcast %cst_238 : f32 to vector<64x32xf32>
    %c0_239 = arith.constant 0 : index
    %c1_240 = arith.constant 1 : index
    %c0_241 = arith.constant 0 : index
    %218 = vector.load %arg18[%c0_239, %c1_240, %c0_241] : memref<10x10x32xf32, #tpu.memory_space<vmem>>, vector<8x8x32xf32>
    %219 = vector.shape_cast %218 : vector<8x8x32xf32> to vector<64x32xf32>
    %c1_242 = arith.constant 1 : index
    %c0_243 = arith.constant 0 : index
    %c0_244 = arith.constant 0 : index
    %c0_245 = arith.constant 0 : index
    %220 = vector.load %arg14[%c1_242, %c0_243, %c0_244, %c0_245] : memref<4x4x32x32xf32, #tpu.memory_space<vmem>>, vector<1x1x32x32xf32>
    %221 = vector.shape_cast %220 : vector<1x1x32x32xf32> to vector<32x32xf32>
    %cst_246 = arith.constant dense<0.000000e+00> : vector<64x32xf32>
    %222 = tpu.matmul %219, %221, %cst_246 {dimension_numbers = #tpu.dot_dimension_numbers<[1], [0], [0], [1], [0, 0, 1, 1], [], []>} : vector<64x32xf32>, vector<32x32xf32>, vector<64x32xf32> -> vector<64x32xf32>
    %223 = arith.addf %217, %222 : vector<64x32xf32>
    %c0_247 = arith.constant 0 : index
    %c2_248 = arith.constant 2 : index
    %c0_249 = arith.constant 0 : index
    %224 = vector.load %arg18[%c0_247, %c2_248, %c0_249] : memref<10x10x32xf32, #tpu.memory_space<vmem>>, vector<8x8x32xf32>
    %225 = vector.shape_cast %224 : vector<8x8x32xf32> to vector<64x32xf32>
    %c1_250 = arith.constant 1 : index
    %c1_251 = arith.constant 1 : index
    %c0_252 = arith.constant 0 : index
    %c0_253 = arith.constant 0 : index
    %226 = vector.load %arg14[%c1_250, %c1_251, %c0_252, %c0_253] : memref<4x4x32x32xf32, #tpu.memory_space<vmem>>, vector<1x1x32x32xf32>
    %227 = vector.shape_cast %226 : vector<1x1x32x32xf32> to vector<32x32xf32>
    %cst_254 = arith.constant dense<0.000000e+00> : vector<64x32xf32>
    %228 = tpu.matmul %225, %227, %cst_254 {dimension_numbers = #tpu.dot_dimension_numbers<[1], [0], [0], [1], [0, 0, 1, 1], [], []>} : vector<64x32xf32>, vector<32x32xf32>, vector<64x32xf32> -> vector<64x32xf32>
    %229 = arith.addf %223, %228 : vector<64x32xf32>
    %c1_255 = arith.constant 1 : index
    %c1_256 = arith.constant 1 : index
    %c0_257 = arith.constant 0 : index
    %230 = vector.load %arg18[%c1_255, %c1_256, %c0_257] : memref<10x10x32xf32, #tpu.memory_space<vmem>>, vector<8x8x32xf32>
    %231 = vector.shape_cast %230 : vector<8x8x32xf32> to vector<64x32xf32>
    %c1_258 = arith.constant 1 : index
    %c2_259 = arith.constant 2 : index
    %c0_260 = arith.constant 0 : index
    %c0_261 = arith.constant 0 : index
    %232 = vector.load %arg14[%c1_258, %c2_259, %c0_260, %c0_261] : memref<4x4x32x32xf32, #tpu.memory_space<vmem>>, vector<1x1x32x32xf32>
    %233 = vector.shape_cast %232 : vector<1x1x32x32xf32> to vector<32x32xf32>
    %cst_262 = arith.constant dense<0.000000e+00> : vector<64x32xf32>
    %234 = tpu.matmul %231, %233, %cst_262 {dimension_numbers = #tpu.dot_dimension_numbers<[1], [0], [0], [1], [0, 0, 1, 1], [], []>} : vector<64x32xf32>, vector<32x32xf32>, vector<64x32xf32> -> vector<64x32xf32>
    %235 = arith.addf %229, %234 : vector<64x32xf32>
    %c1_263 = arith.constant 1 : index
    %c2_264 = arith.constant 2 : index
    %c0_265 = arith.constant 0 : index
    %236 = vector.load %arg18[%c1_263, %c2_264, %c0_265] : memref<10x10x32xf32, #tpu.memory_space<vmem>>, vector<8x8x32xf32>
    %237 = vector.shape_cast %236 : vector<8x8x32xf32> to vector<64x32xf32>
    %c1_266 = arith.constant 1 : index
    %c3_267 = arith.constant 3 : index
    %c0_268 = arith.constant 0 : index
    %c0_269 = arith.constant 0 : index
    %238 = vector.load %arg14[%c1_266, %c3_267, %c0_268, %c0_269] : memref<4x4x32x32xf32, #tpu.memory_space<vmem>>, vector<1x1x32x32xf32>
    %239 = vector.shape_cast %238 : vector<1x1x32x32xf32> to vector<32x32xf32>
    %cst_270 = arith.constant dense<0.000000e+00> : vector<64x32xf32>
    %240 = tpu.matmul %237, %239, %cst_270 {dimension_numbers = #tpu.dot_dimension_numbers<[1], [0], [0], [1], [0, 0, 1, 1], [], []>} : vector<64x32xf32>, vector<32x32xf32>, vector<64x32xf32> -> vector<64x32xf32>
    %241 = arith.addf %235, %240 : vector<64x32xf32>
    %c0_271 = arith.constant 0 : index
    %c0_272 = arith.constant 0 : index
    %242 = vector.load %arg15[%c0_271, %c0_272] : memref<1x32xf32, #tpu.memory_space<vmem>>, vector<1x32xf32>
    %243 = vector.broadcast %242 : vector<1x32xf32> to vector<64x32xf32>
    %244 = arith.addf %241, %243 : vector<64x32xf32>
    %245 = vector.shape_cast %244 : vector<64x32xf32> to vector<8x8x32xf32>
    %c0_273 = arith.constant 0 : index
    %c0_274 = arith.constant 0 : index
    %c0_275 = arith.constant 0 : index
    %c0_276 = arith.constant 0 : index
    %c32 = arith.constant 32 : index
    %246 = vector.load %arg16[%c0_273, %c0_274, %c0_275, %c0_276, %c32] : memref<1x8x2x8x64xf32, #tpu.memory_space<vmem>>, vector<1x8x1x8x32xf32>
    %247 = vector.shape_cast %246 : vector<1x8x1x8x32xf32> to vector<8x8x32xf32>
    %248 = vector.shape_cast %245 : vector<8x8x32xf32> to vector<1x8x1x8x32xf32>
    tpu.vector_store %arg16[%c0_273, %c0_274, %c0_275, %c0_276, %c32], %248 {strides = array<i32>} : memref<1x8x2x8x64xf32, #tpu.memory_space<vmem>>, vector<1x8x1x8x32xf32>,
    %cst_277 = arith.constant 0.000000e+00 : f32
    %249 = vector.broadcast %cst_277 : f32 to vector<64x32xf32>
    %c1_278 = arith.constant 1 : index
    %c0_279 = arith.constant 0 : index
    %c0_280 = arith.constant 0 : index
    %250 = vector.load %arg18[%c1_278, %c0_279, %c0_280] : memref<10x10x32xf32, #tpu.memory_space<vmem>>, vector<8x8x32xf32>
    %251 = vector.shape_cast %250 : vector<8x8x32xf32> to vector<64x32xf32>
    %c2_281 = arith.constant 2 : index
    %c0_282 = arith.constant 0 : index
    %c0_283 = arith.constant 0 : index
    %c0_284 = arith.constant 0 : index
    %252 = vector.load %arg14[%c2_281, %c0_282, %c0_283, %c0_284] : memref<4x4x32x32xf32, #tpu.memory_space<vmem>>, vector<1x1x32x32xf32>
    %253 = vector.shape_cast %252 : vector<1x1x32x32xf32> to vector<32x32xf32>
    %cst_285 = arith.constant dense<0.000000e+00> : vector<64x32xf32>
    %254 = tpu.matmul %251, %253, %cst_285 {dimension_numbers = #tpu.dot_dimension_numbers<[1], [0], [0], [1], [0, 0, 1, 1], [], []>} : vector<64x32xf32>, vector<32x32xf32>, vector<64x32xf32> -> vector<64x32xf32>
    %255 = arith.addf %249, %254 : vector<64x32xf32>
    %c1_286 = arith.constant 1 : index
    %c1_287 = arith.constant 1 : index
    %c0_288 = arith.constant 0 : index
    %256 = vector.load %arg18[%c1_286, %c1_287, %c0_288] : memref<10x10x32xf32, #tpu.memory_space<vmem>>, vector<8x8x32xf32>
    %257 = vector.shape_cast %256 : vector<8x8x32xf32> to vector<64x32xf32>
    %c2_289 = arith.constant 2 : index
    %c1_290 = arith.constant 1 : index
    %c0_291 = arith.constant 0 : index
    %c0_292 = arith.constant 0 : index
    %258 = vector.load %arg14[%c2_289, %c1_290, %c0_291, %c0_292] : memref<4x4x32x32xf32, #tpu.memory_space<vmem>>, vector<1x1x32x32xf32>
    %259 = vector.shape_cast %258 : vector<1x1x32x32xf32> to vector<32x32xf32>
    %cst_293 = arith.constant dense<0.000000e+00> : vector<64x32xf32>
    %260 = tpu.matmul %257, %259, %cst_293 {dimension_numbers = #tpu.dot_dimension_numbers<[1], [0], [0], [1], [0, 0, 1, 1], [], []>} : vector<64x32xf32>, vector<32x32xf32>, vector<64x32xf32> -> vector<64x32xf32>
    %261 = arith.addf %255, %260 : vector<64x32xf32>
    %c2_294 = arith.constant 2 : index
    %c0_295 = arith.constant 0 : index
    %c0_296 = arith.constant 0 : index
    %262 = vector.load %arg18[%c2_294, %c0_295, %c0_296] : memref<10x10x32xf32, #tpu.memory_space<vmem>>, vector<8x8x32xf32>
    %263 = vector.shape_cast %262 : vector<8x8x32xf32> to vector<64x32xf32>
    %c2_297 = arith.constant 2 : index
    %c2_298 = arith.constant 2 : index
    %c0_299 = arith.constant 0 : index
    %c0_300 = arith.constant 0 : index
    %264 = vector.load %arg14[%c2_297, %c2_298, %c0_299, %c0_300] : memref<4x4x32x32xf32, #tpu.memory_space<vmem>>, vector<1x1x32x32xf32>
    %265 = vector.shape_cast %264 : vector<1x1x32x32xf32> to vector<32x32xf32>
    %cst_301 = arith.constant dense<0.000000e+00> : vector<64x32xf32>
    %266 = tpu.matmul %263, %265, %cst_301 {dimension_numbers = #tpu.dot_dimension_numbers<[1], [0], [0], [1], [0, 0, 1, 1], [], []>} : vector<64x32xf32>, vector<32x32xf32>, vector<64x32xf32> -> vector<64x32xf32>
    %267 = arith.addf %261, %266 : vector<64x32xf32>
    %c2_302 = arith.constant 2 : index
    %c1_303 = arith.constant 1 : index
    %c0_304 = arith.constant 0 : index
    %268 = vector.load %arg18[%c2_302, %c1_303, %c0_304] : memref<10x10x32xf32, #tpu.memory_space<vmem>>, vector<8x8x32xf32>
    %269 = vector.shape_cast %268 : vector<8x8x32xf32> to vector<64x32xf32>
    %c2_305 = arith.constant 2 : index
    %c3_306 = arith.constant 3 : index
    %c0_307 = arith.constant 0 : index
    %c0_308 = arith.constant 0 : index
    %270 = vector.load %arg14[%c2_305, %c3_306, %c0_307, %c0_308] : memref<4x4x32x32xf32, #tpu.memory_space<vmem>>, vector<1x1x32x32xf32>
    %271 = vector.shape_cast %270 : vector<1x1x32x32xf32> to vector<32x32xf32>
    %cst_309 = arith.constant dense<0.000000e+00> : vector<64x32xf32>
    %272 = tpu.matmul %269, %271, %cst_309 {dimension_numbers = #tpu.dot_dimension_numbers<[1], [0], [0], [1], [0, 0, 1, 1], [], []>} : vector<64x32xf32>, vector<32x32xf32>, vector<64x32xf32> -> vector<64x32xf32>
    %273 = arith.addf %267, %272 : vector<64x32xf32>
    %c0_310 = arith.constant 0 : index
    %c0_311 = arith.constant 0 : index
    %274 = vector.load %arg15[%c0_310, %c0_311] : memref<1x32xf32, #tpu.memory_space<vmem>>, vector<1x32xf32>
    %275 = vector.broadcast %274 : vector<1x32xf32> to vector<64x32xf32>
    %276 = arith.addf %273, %275 : vector<64x32xf32>
    %277 = vector.shape_cast %276 : vector<64x32xf32> to vector<8x8x32xf32>
    %c0_312 = arith.constant 0 : index
    %c0_313 = arith.constant 0 : index
    %c1_314 = arith.constant 1 : index
    %c0_315 = arith.constant 0 : index
    %c0_316 = arith.constant 0 : index
    %278 = vector.load %arg16[%c0_312, %c0_313, %c1_314, %c0_315, %c0_316] : memref<1x8x2x8x64xf32, #tpu.memory_space<vmem>>, vector<1x8x1x8x32xf32>
    %279 = vector.shape_cast %278 : vector<1x8x1x8x32xf32> to vector<8x8x32xf32>
    %280 = vector.shape_cast %277 : vector<8x8x32xf32> to vector<1x8x1x8x32xf32>
    tpu.vector_store %arg16[%c0_312, %c0_313, %c1_314, %c0_315, %c0_316], %280 {strides = array<i32>} : memref<1x8x2x8x64xf32, #tpu.memory_space<vmem>>, vector<1x8x1x8x32xf32>,
    %cst_317 = arith.constant 0.000000e+00 : f32
    %281 = vector.broadcast %cst_317 : f32 to vector<64x32xf32>
    %c1_318 = arith.constant 1 : index
    %c1_319 = arith.constant 1 : index
    %c0_320 = arith.constant 0 : index
    %282 = vector.load %arg18[%c1_318, %c1_319, %c0_320] : memref<10x10x32xf32, #tpu.memory_space<vmem>>, vector<8x8x32xf32>
    %283 = vector.shape_cast %282 : vector<8x8x32xf32> to vector<64x32xf32>
    %c3_321 = arith.constant 3 : index
    %c0_322 = arith.constant 0 : index
    %c0_323 = arith.constant 0 : index
    %c0_324 = arith.constant 0 : index
    %284 = vector.load %arg14[%c3_321, %c0_322, %c0_323, %c0_324] : memref<4x4x32x32xf32, #tpu.memory_space<vmem>>, vector<1x1x32x32xf32>
    %285 = vector.shape_cast %284 : vector<1x1x32x32xf32> to vector<32x32xf32>
    %cst_325 = arith.constant dense<0.000000e+00> : vector<64x32xf32>
    %286 = tpu.matmul %283, %285, %cst_325 {dimension_numbers = #tpu.dot_dimension_numbers<[1], [0], [0], [1], [0, 0, 1, 1], [], []>} : vector<64x32xf32>, vector<32x32xf32>, vector<64x32xf32> -> vector<64x32xf32>
    %287 = arith.addf %281, %286 : vector<64x32xf32>
    %c1_326 = arith.constant 1 : index
    %c2_327 = arith.constant 2 : index
    %c0_328 = arith.constant 0 : index
    %288 = vector.load %arg18[%c1_326, %c2_327, %c0_328] : memref<10x10x32xf32, #tpu.memory_space<vmem>>, vector<8x8x32xf32>
    %289 = vector.shape_cast %288 : vector<8x8x32xf32> to vector<64x32xf32>
    %c3_329 = arith.constant 3 : index
    %c1_330 = arith.constant 1 : index
    %c0_331 = arith.constant 0 : index
    %c0_332 = arith.constant 0 : index
    %290 = vector.load %arg14[%c3_329, %c1_330, %c0_331, %c0_332] : memref<4x4x32x32xf32, #tpu.memory_space<vmem>>, vector<1x1x32x32xf32>
    %291 = vector.shape_cast %290 : vector<1x1x32x32xf32> to vector<32x32xf32>
    %cst_333 = arith.constant dense<0.000000e+00> : vector<64x32xf32>
    %292 = tpu.matmul %289, %291, %cst_333 {dimension_numbers = #tpu.dot_dimension_numbers<[1], [0], [0], [1], [0, 0, 1, 1], [], []>} : vector<64x32xf32>, vector<32x32xf32>, vector<64x32xf32> -> vector<64x32xf32>
    %293 = arith.addf %287, %292 : vector<64x32xf32>
    %c2_334 = arith.constant 2 : index
    %c1_335 = arith.constant 1 : index
    %c0_336 = arith.constant 0 : index
    %294 = vector.load %arg18[%c2_334, %c1_335, %c0_336] : memref<10x10x32xf32, #tpu.memory_space<vmem>>, vector<8x8x32xf32>
    %295 = vector.shape_cast %294 : vector<8x8x32xf32> to vector<64x32xf32>
    %c3_337 = arith.constant 3 : index
    %c2_338 = arith.constant 2 : index
    %c0_339 = arith.constant 0 : index
    %c0_340 = arith.constant 0 : index
    %296 = vector.load %arg14[%c3_337, %c2_338, %c0_339, %c0_340] : memref<4x4x32x32xf32, #tpu.memory_space<vmem>>, vector<1x1x32x32xf32>
    %297 = vector.shape_cast %296 : vector<1x1x32x32xf32> to vector<32x32xf32>
    %cst_341 = arith.constant dense<0.000000e+00> : vector<64x32xf32>
    %298 = tpu.matmul %295, %297, %cst_341 {dimension_numbers = #tpu.dot_dimension_numbers<[1], [0], [0], [1], [0, 0, 1, 1], [], []>} : vector<64x32xf32>, vector<32x32xf32>, vector<64x32xf32> -> vector<64x32xf32>
    %299 = arith.addf %293, %298 : vector<64x32xf32>
    %c2_342 = arith.constant 2 : index
    %c2_343 = arith.constant 2 : index
    %c0_344 = arith.constant 0 : index
    %300 = vector.load %arg18[%c2_342, %c2_343, %c0_344] : memref<10x10x32xf32, #tpu.memory_space<vmem>>, vector<8x8x32xf32>
    %301 = vector.shape_cast %300 : vector<8x8x32xf32> to vector<64x32xf32>
    %c3_345 = arith.constant 3 : index
    %c3_346 = arith.constant 3 : index
    %c0_347 = arith.constant 0 : index
    %c0_348 = arith.constant 0 : index
    %302 = vector.load %arg14[%c3_345, %c3_346, %c0_347, %c0_348] : memref<4x4x32x32xf32, #tpu.memory_space<vmem>>, vector<1x1x32x32xf32>
    %303 = vector.shape_cast %302 : vector<1x1x32x32xf32> to vector<32x32xf32>
    %cst_349 = arith.constant dense<0.000000e+00> : vector<64x32xf32>
    %304 = tpu.matmul %301, %303, %cst_349 {dimension_numbers = #tpu.dot_dimension_numbers<[1], [0], [0], [1], [0, 0, 1, 1], [], []>} : vector<64x32xf32>, vector<32x32xf32>, vector<64x32xf32> -> vector<64x32xf32>
    %305 = arith.addf %299, %304 : vector<64x32xf32>
    %c0_350 = arith.constant 0 : index
    %c0_351 = arith.constant 0 : index
    %306 = vector.load %arg15[%c0_350, %c0_351] : memref<1x32xf32, #tpu.memory_space<vmem>>, vector<1x32xf32>
    %307 = vector.broadcast %306 : vector<1x32xf32> to vector<64x32xf32>
    %308 = arith.addf %305, %307 : vector<64x32xf32>
    %309 = vector.shape_cast %308 : vector<64x32xf32> to vector<8x8x32xf32>
    %c0_352 = arith.constant 0 : index
    %c0_353 = arith.constant 0 : index
    %c1_354 = arith.constant 1 : index
    %c0_355 = arith.constant 0 : index
    %c32_356 = arith.constant 32 : index
    %310 = vector.load %arg16[%c0_352, %c0_353, %c1_354, %c0_355, %c32_356] : memref<1x8x2x8x64xf32, #tpu.memory_space<vmem>>, vector<1x8x1x8x32xf32>
    %311 = vector.shape_cast %310 : vector<1x8x1x8x32xf32> to vector<8x8x32xf32>
    %312 = vector.shape_cast %309 : vector<8x8x32xf32> to vector<1x8x1x8x32xf32>
    tpu.vector_store %arg16[%c0_352, %c0_353, %c1_354, %c0_355, %c32_356], %312 {strides = array<i32>} : memref<1x8x2x8x64xf32, #tpu.memory_space<vmem>>, vector<1x8x1x8x32xf32>,
    return
  }
  func.func @transform_0(%arg0: i32) -> (i32, i32, i32, i32) {
    %c0_i32 = arith.constant 0 : i32
    %c0_i32_0 = arith.constant 0 : i32
    %c0_i32_1 = arith.constant 0 : i32
    %c0_i32_2 = arith.constant 0 : i32
    return %arg0, %c0_i32, %c0_i32_0, %c0_i32_1 : i32, i32, i32, i32
  }
  func.func @transform_1(%arg0: i32) -> (i32, i32) {
    %c0_i32 = arith.constant 0 : i32
    %c0_i32_0 = arith.constant 0 : i32
    %c0_i32_1 = arith.constant 0 : i32
    return %c0_i32, %c0_i32_0 : i32, i32
  }
  func.func @transform_2(%arg0: i32) -> (i32, i32) {
    %c0_i32 = arith.constant 0 : i32
    %c0_i32_0 = arith.constant 0 : i32
    %c0_i32_1 = arith.constant 0 : i32
    return %c0_i32, %c0_i32_0 : i32, i32
  }
  func.func @transform_3(%arg0: i32) -> (i32, i32) {
    %c0_i32 = arith.constant 0 : i32
    %c0_i32_0 = arith.constant 0 : i32
    %c0_i32_1 = arith.constant 0 : i32
    return %c0_i32, %c0_i32_0 : i32, i32
  }
  func.func @transform_4(%arg0: i32) -> (i32, i32, i32, i32) {
    %c0_i32 = arith.constant 0 : i32
    %c0_i32_0 = arith.constant 0 : i32
    %c0_i32_1 = arith.constant 0 : i32
    %c0_i32_2 = arith.constant 0 : i32
    %c0_i32_3 = arith.constant 0 : i32
    return %c0_i32, %c0_i32_0, %c0_i32_1, %c0_i32_2 : i32, i32, i32, i32
  }
  func.func @transform_5(%arg0: i32) -> (i32, i32) {
    %c0_i32 = arith.constant 0 : i32
    %c0_i32_0 = arith.constant 0 : i32
    %c0_i32_1 = arith.constant 0 : i32
    return %c0_i32, %c0_i32_0 : i32, i32
  }
  func.func @transform_6(%arg0: i32) -> (i32, i32) {
    %c0_i32 = arith.constant 0 : i32
    %c0_i32_0 = arith.constant 0 : i32
    %c0_i32_1 = arith.constant 0 : i32
    return %c0_i32, %c0_i32_0 : i32, i32
  }
  func.func @transform_7(%arg0: i32) -> (i32, i32) {
    %c0_i32 = arith.constant 0 : i32
    %c0_i32_0 = arith.constant 0 : i32
    %c0_i32_1 = arith.constant 0 : i32
    return %c0_i32, %c0_i32_0 : i32, i32
  }
  func.func @transform_8(%arg0: i32) -> (i32, i32) {
    %c0_i32 = arith.constant 0 : i32
    %c0_i32_0 = arith.constant 0 : i32
    %c0_i32_1 = arith.constant 0 : i32
    return %c0_i32, %c0_i32_0 : i32, i32
  }
  func.func @transform_9(%arg0: i32) -> (i32, i32, i32, i32) {
    %c0_i32 = arith.constant 0 : i32
    %c0_i32_0 = arith.constant 0 : i32
    %c0_i32_1 = arith.constant 0 : i32
    %c0_i32_2 = arith.constant 0 : i32
    %c0_i32_3 = arith.constant 0 : i32
    return %c0_i32, %c0_i32_0, %c0_i32_1, %c0_i32_2 : i32, i32, i32, i32
  }
  func.func @transform_10(%arg0: i32) -> (i32, i32) {
    %c0_i32 = arith.constant 0 : i32
    %c0_i32_0 = arith.constant 0 : i32
    %c0_i32_1 = arith.constant 0 : i32
    return %c0_i32, %c0_i32_0 : i32, i32
  }
  func.func @transform_11(%arg0: i32) -> (i32, i32) {
    %c0_i32 = arith.constant 0 : i32
    %c0_i32_0 = arith.constant 0 : i32
    %c0_i32_1 = arith.constant 0 : i32
    return %c0_i32, %c0_i32_0 : i32, i32
  }
  func.func @transform_12(%arg0: i32) -> (i32, i32) {
    %c0_i32 = arith.constant 0 : i32
    %c0_i32_0 = arith.constant 0 : i32
    %c0_i32_1 = arith.constant 0 : i32
    return %c0_i32, %c0_i32_0 : i32, i32
  }
  func.func @transform_13(%arg0: i32) -> (i32, i32, i32, i32) {
    %c0_i32 = arith.constant 0 : i32
    %c0_i32_0 = arith.constant 0 : i32
    %c0_i32_1 = arith.constant 0 : i32
    %c0_i32_2 = arith.constant 0 : i32
    %c0_i32_3 = arith.constant 0 : i32
    return %c0_i32, %c0_i32_0, %c0_i32_1, %c0_i32_2 : i32, i32, i32, i32
  }
  func.func @transform_14(%arg0: i32) -> (i32, i32) {
    %c0_i32 = arith.constant 0 : i32
    %c0_i32_0 = arith.constant 0 : i32
    %c0_i32_1 = arith.constant 0 : i32
    return %c0_i32, %c0_i32_0 : i32, i32
  }
  func.func @transform_15(%arg0: i32) -> (i32, i32, i32, i32, i32) {
    %c0_i32 = arith.constant 0 : i32
    %c0_i32_0 = arith.constant 0 : i32
    %c0_i32_1 = arith.constant 0 : i32
    %c0_i32_2 = arith.constant 0 : i32
    %c0_i32_3 = arith.constant 0 : i32
    return %arg0, %c0_i32, %c0_i32_0, %c0_i32_1, %c0_i32_2 : i32, i32, i32, i32, i32
  }
}

</mosaic_0001>

<bundles_post_ra>
// kernel: tpu_custom_call.1
= control target key start
LH: loop header
LB: loop body
LE: loop exit
PB: predicated region body
PF: predicated region fallthrough
CT: control target
= control target key end

     0   :  { %s6882_s0 = inlined_call_operand.hbm [shape: f32[2,8,8,16], index: 0, kind: input, shape index: {}]   ;;  %s6883_s1 = inlined_call_operand.hbm [shape: f32[1,16], index: 1, kind: input, shape index: {}]   ;;  %s6884_s2 = inlined_call_operand.vmem [shape: f32[1,16], index: 2, kind: input, shape index: {}]   ;;  %s6885_s3 = inlined_call_operand.hbm [shape: f32[16,16], index: 3, kind: input, shape index: {}]   ;;  %s6886_s4 = inlined_call_operand.hbm [shape: f32[3,3,16,32], index: 4, kind: input, shape index: {}]   ;;  %s6887_s5 = inlined_call_operand.vmem [shape: f32[1,32], index: 5, kind: input, shape index: {}]   ;;  %s6888_s6 = inlined_call_operand.vmem [shape: f32[1,32], index: 6, kind: input, shape index: {}]   ;;  %s6889_s7 = inlined_call_operand.vmem [shape: f32[1,32], index: 7, kind: input, shape index: {}]   ;;  %s6890_s8 = inlined_call_operand.hbm [shape: f32[32,32], index: 8, kind: input, shape index: {}]   ;;  %s6891_s9 = inlined_call_operand.hbm [shape: f32[3,3,32,32], index: 9, kind: input, shape index: {}]   ;;  %s6892_s10 = inlined_call_operand.vmem [shape: f32[1,32], index: 10, kind: input, shape index: {}]   ;;  %s6893_s11 = inlined_call_operand.hbm [shape: f32[16,32], index: 11, kind: input, shape index: {}]   ;;  %s6894_s12 = inlined_call_operand.vmem [shape: f32[1,32], index: 12, kind: input, shape index: {}]   ;;  %s6895_s13 = inlined_call_operand.hbm [shape: f32[4,4,32,32], index: 13, kind: input, shape index: {}]   ;;  %s6896_s14 = inlined_call_operand.vmem [shape: f32[1,32], index: 14, kind: input, shape index: {}]   ;;  %s6897_s15 = inlined_call_operand.hbm [shape: f32[2,8,2,8,64], index: 15, kind: output, shape index: {}]  }
   0x1   :  { %6904 = sst [smem:[#allocation28_spill]] %s6883_s1 }
   0x2   :  { %6905 = sst [smem:[#allocation29_spill]] %s6885_s3 }
   0x3   :  { %6906 = sst [smem:[#allocation30_spill]] %s6886_s4 }
   0x4   :  { %6907 = sst [smem:[#allocation31_spill]] %s6890_s8 }
   0x5   :  { %6908 = sst [smem:[#allocation32_spill]] %s6891_s9 }
   0x6   :  { %6909 = sst [smem:[#allocation33_spill]] %s6893_s11 }
   0x7   :  { %6910 = sst [smem:[#allocation34_spill]] %s6894_s12 }
   0x8   :  { %6911 = sst [smem:[#allocation35_spill]] %s6896_s14 }
   0x9   :  { %6912 = sst [smem:[#allocation36_spill]] %s6897_s15 }
   0xa   :  { %20 = vsyncpa [#allocation5], 0 }
   0xb   :  { %22 = vsyncpa [#allocation5 + $0x1], 0 }
   0xc   :  { %23 = vsyncpa [#allocation8], 0 }
   0xd   :  { %24 = vsyncpa [#allocation11], 0 }
   0xe   :  { %25 = vsyncpa [#allocation14], 0 }
   0xf   :  { %26 = vsyncpa [#allocation17], 0 }
  0x10   :  { %27 = vsyncpa [#allocation6], 0 }
  0x11   :  { %29 = vsyncpa [#allocation6 + $0x1], 0  ;;  %s5322_s18 = smov 0   ;;  %s5324_s19 = smov 0  }
  0x12   :  { %s5326_s20 = smov 0   ;;  %s5328_s21 = smov 0  }
  0x13 LB: > { %s6913_s1 = sld [smem:[#allocation28_spill]]  ;;  %s5346_s25 = sadd.s32 4294967295, %s5227_s21   ;;  %s5227_s21 = sphi %s5328_s21, %s6943_s21   ;;  %s5223_s20 = sphi %s5326_s20, %s6942_s20   ;;  %s5219_s19 = sphi %s5324_s19, %s6941_s19   ;;  %s5215_s18 = sphi %s5322_s18, %s6940_s18  }
  0x14   : > { %p4384_p0 = scmp.ge.s32.totalorder %s5227_s21, 1  ;;  %p56_p1 = scmp.eq.s32.totalorder %s5346_s25, 0 }
  0x15   : > { %p386_p2 = scmp.lt.s32.totalorder %s5227_s21, 3  ;;  %s5229_s27 = smov [#allocation7]  }
  0x16   : > { %s400_s28 = sshll.u32 %s5229_s27, 4  ;;  %s6915_s4 = sld [smem:[#allocation30_spill]]  ;;  %s401_s28 = int_to_ptr.vmem [resolvable:$true] %s400_s28 }
  0x17   : > { %p5351_p3 = pnand %p4384_p0, %p386_p2  ;;  %s6917_s9 = sld [smem:[#allocation32_spill]] }
  0x18   : > { %s6900_s29 = smov 128   ;;  %s6901_s30 = smov 8  }
  0x19   : > { %s398_s24 = sshll.u32 %s6913_s1, 4  ;;  %p4759_p5 = pneg %p5351_p3  ;;  %s399_s24 = int_to_ptr.hbm [resolvable:$true] %s398_s24 }
  0x1a   : > { %s5230_s1 = smov [#allocation10]   ;;  %s6918_s3 = sld [smem:[#allocation29_spill]] }
  0x1b   : > { %p5363_p6 = pnand %p4759_p5, %p56_p1  ;;  %s428_s15 = sshll.u32 %s5230_s1, 4  ;;  %s429_s15 = int_to_ptr.vmem [resolvable:$true] %s428_s15 }
  0x1c   : > { %s426_s16 = sshll.u32 %s6915_s4, 4  ;;  %s5233_s22 = smov [#allocation13]   ;;  %s427_s16 = int_to_ptr.hbm [resolvable:$true] %s426_s16 }
  0x1d   : > { %s463_s27 = sshll.u32 %s6917_s9, 4  ;;  %s465_s23 = sshll.u32 %s5233_s22, 4  ;;  %s464_s27 = int_to_ptr.hbm [resolvable:$true] %s463_s27  ;;  %s466_s23 = int_to_ptr.vmem [resolvable:$true] %s465_s23 }
  0x1e   : > { %4762 = dma.hbm_to_vmem [thread:$0]  (!%p5363_p6), %s399_s24, 16, %s401_s28, [#allocation8]  }
  0x1f   : > { %4768 = dma.hbm_to_vmem [thread:$0]  (!%p5363_p6), %s427_s16, 2304, %s429_s15, [#allocation11], %s6900_s29, %s6900_s29, %s6901_s30  }
  0x20   : > { %s412_s12 = sshll.u32 %s6918_s3, 4  ;;  %s5234_s1 = smov [#allocation9]   ;;  %s413_s12 = int_to_ptr.hbm [resolvable:$true] %s412_s12 }
  0x21   : > { %4774 = dma.hbm_to_vmem [thread:$0]  (!%p5363_p6), %s464_s27, 4608, %s466_s23, [#allocation14], %s6900_s29, %s6900_s29, %s6901_s30  }
  0x22   : > { %s414_s24 = sshll.u32 %s5234_s1, 4  ;;  %s6919_s8 = sld [smem:[#allocation31_spill]]  ;;  %s415_s24 = int_to_ptr.vmem [resolvable:$true] %s414_s24 }
  0x23   : > { %4765 = dma.hbm_to_vmem [thread:$0]  (!%p5363_p6), %s413_s12, 256, %s415_s24, [#allocation8], %s6900_s29, %s6900_s29, %s6901_s30  }
  0x24   : > { %s6920_s11 = sld [smem:[#allocation33_spill]]  ;;  %s5235_s27 = smov [#allocation12]  }
  0x25   : > { %s451_s22 = sshll.u32 %s5235_s27, 4  ;;  %s5236_s9 = smov [#allocation15]   ;;  %s452_s22 = int_to_ptr.vmem [resolvable:$true] %s451_s22 }
  0x26   : > { %s482_s12 = sshll.u32 %s5236_s9, 4  ;;  %s497_s24 = sshll.u32 %s6895_s13, 4  ;;  %s483_s12 = int_to_ptr.vmem [resolvable:$true] %s482_s12  ;;  %s498_s24 = int_to_ptr.hbm [resolvable:$true] %s497_s24 }
  0x27   : > { %s5237_s28 = smov [#allocation16]   ;;  %s4383_s4 = sadd.s32 4294967294, %s5227_s21  }
  0x28   : > { %s449_s15 = sshll.u32 %s6919_s8, 4  ;;  %s5416_s14 = sadd.s32 1, %s5227_s21   ;;  %s450_s15 = int_to_ptr.hbm [resolvable:$true] %s449_s15 }
  0x29   : > { %4771 = dma.hbm_to_vmem [thread:$0]  (!%p5363_p6), %s450_s15, 512, %s452_s22, [#allocation11], %s6900_s29, %s6900_s29, %s6901_s30  }
  0x2a   : > { %s480_s16 = sshll.u32 %s6920_s11, 4  ;;  %s499_s15 = sshll.u32 %s5237_s28, 4  ;;  %s481_s16 = int_to_ptr.hbm [resolvable:$true] %s480_s16  ;;  %s500_s15 = int_to_ptr.vmem [resolvable:$true] %s499_s15 }
  0x2b   : > { %4777 = dma.hbm_to_vmem [thread:$0]  (!%p5363_p6), %s481_s16, 256, %s483_s12, [#allocation14], %s6900_s29, %s6900_s29, %s6901_s30  }
  0x2c   : > { %4780 = dma.hbm_to_vmem [thread:$0]  (!%p5363_p6), %s498_s24, 8192, %s500_s15, [#allocation17], %s6900_s29, %s6900_s29, %s6901_s30  }
  0x2d   : > { %s42_s27 = sadd.s32 1, %s5223_s20  ;;  %s39_s22 = ssub.s32 %s5227_s21, %s5416_s14 }
  0x2e   : > { %p49_p7 = scmp.ne.s32.totalorder %s5223_s20, %s5219_s19  ;;  %p40_p8 = scmp.eq.s32.totalorder %s39_s22, 0 }
  0x2f   : > { %p50_p9 = scmp.eq.s32.totalorder %s5227_s21, 0  ;;  %p55_p10 = scmp.ne.s32.totalorder %s5219_s19, %s5215_s18 }
  0x30   : > { %p373_p11 = scmp.eq.s32.totalorder %s5346_s25, 1  ;;  %p379_p0 = scmp.eq.s32.totalorder %s4383_s4, 1 }
  0x31   : > { %s5428_s16 = scalar_select %p40_p8, %s5223_s20, %s42_s27  }
  0x32   : > { %p5432_p12 = por %p56_p1, %p55_p10  ;;  %p5436_p13 = por %p373_p11, %p49_p7 }
  0x33   : > { %p51_p2 = por %p50_p9, %p49_p7  ;;  %s516_s12 = sand.u32 1, %s5223_s20  }
  0x34   : > { %p5441_p5 = por %p379_p0, %p55_p10  ;;  %p4796_p6 = scmp.lt.s32.totalorder %s5227_s21, 2 }
  0x35   : > { %s4393_s1 = sshll.u32 %s516_s12, 6  ;;  %s4719_s24 = sshll.u32 %s5227_s21, 6 }
  0x36   : > { %s525_s27 = scalar_lea.hbm %s6882_s0, %s4719_s24  ;;  %s520_s29 = scalar_lea.vmem [#allocation4], %s4393_s1 }
  0x37   : > { %s526_s22 = sshll.u32 %s525_s27, 4  ;;  %s528_s30 = sshll.u32 %s520_s29, 4  ;;  %s527_s22 = int_to_ptr.hbm [resolvable:$true] %s526_s22  ;;  %s529_s30 = int_to_ptr.vmem [resolvable:$true] %s528_s30 }
  0x38   : > { %p5450_p8 = pnand %p4796_p6, %p51_p2  ;;  %s517_s3 = scalar_lea.sflag [#allocation5], %s516_s12 }
  0x39   : > { %s5115_s8 = sshra.s32 %s527_s22, 4  ;;  %s5122_s29 = scalar_lea.hbm %s6882_s0, 128  ;;  %s5116_s8 = int_to_ptr.hbm [resolvable:$true] %s5115_s8 }
  0x3a   : > { %s5117_s11 = scalar_lea.hbm %s5116_s8, 64  ;;  %p5119_p9 = pneg %p5450_p8 }
  0x3b   : > { %p5118_p7 = scmp.ne.s32.totalorder %s5116_s8, %s5117_s11  ;;  %p5123_p0 = scmp.lt.s32.totalorder %s5116_s8, %s6882_s0 }
  0x3c   : > { %p5124_p2 = scmp.lt.s32.totalorder %s5122_s29, %s5117_s11 }
  0x3d   : > { %p5120_p10 = pnand %p5119_p9, %p5118_p7 }
  0x3e   : > { %p5125_p6 = por %p5124_p2, %p5123_p0 }
  0x3f   : > { %p5121_p11 = pneg %p5120_p10 }
  0x41   : > { %p5126_p4 = pnand %p5125_p6, %p5121_p11 }
  0x43   : > { %5129 = shalt.err (!%p5126_p4)
}
  0x44   : > { %s6925_s12 = smov 8   ;;  %s6926_s27 = smov 128  }
  0x45   : > { %4784 = dma.hbm_to_vmem [thread:$0]  (!%p5450_p8), %s527_s22, 1024, %s529_s30, %s517_s3, %s6926_s27, %s6926_s27, %s6925_s12  }
  0x46   : > { %540 = sbr.rel (%p5351_p3) target bundleno = 1886 (0x75e), region = 80 }
  0x4b   : > { %s5470_s24 = sand.u32 1, %s5219_s19  }
  0x4c   : > { %s4397_s8 = sshll.u32 %s5470_s24, 6  ;;  %s543_s11 = scalar_lea.sflag [#allocation5], %s5470_s24 }
  0x4d   : > { %s5474_s28 = scalar_lea.vmem [#allocation4], %s4397_s8 }
  0x4e   : > { %5190 = dma.done.wait (%p5432_p12), %s543_s11, 1024  }
  0x4f   : > { %5192 = vsyncadd (%p5432_p12), %s543_s11, 4294966272 }
  0x50   : > { %5194 = dma.done.wait (%p56_p1), [#allocation8], 272  }
  0x51   : > { %5196 = vsyncadd (%p56_p1), [#allocation8], 4294967024 }
  0x52   : > { %5198 = dma.done.wait (%p56_p1), [#allocation11], 2816  }
  0x53   : > { %5200 = vsyncadd (%p56_p1), [#allocation11], 4294964480 }
  0x54   : > { %5202 = dma.done.wait (%p56_p1), [#allocation14], 4864  }
  0x55   : > { %5204 = vsyncadd (%p56_p1), [#allocation14], 4294962432 }
  0x56   : > { %5206 = dma.done.wait (%p56_p1), [#allocation17], 8192  }
  0x57   : > { %5208 = vsyncadd (%p56_p1), [#allocation17], 4294959104  ;;  %vm629_vm0 = vcmask 130048   ;;  %v703_v0 = vld [vmem:[#allocation9 + $0x8] sm:$0xff]  ;;  %v702_v1 = vld [vmem:[#allocation9] sm:$0xff]  ;;  %vm631_vm1 = vcmask 123904  }
  0x58   : > { %v673_v2 = vld [vmem:[%s5474_s28] sm:$0xff]  ;;  %721 = vmatpush.msra.mxu0 %v703_v0  ;;  %v674_v3 = vld [vmem:[%s5474_s28 + $0x8] sm:$0xff]  ;;  %v675_v4 = vld [vmem:[%s5474_s28 + $0x10] sm:$0xff]  ;;  %782 = vmatpush.msra.mxu1 %v703_v0  ;;  %vm651_vm5 = vcmask 261120   ;;  %vm653_vm6 = vcmask 254976   ;;  %s6934_s11 = sld [smem:[#allocation34_spill]] }
  0x59   : > { %v676_v5 = vld [vmem:[%s5474_s28 + $0x18] sm:$0xff]  ;;  %v681_v6 = vsel %vm629_vm0, %v673_v2, 0.0  ;;  %v677_v7 = vld [vmem:[%s5474_s28 + $0x20] sm:$0xff]  ;;  %v682_v8 = vsel %vm629_vm0, %v674_v3, 0.0  ;;  %v684_v9 = vsel %vm629_vm0, %v675_v4, 0.0  ;;  %v678_v10 = vld [vmem:[%s5474_s28 + $0x28] sm:$0xff] }
  0x5a   : > { %722 = vmatpush.msra.mxu0 %v702_v1  ;;  %v683_v11 = vadd.f32 %v682_v8, %v681_v6  ;;  %783 = vmatpush.msra.mxu1 %v702_v1  ;;  %v686_v12 = vsel %vm629_vm0, %v676_v5, 0.0  ;;  %v688_v13 = vsel %vm629_vm0, %v677_v7, 0.0  ;;  %v679_v15 = vld [vmem:[%s5474_s28 + $0x30] sm:$0xff]  ;;  %v690_v17 = vsel %vm629_vm0, %v678_v10, 0.0  ;;  %v680_v18 = vld [vmem:[%s5474_s28 + $0x38] sm:$0xff]  ;;  %v859_v8 = vld [vmem:[#allocation10 + $0x10] sm:$0xff] }
  0x5b   : > { %v692_v20 = vsel %vm629_vm0, %v679_v15, 0.0  ;;  %v694_v22 = vsel %vm629_vm0, %v680_v18, 0.0  ;;  %v6902_v6 = vmov 0.0   ;;  %s6937_s30 = sld [smem:[#allocation35_spill]]  ;;  %s5239_s29 = smov 32  }
  0x5c   : > { %v685_v14 = vadd.f32 %v684_v9, %v683_v11  ;;  %630 = vst.msk [vmem:[#allocation2] sm:$0xff] %vm629_vm0, %v6902_v6  ;;  %s4720_s8 = sshll.u32 %s5346_s25, 7  ;;  %s6938_s3 = sld [smem:[#allocation36_spill]] }
  0x5d   : > { %632 = vst.msk [vmem:[#allocation2 + $0x8] sm:$0x3] %vm631_vm1, %v6902_v6 }
  0x5e   : > { %v687_v16 = vadd.f32 %v686_v12, %v685_v14  ;;  %633 = vst.msk [vmem:[#allocation2 + $0x10] sm:$0xff] %vm629_vm0, %v6902_v6 }
  0x5f   : > { %634 = vst.msk [vmem:[#allocation2 + $0x18] sm:$0x3] %vm631_vm1, %v6902_v6 }
  0x60   : > { %v689_v19 = vadd.f32 %v688_v13, %v687_v16  ;;  %635 = vst.msk [vmem:[#allocation2 + $0x20] sm:$0xff] %vm629_vm0, %v6902_v6  ;;  %v848_v13 = vld [vmem:[#allocation10] sm:$0xff]  ;;  %v1084_v16 = vld [vmem:[#allocation10 + $0x30] sm:$0xff] }
  0x61   : > { %636 = vst.msk [vmem:[#allocation2 + $0x28] sm:$0x3] %vm631_vm1, %v6902_v6 }
  0x62   : > { %v691_v21 = vadd.f32 %v690_v17, %v689_v19  ;;  %637 = vst.msk [vmem:[#allocation2 + $0x30] sm:$0xff] %vm629_vm0, %v6902_v6  ;;  %v1169_v17 = vld [vmem:[#allocation10 + $0x48] sm:$0xff]  ;;  %v1000_v19 = vld [vmem:[#allocation10 + $0x20] sm:$0xff]  ;;  %s4239_s26 = scalar_lea.hbm %s6938_s3, %s4720_s8  ;;  %s5165_s27 = scalar_lea.hbm %s6938_s3, 256 }
  0x63   : > { %638 = vst.msk [vmem:[#allocation2 + $0x38] sm:$0x3] %vm631_vm1, %v6902_v6  ;;  %v840_v14 = vld [vmem:[#allocation2] sm:$0xff]  ;;  %s4242_s4 = sshll.u32 %s4239_s26, 4  ;;  %s4243_s4 = int_to_ptr.hbm [resolvable:$true] %s4242_s4 }
  0x64   : > { %v693_v23 = vadd.f32 %v692_v20, %v691_v21  ;;  %v850_v9 = vld [vmem:[#allocation2 + $0x1] sm:$0xff]  ;;  %639 = vst.msk [vmem:[#allocation2 + $0x40] sm:$0xff] %vm629_vm0, %v6902_v6  ;;  %s5159_s1 = sshra.s32 %s4243_s4, 4  ;;  %s5160_s1 = int_to_ptr.hbm [resolvable:$true] %s5159_s1 }
  0x65   : > { %640 = vst.msk [vmem:[#allocation2 + $0x48] sm:$0x3] %vm631_vm1, %v6902_v6  ;;  %s5161_s15 = scalar_lea.hbm %s5160_s1, 128  ;;  %p5166_p12 = scmp.lt.s32.totalorder %s5160_s1, %s6938_s3 }
  0x66   : > { %v695_v24 = vadd.f32 %v694_v22, %v693_v23  ;;  %641 = vst.msk [vmem:[#allocation2 + $0x50] sm:$0xff] %vm629_vm0, %v6902_v6  ;;  %p5162_p1 = scmp.ne.s32.totalorder %s5160_s1, %s5161_s15  ;;  %p5167_p8 = scmp.lt.s32.totalorder %s5165_s27, %s5161_s15 }
  0x67   : > { %642 = vst.msk [vmem:[#allocation2 + $0x58] sm:$0x3] %vm631_vm1, %v6902_v6 }
  0x68   : > { %v696_v25 = vrot.slane %v695_v24, 4  ;;  %643 = vst.msk [vmem:[#allocation2 + $0x60] sm:$0xff] %vm629_vm0, %v6902_v6  ;;  %p5163_p3 = pnand %p5162_p1, %p5436_p13  ;;  %p5168_p7 = por %p5167_p8, %p5166_p12 }
  0x69   : > { %644 = vst.msk [vmem:[#allocation2 + $0x68] sm:$0x3] %vm631_vm1, %v6902_v6 }
  0x6a   : > { %v697_v26 = vadd.f32 %v696_v25, %v695_v24  ;;  %645 = vst.msk [vmem:[#allocation2 + $0x70] sm:$0xff] %vm629_vm0, %v6902_v6  ;;  %p5164_p4 = pneg %p5163_p3 }
  0x6b   : > { %646 = vst.msk [vmem:[#allocation2 + $0x78] sm:$0x3] %vm631_vm1, %v6902_v6 }
  0x6c   : > { %v698_v27 = vrot.slane %v697_v26, 2  ;;  %647 = vst.msk [vmem:[#allocation2 + $0x80] sm:$0xff] %vm629_vm0, %v6902_v6  ;;  %p5169_p9 = pnand %p5168_p7, %p5164_p4 }
  0x6d   : > { %648 = vst.msk [vmem:[#allocation2 + $0x88] sm:$0x3] %vm631_vm1, %v6902_v6 }
  0x6e   : > { %v699_v28 = vadd.f32 %v698_v27, %v697_v26  ;;  %649 = vst.msk [vmem:[#allocation2 + $0x90] sm:$0xff] %vm629_vm0, %v6902_v6 }
  0x6f   : > { %650 = vst.msk [vmem:[#allocation2 + $0x98] sm:$0x3] %vm631_vm1, %v6902_v6 }
  0x70   : > { %v700_v29 = vrot.slane %v699_v28, 1  ;;  %652 = vst.msk [vmem:[#allocation3] sm:$0xff] %vm651_vm5, %v6902_v6 }
  0x71   : > { %655 = vst.msk [vmem:[#allocation3 + $0x10] sm:$0xff] %vm651_vm5, %v6902_v6 }
  0x72   : > { %v701_v30 = vadd.f32 %v700_v29, %v699_v28  ;;  %v4850_v28 = vld [vmem:[#allocation7] ss:$0 sm:$0xff]  ;;  %657 = vst.msk [vmem:[#allocation3 + $0x20] sm:$0xff] %vm651_vm5, %v6902_v6 }
  0x73   : > { %659 = vst.msk [vmem:[#allocation3 + $0x30] sm:$0xff] %vm651_vm5, %v6902_v6 }
  0x74   : > { %4406 = vmatmul.msk.f32.vlgmr.msra.gmra.mxu0 %vm629_vm0, %v701_v30  ;;  %661 = vst.msk [vmem:[#allocation3 + $0x40] sm:$0xff] %vm651_vm5, %v6902_v6 }
  0x75   : > { %663 = vst.msk [vmem:[#allocation3 + $0x50] sm:$0xff] %vm651_vm5, %v6902_v6 }
  0x76   : > { %665 = vst.msk [vmem:[#allocation3 + $0x60] sm:$0xff] %vm651_vm5, %v6902_v6 }
  0x77   : > { %667 = vst.msk [vmem:[#allocation3 + $0x70] sm:$0xff] %vm651_vm5, %v6902_v6 }
  0x78   : > { %669 = vst.msk [vmem:[#allocation3 + $0x80] sm:$0xff] %vm651_vm5, %v6902_v6 }
  0x79   : > { %671 = vst.msk [vmem:[#allocation3 + $0x90] sm:$0xff] %vm651_vm5, %v6902_v6 }
  0xf1   : > { %v724_v31 = vpop.f32.mrf.mxu0 }
  0xf2   : > { %v727_v32 = vperm.slane %v724_v31, 0 }
  0xf4   : > { %v5513_v33 = vsub.f32 %v673_v2, %v727_v32  ;;  %v5515_v34 = vsub.f32 %v674_v3, %v727_v32  ;;  %v5517_v35 = vsub.f32 %v675_v4, %v727_v32  ;;  %v5519_v36 = vsub.f32 %v676_v5, %v727_v32 }
  0xf5   : > { %v5521_v37 = vsub.f32 %v677_v7, %v727_v32  ;;  %v5529_v41 = vsub.f32 %v678_v10, %v727_v32  ;;  %v5535_v46 = vsub.f32 %v679_v15, %v727_v32  ;;  %v5540_v50 = vsub.f32 %v680_v18, %v727_v32  ;;  %v860_v7 = vld [vmem:[#allocation10 + $0x18] sm:$0xff]  ;;  %v849_v10 = vld [vmem:[#allocation10 + $0x8] sm:$0xff] }
  0xf6   : > { %v736_v38 = vmul.f32 %v5513_v33, %v5513_v33  ;;  %v737_v39 = vmul.f32 %v5515_v34, %v5515_v34  ;;  %v738_v40 = vmul.f32 %v5517_v35, %v5517_v35  ;;  %v739_v42 = vmul.f32 %v5519_v36, %v5519_v36  ;;  %899 = vmatpush.msrb.mxu0 %v860_v7  ;;  %v1085_v15 = vld [vmem:[#allocation10 + $0x38] sm:$0xff]  ;;  %v1001_v18 = vld [vmem:[#allocation10 + $0x28] sm:$0xff] }
  0xf7   : > { %v740_v47 = vmul.f32 %v5521_v37, %v5521_v37  ;;  %v741_v51 = vmul.f32 %v5529_v41, %v5529_v41  ;;  %v742_v54 = vmul.f32 %v5535_v46, %v5535_v46  ;;  %v743_v57 = vmul.f32 %v5540_v50, %v5540_v50  ;;  %4721 = vmatpush.msra.mxu2 %v860_v7 }
  0xf8   : > { %v744_v43 = vsel %vm629_vm0, %v736_v38, 0.0  ;;  %v745_v44 = vsel %vm629_vm0, %v737_v39, 0.0  ;;  %v747_v48 = vsel %vm629_vm0, %v738_v40, 0.0  ;;  %v749_v52 = vsel %vm629_vm0, %v739_v42, 0.0  ;;  %900 = vmatpush.msrb.mxu0 %v859_v8  ;;  %4723 = vmatpush.msra.mxu3 %v849_v10  ;;  %v4851_v38 = vld [vmem:[%s6884_s2] ss:$0 sm:$0xff] }
  0xf9   : > { %v746_v45 = vadd.f32 %v745_v44, %v744_v43  ;;  %v751_v55 = vsel %vm629_vm0, %v740_v47, 0.0  ;;  %v753_v58 = vsel %vm629_vm0, %v741_v51, 0.0  ;;  %v755_v60 = vsel %vm629_vm0, %v742_v54, 0.0  ;;  %4722 = vmatpush.msra.mxu2 %v859_v8  ;;  %4408 = vmatmul.msk.f32.vlgmr.msrb.gmra.mxu0 %vm629_vm0, %v850_v9  ;;  %v1506_v9 = vld [vmem:[#allocation10 + $0x88] sm:$0xff] }
  0xfa   : > { %v757_v62 = vsel %vm629_vm0, %v743_v57, 0.0  ;;  %964 = vmatpush.msra.mxu0 %v849_v10  ;;  %4724 = vmatpush.msra.mxu3 %v848_v13 }
  0xfb   : > { %v748_v49 = vadd.f32 %v747_v48, %v746_v45  ;;  %4725 = vmatpush.msrb.mxu1 %v1085_v15  ;;  %1208 = vmatpush.msrb.mxu2 %v1169_v17 }
  0xfc   : > { %965 = vmatpush.msra.mxu0 %v848_v13 }
  0xfd   : > { %v750_v53 = vadd.f32 %v749_v52, %v748_v49  ;;  %4726 = vmatpush.msrb.mxu1 %v1084_v16 }
  0xfe   : > { %1040 = vmatpush.msrb.mxu0 %v1001_v18  ;;  %v1338_v18 = vld [vmem:[#allocation10 + $0x68] sm:$0xff] }
  0xff   : > { %v752_v56 = vadd.f32 %v751_v55, %v750_v53 }
 0x100   : > { %1041 = vmatpush.msrb.mxu0 %v1000_v19  ;;  %v1337_v19 = vld [vmem:[#allocation10 + $0x60] sm:$0xff] }
 0x101   : > { %v754_v59 = vadd.f32 %v753_v58, %v752_v56  ;;  %4416 = vmatmul.msk.f32.vlgmr.msra.gmra.mxu0 %vm629_vm0, %v840_v14 }
 0x102   : > { %1124 = vmatpush.msra.mxu0 %v1085_v15 }
 0x103   : > { %v756_v61 = vadd.f32 %v755_v60, %v754_v59  ;;  %v991_v59 = vld [vmem:[#allocation2 + $0x2] sm:$0xff] }
 0x104   : > { %1125 = vmatpush.msra.mxu0 %v1084_v16 }
 0x105   : > { %v758_v63 = vadd.f32 %v757_v62, %v756_v61  ;;  %v1253_v62 = vld [vmem:[#allocation10 + $0x58] sm:$0xff] }
 0x106   : > { %1292 = vmatpush.msrb.mxu3 %v1253_v62 }
 0x107   : > { %v759_v0 = vrot.slane %v758_v63, 4 }
 0x109   : > { %v760_v1 = vadd.f32 %v759_v0, %v758_v63  ;;  %v1422_v63 = vld [vmem:[#allocation10 + $0x78] sm:$0xff]  ;;  %v1252_v0 = vld [vmem:[#allocation10 + $0x50] sm:$0xff] }
 0x10a   : > { %1293 = vmatpush.msrb.mxu3 %v1252_v0 }
 0x10b   : > { %v761_v2 = vrot.slane %v760_v1, 2 }
 0x10d   : > { %v762_v3 = vadd.f32 %v761_v2, %v760_v1  ;;  %v1421_v1 = vld [vmem:[#allocation10 + $0x70] sm:$0xff] }
 0x10f   : > { %v763_v4 = vrot.slane %v762_v3, 1 }
 0x111   : > { %v764_v5 = vadd.f32 %v763_v4, %v762_v3 }
 0x113   : > { %4407 = vmatmul.msk.f32.vlgmr.msra.gmra.mxu1 %vm629_vm0, %v764_v5 }
 0x114   : > { %1461 = vmatpush.msra.mxu1 %v1422_v63 }
 0x116   : > { %1462 = vmatpush.msra.mxu1 %v1421_v1 }
 0x190   : > { %v785_v11 = vpop.f32.mrf.mxu1 }
 0x191   : > { %v786_v12 = vadd.f32 1e-06, %v785_v11 }
 0x193   : > { %4861 = vrsqrt.f32 %v786_v12  ;;  %vm794_vm3 = vweird.f32 %v786_v12 }
 0x199   : > { %v4862_v20 = vpop.eup %4861 }
 0x19a   : > { %v789_v21 = vmul.f32 %v4862_v20, %v786_v12  ;;  %vm795_vm2 = vweird.f32 %v4862_v20 }
 0x19b   : > { %vm796_vm4 = vmor %vm794_vm3, %vm795_vm2 }
 0x19c   : > { %v790_v22 = vmul.f32 %v4862_v20, %v789_v21  ;;  %v1505_v21 = vld [vmem:[#allocation10 + $0x80] sm:$0xff] }
 0x19e   : > { %v791_v23 = vmul.f32 0.5, %v790_v22 }
 0x1a0   : > { %v792_v24 = vsub.f32 1.5, %v791_v23 }
 0x1a2   : > { %v793_v25 = vmul.f32 %v4862_v20, %v792_v24 }
 0x1a4   : > { %v797_v26 = vsel %vm796_vm4, %v4862_v20, %v793_v25  ;;  %v5718_v25 = vpop.f32.mrf.mxu0 }
 0x1a5   : > { %v798_v27 = vperm.slane %v797_v26, 0  ;;  %v1419_v26 = vld [vmem:[#allocation2 + $0x91] sm:$0xff] }
 0x1a7   : > { %v799_v29 = vmul.f32 %v798_v27, %v5513_v33  ;;  %v800_v30 = vmul.f32 %v798_v27, %v5515_v34  ;;  %v801_v31 = vmul.f32 %v798_v27, %v5517_v35  ;;  %v802_v32 = vmul.f32 %v798_v27, %v5519_v36 }
 0x1a8   : > { %v803_v39 = vmul.f32 %v798_v27, %v5521_v37  ;;  %v804_v40 = vmul.f32 %v798_v27, %v5529_v41  ;;  %v805_v42 = vmul.f32 %v798_v27, %v5535_v46  ;;  %v806_v43 = vmul.f32 %v798_v27, %v5540_v50  ;;  %v1168_v46 = vld [vmem:[#allocation10 + $0x40] sm:$0xff] }
 0x1a9   : > { %v811_v44 = vmul.f32 %v4850_v28, %v799_v29  ;;  %v812_v33 = vmul.f32 %v4850_v28, %v800_v30  ;;  %v813_v45 = vmul.f32 %v4850_v28, %v801_v31  ;;  %v814_v34 = vmul.f32 %v4850_v28, %v802_v32  ;;  %1209 = vmatpush.msrb.mxu2 %v1168_v46 }
 0x1aa   : > { %v815_v47 = vmul.f32 %v4850_v28, %v803_v39  ;;  %v816_v35 = vmul.f32 %v4850_v28, %v804_v40  ;;  %v817_v48 = vmul.f32 %v4850_v28, %v805_v42  ;;  %v818_v52 = vmul.f32 %v4850_v28, %v806_v43 }
 0x1ab   : > { %v823_v36 = vadd.f32 %v4851_v38, %v811_v44  ;;  %v824_v49 = vadd.f32 %v4851_v38, %v812_v33  ;;  %v825_v51 = vadd.f32 %v4851_v38, %v813_v45  ;;  %v826_v53 = vadd.f32 %v4851_v38, %v814_v34 }
 0x1ac   : > { %v827_v54 = vadd.f32 %v4851_v38, %v815_v47  ;;  %v828_v37 = vadd.f32 %v4851_v38, %v816_v35  ;;  %v829_v41 = vadd.f32 %v4851_v38, %v817_v48  ;;  %v830_v50 = vadd.f32 %v4851_v38, %v818_v52  ;;  %v5724_v27 = vpop.f32.mrf.mxu0  ;;  %v1335_v38 = vld [vmem:[#allocation2 + $0x90] sm:$0xff] }
 0x1ad   : > { %832 = vst.msk [vmem:[#allocation2 + $0x11] sm:$0xff] %vm629_vm0, %v823_v36  ;;  %v1503_v47 = vld [vmem:[#allocation2 + $0x92] sm:$0xff] }
 0x1ae   : > { %833 = vst.msk [vmem:[#allocation2 + $0x21] sm:$0xff] %vm629_vm0, %v824_v49 }
 0x1af   : > { %834 = vst.msk [vmem:[#allocation2 + $0x31] sm:$0xff] %vm629_vm0, %v825_v51 }
 0x1b0   : > { %835 = vst.msk [vmem:[#allocation2 + $0x41] sm:$0xff] %vm629_vm0, %v826_v53 }
 0x1b1   : > { %836 = vst.msk [vmem:[#allocation2 + $0x51] sm:$0xff] %vm629_vm0, %v827_v54 }
 0x1b2   : > { %837 = vst.msk [vmem:[#allocation2 + $0x61] sm:$0xff] %vm629_vm0, %v828_v37 }
 0x1b3   : > { %838 = vst.msk [vmem:[#allocation2 + $0x71] sm:$0xff] %vm629_vm0, %v829_v41 }
 0x1b4   : > { %839 = vst.msk [vmem:[#allocation2 + $0x81] sm:$0xff] %vm629_vm0, %v830_v50  ;;  %v5615_v55 = vld [vmem:[#allocation2 + $0x11] sm:$0xff] }
 0x1b5   : > { %v5617_v56 = vld [vmem:[#allocation2 + $0x10] sm:$0xff]  ;;  %4409 = vmatmul.msk.f32.vlgmr.msra.gmra.mxu2 %vm629_vm0, %v5615_v55  ;;  %v5623_v57 = vld [vmem:[#allocation2 + $0x20] sm:$0xff] }
 0x1b6   : > { %4417 = vmatmul.msk.f32.gmra.mxu0 %vm629_vm0, %v5617_v56  ;;  %4418 = vmatmul.msk.f32.vlgmr.msra.gmra.mxu3 %vm629_vm0, %v5623_v57  ;;  %v5627_v58 = vld [vmem:[#allocation2 + $0x30] sm:$0xff]  ;;  %v5631_v60 = vld [vmem:[#allocation2 + $0x21] sm:$0xff] }
 0x1b7   : > { %4434 = vmatmul.msk.f32.vlgmr.msrb.gmra.mxu1 %vm629_vm0, %v5627_v58  ;;  %v5638_v61 = vld [vmem:[#allocation2 + $0x40] sm:$0xff]  ;;  %v853_v2 = vld [vmem:[#allocation2 + $0x31] sm:$0xff]  ;;  %1545 = vmatpush.msra.mxu2 %v1506_v9 }
 0x1b8   : > { %v992_v3 = vld [vmem:[#allocation2 + $0x12] sm:$0xff]  ;;  %v854_v5 = vld [vmem:[#allocation2 + $0x41] sm:$0xff] }
 0x1b9   : > { %v5646_v4 = vld [vmem:[#allocation2 + $0x50] sm:$0xff]  ;;  %v5650_v7 = vld [vmem:[#allocation2 + $0x22] sm:$0xff]  ;;  %1546 = vmatpush.msra.mxu2 %v1505_v21 }
 0x1ba   : > { %v5657_v8 = vld [vmem:[#allocation2 + $0x60] sm:$0xff]  ;;  %v855_v10 = vld [vmem:[#allocation2 + $0x51] sm:$0xff] }
 0x1bb   : > { %v5661_v11 = vld [vmem:[#allocation2 + $0x32] sm:$0xff]  ;;  %v856_v13 = vld [vmem:[#allocation2 + $0x61] sm:$0xff]  ;;  %v1614_v21 = vld [vmem:[#allocation12 + $0x8] sm:$0xff] }
 0x1bc   : > { %v1081_v12 = vld [vmem:[#allocation2 + $0x70] sm:$0xff]  ;;  %v5669_v14 = vld [vmem:[#allocation2 + $0x42] sm:$0xff] }
 0x1bd   : > { %4410 = vmatmul.msk.f32.gmra.mxu2 %vm629_vm0, %v5631_v60  ;;  %v1082_v15 = vld [vmem:[#allocation2 + $0x80] sm:$0xff]  ;;  %v857_v16 = vld [vmem:[#allocation2 + $0x71] sm:$0xff] }
 0x1be   : > { %4424 = vmatmul.msk.f32.vlgmr.msrb.gmra.mxu0 %vm629_vm0, %v991_v59  ;;  %4419 = vmatmul.msk.f32.gmra.mxu3 %vm629_vm0, %v5627_v58  ;;  %v996_v17 = vld [vmem:[#allocation2 + $0x52] sm:$0xff]  ;;  %v997_v20 = vld [vmem:[#allocation2 + $0x62] sm:$0xff] }
 0x1bf   : > { %4435 = vmatmul.msk.f32.gmra.mxu1 %vm629_vm0, %v5638_v61  ;;  %1377 = vmatpush.msrb.mxu0 %v1338_v18  ;;  %v998_v22 = vld [vmem:[#allocation2 + $0x72] sm:$0xff]  ;;  %v1418_v23 = vld [vmem:[#allocation2 + $0x81] sm:$0xff] }
 0x1c0   : > { %v1250_v24 = vld [vmem:[#allocation2 + $0x82] sm:$0xff] }
 0x1c1   : > { %1378 = vmatpush.msrb.mxu0 %v1337_v19 }
 0x1c5   : > { %4411 = vmatmul.msk.f32.gmra.mxu2 %vm629_vm0, %v853_v2 }
 0x1c6   : > { %4425 = vmatmul.msk.f32.gmra.mxu0 %vm629_vm0, %v992_v3  ;;  %4420 = vmatmul.msk.f32.gmra.mxu3 %vm629_vm0, %v5638_v61 }
 0x1c7   : > { %4436 = vmatmul.msk.f32.gmra.mxu1 %vm629_vm0, %v5646_v4 }
 0x1cd   : > { %4412 = vmatmul.msk.f32.gmra.mxu2 %vm629_vm0, %v854_v5 }
 0x1ce   : > { %4426 = vmatmul.msk.f32.gmra.mxu0 %vm629_vm0, %v5650_v7  ;;  %4421 = vmatmul.msk.f32.gmra.mxu3 %vm629_vm0, %v5646_v4 }
 0x1cf   : > { %4437 = vmatmul.msk.f32.gmra.mxu1 %vm629_vm0, %v5657_v8 }
 0x1d5   : > { %4413 = vmatmul.msk.f32.gmra.mxu2 %vm629_vm0, %v855_v10 }
 0x1d6   : > { %4427 = vmatmul.msk.f32.gmra.mxu0 %vm629_vm0, %v5661_v11  ;;  %4422 = vmatmul.msk.f32.gmra.mxu3 %vm629_vm0, %v5657_v8 }
 0x1d7   : > { %4438 = vmatmul.msk.f32.gmra.mxu1 %vm629_vm0, %v1081_v12 }
 0x1dd   : > { %4414 = vmatmul.msk.f32.gmra.mxu2 %vm629_vm0, %v856_v13 }
 0x1de   : > { %4428 = vmatmul.msk.f32.gmra.mxu0 %vm629_vm0, %v5669_v14  ;;  %4423 = vmatmul.msk.f32.gmra.mxu3 %vm629_vm0, %v1081_v12 }
 0x1df   : > { %4439 = vmatmul.msk.f32.gmra.mxu1 %vm629_vm0, %v1082_v15 }
 0x1e5   : > { %4415 = vmatmul.msk.f32.gmra.mxu2 %vm629_vm0, %v857_v16 }
 0x1e6   : > { %4429 = vmatmul.msk.f32.gmra.mxu0 %vm629_vm0, %v996_v17  ;;  %4448 = vmatmul.msk.f32.vlgmr.msrb.gmra.mxu3 %vm629_vm0, %v992_v3 }
 0x1e7   : > { %4464 = vmatmul.msk.f32.vlgmr.msra.gmra.mxu1 %vm629_vm0, %v5631_v60 }
 0x1ed   : > { %4440 = vmatmul.msk.f32.vlgmr.msrb.gmra.mxu2 %vm629_vm0, %v5615_v55 }
 0x1ee   : > { %4430 = vmatmul.msk.f32.gmra.mxu0 %vm629_vm0, %v997_v20  ;;  %4449 = vmatmul.msk.f32.gmra.mxu3 %vm629_vm0, %v5650_v7 }
 0x1ef   : > { %4465 = vmatmul.msk.f32.gmra.mxu1 %vm629_vm0, %v853_v2 }
 0x1f5   : > { %4441 = vmatmul.msk.f32.gmra.mxu2 %vm629_vm0, %v5631_v60 }
 0x1f6   : > { %4431 = vmatmul.msk.f32.gmra.mxu0 %vm629_vm0, %v998_v22  ;;  %4450 = vmatmul.msk.f32.gmra.mxu3 %vm629_vm0, %v5661_v11 }
 0x1f7   : > { %4466 = vmatmul.msk.f32.gmra.mxu1 %vm629_vm0, %v854_v5 }
 0x1fd   : > { %4442 = vmatmul.msk.f32.gmra.mxu2 %vm629_vm0, %v853_v2 }
 0x1fe   : > { %4432 = vmatmul.msk.f32.vlgmr.msra.gmra.mxu0 %vm629_vm0, %v5617_v56  ;;  %4451 = vmatmul.msk.f32.gmra.mxu3 %vm629_vm0, %v5669_v14 }
 0x1ff   : > { %4467 = vmatmul.msk.f32.gmra.mxu1 %vm629_vm0, %v855_v10 }
 0x205   : > { %4443 = vmatmul.msk.f32.gmra.mxu2 %vm629_vm0, %v854_v5 }
 0x206   : > { %4433 = vmatmul.msk.f32.gmra.mxu0 %vm629_vm0, %v5623_v57  ;;  %4452 = vmatmul.msk.f32.gmra.mxu3 %vm629_vm0, %v996_v17 }
 0x207   : > { %4468 = vmatmul.msk.f32.gmra.mxu1 %vm629_vm0, %v856_v13 }
 0x20d   : > { %4444 = vmatmul.msk.f32.gmra.mxu2 %vm629_vm0, %v855_v10 }
 0x20e   : > { %4456 = vmatmul.msk.f32.vlgmr.msrb.gmra.mxu0 %vm629_vm0, %v5623_v57  ;;  %4453 = vmatmul.msk.f32.gmra.mxu3 %vm629_vm0, %v997_v20 }
 0x20f   : > { %4469 = vmatmul.msk.f32.gmra.mxu1 %vm629_vm0, %v857_v16 }
 0x215   : > { %4445 = vmatmul.msk.f32.gmra.mxu2 %vm629_vm0, %v856_v13 }
 0x216   : > { %4457 = vmatmul.msk.f32.gmra.mxu0 %vm629_vm0, %v5627_v58  ;;  %4454 = vmatmul.msk.f32.gmra.mxu3 %vm629_vm0, %v998_v22 }
 0x217   : > { %4470 = vmatmul.msk.f32.gmra.mxu1 %vm629_vm0, %v1418_v23 }
 0x21d   : > { %4446 = vmatmul.msk.f32.gmra.mxu2 %vm629_vm0, %v857_v16 }
 0x21e   : > { %4458 = vmatmul.msk.f32.gmra.mxu0 %vm629_vm0, %v5638_v61  ;;  %4455 = vmatmul.msk.f32.gmra.mxu3 %vm629_vm0, %v1250_v24 }
 0x21f   : > { %4471 = vmatmul.msk.f32.gmra.mxu1 %vm629_vm0, %v1419_v26 }
 0x225   : > { %4447 = vmatmul.msk.f32.gmra.mxu2 %vm629_vm0, %v1418_v23 }
 0x226   : > { %4459 = vmatmul.msk.f32.gmra.mxu0 %vm629_vm0, %v5646_v4  ;;  %v1616_v4 = vld [vmem:[#allocation12 + $0x18] sm:$0xff] }
 0x227   : > { %1632 = vmatpush.msra.mxu3 %v1616_v4  ;;  %1693 = vmatpush.msra.mxu0 %v1616_v4 }
 0x22d   : > { %4472 = vmatmul.msk.f32.vlgmr.msra.gmra.mxu2 %vm629_vm0, %v5650_v7 }
 0x22e   : > { %4460 = vmatmul.msk.f32.gmra.mxu0 %vm629_vm0, %v5657_v8 }
 0x233   : > { %v5730_v28 = vpop.f32.mrf.mxu0 }
 0x234   : > { %v5767_v35 = vpop.f32.mrf.mxu1 }
 0x235   : > { %4473 = vmatmul.msk.f32.gmra.mxu2 %vm629_vm0, %v5661_v11 }
 0x236   : > { %4461 = vmatmul.msk.f32.gmra.mxu0 %vm629_vm0, %v1081_v12 }
 0x238   : > { %v5735_v29 = vpop.f32.mrf.mxu2 }
 0x239   : > { %v5760_v33 = vpop.f32.mrf.mxu3 }
 0x23b   : > { %v5737_v30 = vpop.f32.mrf.mxu0 }
 0x23c   : > { %v5776_v51 = vpop.f32.mrf.mxu1 }
 0x23d   : > { %4474 = vmatmul.msk.f32.gmra.mxu2 %vm629_vm0, %v5669_v14  ;;  %v1615_v14 = vld [vmem:[#allocation12 + $0x10] sm:$0xff] }
 0x23e   : > { %4462 = vmatmul.msk.f32.gmra.mxu0 %vm629_vm0, %v1082_v15  ;;  %1633 = vmatpush.msra.mxu3 %v1615_v14 }
 0x23f   : > { %1694 = vmatpush.msra.mxu0 %v1615_v14 }
 0x240   : > { %v5742_v31 = vpop.f32.mrf.mxu2  ;;  %1634 = vmatpush.msra.mxu3 %v1614_v21 }
 0x241   : > { %v5770_v48 = vpop.f32.mrf.mxu3  ;;  %1695 = vmatpush.msra.mxu0 %v1614_v21 }
 0x243   : > { %v5744_v32 = vpop.f32.mrf.mxu0 }
 0x244   : > { %v5784_v37 = vpop.f32.mrf.mxu1 }
 0x245   : > { %4475 = vmatmul.msk.f32.gmra.mxu2 %vm629_vm0, %v996_v17 }
 0x246   : > { %4463 = vmatmul.msk.f32.gmra.mxu0 %vm629_vm0, %v1335_v38  ;;  %v971_v38 = vadd.f32 %v5730_v28, %v5735_v29 }
 0x248   : > { %v5748_v39 = vpop.f32.mrf.mxu2  ;;  %v1068_v4 = vadd.f32 %v5744_v32, %v971_v38 }
 0x249   : > { %v5780_v53 = vpop.f32.mrf.mxu3  ;;  %v977_v21 = vadd.f32 %v5770_v48, %v5748_v39 }
 0x24b   : > { %v5750_v40 = vpop.f32.mrf.mxu0 }
 0x24c   : > { %v5794_v56 = vpop.f32.mrf.mxu1 }
 0x24d   : > { %4476 = vmatmul.msk.f32.gmra.mxu2 %vm629_vm0, %v997_v20 }
 0x250   : > { %v5753_v42 = vpop.f32.mrf.mxu2 }
 0x251   : > { %v5788_v46 = vpop.f32.mrf.mxu3  ;;  %v980_v28 = vadd.f32 %v5780_v53, %v5753_v42 }
 0x253   : > { %v5755_v43 = vpop.f32.mrf.mxu0 }
 0x254   : > { %v5800_v60 = vpop.f32.mrf.mxu1 }
 0x255   : > { %4477 = vmatmul.msk.f32.gmra.mxu2 %vm629_vm0, %v998_v22 }
 0x258   : > { %v5758_v44 = vpop.f32.mrf.mxu2 }
 0x259   : > { %v5796_v57 = vpop.f32.mrf.mxu3  ;;  %v983_v29 = vadd.f32 %v5788_v46, %v5758_v44 }
 0x25b   : > { %v5763_v45 = vpop.f32.mrf.mxu0 }
 0x25c   : > { %v5826_v0 = vpop.f32.mrf.mxu1 }
 0x25d   : > { %4478 = vmatmul.msk.f32.gmra.mxu2 %vm629_vm0, %v1250_v24  ;;  %6927 = vst [vmem:[#allocation25_spill] sm:$0xff] %v5826_v0  ;;  %v968_v24 = vadd.f32 %v5724_v27, %v5718_v25  ;;  %v1070_v0 = vadd.f32 %v5755_v43, %v977_v21 }
 0x25f   : > { %v1067_v14 = vadd.f32 %v5737_v30, %v968_v24 }
 0x260   : > { %v5765_v34 = vpop.f32.mrf.mxu2 }
 0x261   : > { %v5808_v61 = vpop.f32.mrf.mxu3 }
 0x263   : > { %v5772_v36 = vpop.f32.mrf.mxu0 }
 0x264   : > { %v5830_v5 = vpop.f32.mrf.mxu1  ;;  %v1072_v42 = vadd.f32 %v5772_v36, %v983_v29 }
 0x265   : > { %4479 = vmatmul.msk.f32.gmra.mxu2 %vm629_vm0, %v1503_v47  ;;  %v974_v47 = vadd.f32 %v5760_v33, %v5742_v31  ;;  %v1071_v31 = vadd.f32 %v5763_v45, %v980_v28  ;;  %v1154_v33 = vadd.f32 %v5776_v51, %v1070_v0 }
 0x267   : > { %v1069_v6 = vadd.f32 %v5750_v40, %v974_v47  ;;  %v986_v40 = vadd.f32 %v5796_v57, %v5765_v34 }
 0x268   : > { %v5774_v49 = vpop.f32.mrf.mxu2 }
 0x269   : > { %v1295_v2 = vpop.f32.mrf.mxu3  ;;  %v1153_v30 = vadd.f32 %v5767_v35, %v1069_v6  ;;  %v1155_v6 = vadd.f32 %v5784_v37, %v1071_v31  ;;  %v989_v37 = vadd.f32 %v5808_v61, %v5774_v49  ;;  %v1613_v61 = vld [vmem:[#allocation12] sm:$0xff] }
 0x26a   : > { %1635 = vmatpush.msra.mxu3 %v1613_v61  ;;  %1696 = vmatpush.msra.mxu0 %v1613_v61 }
 0x26b   : > { %v5782_v54 = vpop.f32.mrf.mxu0 }
 0x26c   : > { %v5836_v11 = vpop.f32.mrf.mxu1  ;;  %v1073_v44 = vadd.f32 %v5782_v54, %v986_v40 }
 0x26e   : > { %v1157_v36 = vadd.f32 %v5800_v60, %v1073_v44 }
 0x270   : > { %v5778_v52 = vpop.f32.mrf.mxu2 }
 0x271   : > { %v1298_v8 = vpop.f32.mrf.mxu3 }
 0x273   : > { %v5790_v50 = vpop.f32.mrf.mxu0 }
 0x274   : > { %v5840_v16 = vpop.f32.mrf.mxu1 }
 0x278   : > { %v5786_v41 = vpop.f32.mrf.mxu2 }
 0x279   : > { %v1301_v12 = vpop.f32.mrf.mxu3 }
 0x27b   : > { %v1127_v58 = vpop.f32.mrf.mxu0 }
 0x27c   : > { %v1473_v20 = vpop.f32.mrf.mxu1  ;;  %v1151_v25 = vadd.f32 %v1127_v58, %v1067_v14 }
 0x27e   : > { %v1235_v43 = vadd.f32 %v5778_v52, %v1151_v25  ;;  %v1156_v52 = vadd.f32 %v5794_v56, %v1072_v42  ;;  %v1074_v56 = vadd.f32 %v5790_v50, %v989_v37 }
 0x280   : > { %v5792_v55 = vpop.f32.mrf.mxu2 }
 0x281   : > { %v1304_v17 = vpop.f32.mrf.mxu3  ;;  %v1237_v53 = vadd.f32 %v5792_v55, %v1153_v30 }
 0x283   : > { %v1130_v62 = vpop.f32.mrf.mxu0  ;;  %v1321_v51 = vadd.f32 %v1301_v12, %v1237_v53 }
 0x284   : > { %v1476_v27 = vpop.f32.mrf.mxu1 }
 0x288   : > { %v5798_v59 = vpop.f32.mrf.mxu2 }
 0x289   : > { %v1307_v23 = vpop.f32.mrf.mxu3  ;;  %v1238_v45 = vadd.f32 %v5798_v59, %v1154_v33 }
 0x28b   : > { %v1380_v3 = vpop.f32.mrf.mxu0  ;;  %v1322_v55 = vadd.f32 %v1304_v17, %v1238_v45 }
 0x290   : > { %v5812_v63 = vpop.f32.mrf.mxu2 }
 0x291   : > { %v1310_v39 = vpop.f32.mrf.mxu3  ;;  %v1239_v34 = vadd.f32 %v5812_v63, %v1155_v6 }
 0x293   : > { %v1383_v9 = vpop.f32.mrf.mxu0  ;;  %v1323_v63 = vadd.f32 %v1307_v23, %v1239_v34 }
 0x298   : > { %v5828_v1 = vpop.f32.mrf.mxu2 }
 0x299   : > { %v1240_v54 = vadd.f32 %v5828_v1, %v1156_v52 }
 0x29b   : > { %v1386_v13 = vpop.f32.mrf.mxu0  ;;  %v1324_v12 = vadd.f32 %v1310_v39, %v1240_v54 }
 0x29c   : > { %v1406_v0 = vadd.f32 %v1386_v13, %v1321_v51 }
 0x29e   : > { %v1490_v1 = vadd.f32 %v5840_v16, %v1406_v0 }
 0x2a0   : > { %v5832_v7 = vpop.f32.mrf.mxu2 }
 0x2a1   : > { %v1241_v59 = vadd.f32 %v5832_v7, %v1157_v36 }
 0x2a3   : > { %v1389_v18 = vpop.f32.mrf.mxu0 }
 0x2a8   : > { %v5834_v10 = vpop.f32.mrf.mxu2 }
 0x2a9   : > { %6928 = vst [vmem:[#allocation26_spill] sm:$0xff] %v5834_v10  ;;  %v1152_v10 = vadd.f32 %v1130_v62, %v1068_v4  ;;  %v1479_v62 = vpop.f32.mrf.mxu1 }
 0x2ab   : > { %v1392_v26 = vpop.f32.mrf.mxu0  ;;  %v1236_v32 = vadd.f32 %v5786_v41, %v1152_v10  ;;  %v1319_v41 = vadd.f32 %v1295_v2, %v1235_v43  ;;  %v1407_v2 = vadd.f32 %v1389_v18, %v1322_v55 }
 0x2ac   : > { %v1408_v60 = vadd.f32 %v1392_v26, %v1323_v63 }
 0x2ad   : > { %v1320_v35 = vadd.f32 %v1298_v8, %v1236_v32  ;;  %v1404_v58 = vadd.f32 %v1380_v3, %v1319_v41  ;;  %v1313_v8 = vpop.f32.mrf.mxu3  ;;  %v1491_v24 = vadd.f32 %v1473_v20, %v1407_v2 }
 0x2ae   : > { %v1325_v13 = vadd.f32 %v1313_v8, %v1241_v59  ;;  %v1492_v47 = vadd.f32 %v1476_v27, %v1408_v60 }
 0x2af   : > { %v1405_v57 = vadd.f32 %v1383_v9, %v1320_v35  ;;  %v1488_v3 = vadd.f32 %v5830_v5, %v1404_v58  ;;  %v6931_v5 = vld [vmem:[#allocation25_spill] sm:$0xff] }
 0x2b0   : > { %v5838_v15 = vpop.f32.mrf.mxu2  ;;  %v1158_v26 = vadd.f32 %v6931_v5, %v1074_v56  ;;  %v6932_v4 = vld [vmem:[#allocation26_spill] sm:$0xff] }
 0x2b1   : > { %v1489_v9 = vadd.f32 %v5836_v11, %v1405_v57  ;;  %v1572_v7 = vadd.f32 %v5838_v15, %v1488_v3  ;;  %v4852_v11 = vld [vmem:[%s6887_s5] ss:$0 sm:$0xff]  ;;  %v1482_v20 = vpop.f32.mrf.mxu1 }
 0x2b2   : > { %v1242_v14 = vadd.f32 %v6932_v4, %v1158_v26 }
 0x2b3   : > { %v1395_v48 = vpop.f32.mrf.mxu0  ;;  %v1584_v21 = vadd.f32 %v4852_v11, %v1572_v7  ;;  %v1775_v7 = vld [vmem:[#allocation13 + $0x28] sm:$0xff] }
 0x2b4   : > { %v1409_v18 = vadd.f32 %v1395_v48, %v1324_v12 }
 0x2b5   : > { %v1316_v29 = vpop.f32.mrf.mxu3  ;;  %v1592_v48 = vsel %vm651_vm5, %v1584_v21, 0.0 }
 0x2b6   : > { %v1493_v28 = vadd.f32 %v1479_v62, %v1409_v18  ;;  %v1326_v40 = vadd.f32 %v1316_v29, %v1242_v14 }
 0x2b8   : > { %v1551_v19 = vpop.f32.mrf.mxu2 }
 0x2b9   : > { %v1573_v17 = vadd.f32 %v1551_v19, %v1489_v9  ;;  %v1485_v41 = vpop.f32.mrf.mxu1 }
 0x2bb   : > { %v1398_v10 = vpop.f32.mrf.mxu0  ;;  %v1585_v19 = vadd.f32 %v4852_v11, %v1573_v17  ;;  %v1777_v17 = vld [vmem:[#allocation13 + $0x38] sm:$0xff] }
 0x2bc   : > { %v1410_v38 = vadd.f32 %v1398_v10, %v1325_v13  ;;  %1814 = vmatpush.msrb.mxu1 %v1777_v17  ;;  %v2091_v17 = vld [vmem:[#allocation13 + $0x90] sm:$0xff] }
 0x2bd   : > { %v1593_v31 = vsel %vm651_vm5, %v1585_v19, 0.0 }
 0x2be   : > { %v1494_v39 = vadd.f32 %v1482_v20, %v1410_v38  ;;  %v1594_v53 = vadd.f32 %v1593_v31, %v1592_v48 }
 0x2c0   : > { %v5842_v22 = vpop.f32.mrf.mxu2 }
 0x2c1   : > { %6929 = vst [vmem:[#allocation27_spill] sm:$0xff] %v5842_v22 }
 0x2c3   : > { %v1401_v43 = vpop.f32.mrf.mxu0 }
 0x2c4   : > { %v1411_v44 = vadd.f32 %v1401_v43, %v1326_v40 }
 0x2c6   : > { %v1495_v52 = vadd.f32 %v1485_v41, %v1411_v44  ;;  %v1763_v41 = vld [vmem:[#allocation13 + $0x10] sm:$0xff] }
 0x2c8   : > { %v1557_v22 = vpop.f32.mrf.mxu2  ;;  %v6930_v50 = vld [vmem:[#allocation27_spill] sm:$0xff] }
 0x2c9   : > { %v1574_v23 = vadd.f32 %v6930_v50, %v1490_v1  ;;  %v1575_v16 = vadd.f32 %v1557_v22, %v1491_v24  ;;  %v1776_v1 = vld [vmem:[#allocation13 + $0x30] sm:$0xff] }
 0x2ca   : > { %1815 = vmatpush.msrb.mxu1 %v1776_v1 }
 0x2cb   : > { %v1586_v15 = vadd.f32 %v4852_v11, %v1574_v23  ;;  %v1587_v30 = vadd.f32 %v4852_v11, %v1575_v16 }
 0x2cc   : > { %1816 = vmatpush.msrb.mxu1 %v1775_v7 }
 0x2cd   : > { %v1595_v22 = vsel %vm651_vm5, %v1586_v15, 0.0  ;;  %v1597_v45 = vsel %vm651_vm5, %v1587_v30, 0.0 }
 0x2ce   : > { %v1596_v35 = vadd.f32 %v1595_v22, %v1594_v53 }
 0x2d0   : > { %v1560_v46 = vpop.f32.mrf.mxu2  ;;  %v1598_v57 = vadd.f32 %v1597_v45, %v1596_v35  ;;  %v1764_v35 = vld [vmem:[#allocation13 + $0x18] sm:$0xff] }
 0x2d1   : > { %v1576_v25 = vadd.f32 %v1560_v46, %v1492_v47  ;;  %1879 = vmatpush.msrb.mxu3 %v1764_v35  ;;  %v2089_v35 = vld [vmem:[#allocation13 + $0x80] sm:$0xff] }
 0x2d3   : > { %v1588_v27 = vadd.f32 %v4852_v11, %v1576_v25  ;;  %1880 = vmatpush.msrb.mxu3 %v1763_v41 }
 0x2d5   : > { %v1599_v46 = vsel %vm651_vm5, %v1588_v27, 0.0 }
 0x2d6   : > { %v1600_v58 = vadd.f32 %v1599_v46, %v1598_v57  ;;  %v1762_v46 = vld [vmem:[#allocation13 + $0x8] sm:$0xff]  ;;  %v2006_v57 = vld [vmem:[#allocation13 + $0x78] sm:$0xff] }
 0x2d7   : > { %1881 = vmatpush.msrb.mxu3 %v1762_v46  ;;  %2043 = vmatpush.msrb.mxu2 %v2006_v57  ;;  %v2351_v57 = vld [vmem:[#allocation13 + $0xf8] sm:$0xff] }
 0x2d8   : > { %v1563_v49 = vpop.f32.mrf.mxu2 }
 0x2d9   : > { %v1577_v32 = vadd.f32 %v1563_v49, %v1493_v28 }
 0x2db   : > { %v1589_v6 = vadd.f32 %v4852_v11, %v1577_v32 }
 0x2dd   : > { %v1601_v51 = vsel %vm651_vm5, %v1589_v6, 0.0 }
 0x2de   : > { %v1602_v54 = vadd.f32 %v1601_v51, %v1600_v58  ;;  %v6933_v51 = vmov 0.0   ;;  %v1920_v58 = vld [vmem:[#allocation13 + $0x58] sm:$0xff] }
 0x2df   : > { %654 = vst.msk [vmem:[#allocation3 + $0x8] sm:$0x3] %vm653_vm6, %v6933_v51  ;;  %1957 = vmatpush.msrb.mxu0 %v1920_v58  ;;  %v2264_v58 = vld [vmem:[#allocation13 + $0xd0] sm:$0xff] }
 0x2e0   : > { %v1566_v33 = vpop.f32.mrf.mxu2  ;;  %656 = vst.msk [vmem:[#allocation3 + $0x18] sm:$0x3] %vm653_vm6, %v6933_v51 }
 0x2e1   : > { %v1578_v42 = vadd.f32 %v1566_v33, %v1494_v39  ;;  %658 = vst.msk [vmem:[#allocation3 + $0x28] sm:$0x3] %vm653_vm6, %v6933_v51 }
 0x2e2   : > { %660 = vst.msk [vmem:[#allocation3 + $0x38] sm:$0x3] %vm653_vm6, %v6933_v51 }
 0x2e3   : > { %v1590_v34 = vadd.f32 %v4852_v11, %v1578_v42  ;;  %662 = vst.msk [vmem:[#allocation3 + $0x48] sm:$0x3] %vm653_vm6, %v6933_v51 }
 0x2e4   : > { %664 = vst.msk [vmem:[#allocation3 + $0x58] sm:$0x3] %vm653_vm6, %v6933_v51 }
 0x2e5   : > { %v1603_v36 = vsel %vm651_vm5, %v1590_v34, 0.0  ;;  %666 = vst.msk [vmem:[#allocation3 + $0x68] sm:$0x3] %vm653_vm6, %v6933_v51 }
 0x2e6   : > { %v1604_v37 = vadd.f32 %v1603_v36, %v1602_v54  ;;  %v1919_v36 = vld [vmem:[#allocation13 + $0x50] sm:$0xff]  ;;  %668 = vst.msk [vmem:[#allocation3 + $0x78] sm:$0x3] %vm653_vm6, %v6933_v51 }
 0x2e7   : > { %1958 = vmatpush.msrb.mxu0 %v1919_v36  ;;  %670 = vst.msk [vmem:[#allocation3 + $0x88] sm:$0x3] %vm653_vm6, %v6933_v51  ;;  %v2175_v36 = vld [vmem:[#allocation13 + $0xa0] sm:$0xff] }
 0x2e8   : > { %v1569_v62 = vpop.f32.mrf.mxu2  ;;  %672 = vst.msk [vmem:[#allocation3 + $0x98] sm:$0x3] %vm653_vm6, %v6933_v51  ;;  %v2176_v51 = vld [vmem:[#allocation13 + $0xa8] sm:$0xff] }
 0x2e9   : > { %v1579_v55 = vadd.f32 %v1569_v62, %v1495_v52  ;;  %v1761_v52 = vld [vmem:[#allocation13] sm:$0xff] }
 0x2ea   : > { %v5942_v62 = vld [vmem:[#allocation3] sm:$0xff]  ;;  %1882 = vmatpush.msrb.mxu3 %v1761_v52 }
 0x2eb   : > { %v1591_v0 = vadd.f32 %v4852_v11, %v1579_v55  ;;  %v1918_v55 = vld [vmem:[#allocation13 + $0x48] sm:$0xff]  ;;  %v2265_v52 = vld [vmem:[#allocation13 + $0xd8] sm:$0xff] }
 0x2ec   : > { %1959 = vmatpush.msrb.mxu0 %v1918_v55  ;;  %v2263_v55 = vld [vmem:[#allocation13 + $0xc8] sm:$0xff] }
 0x2ed   : > { %v1605_v59 = vsel %vm651_vm5, %v1591_v0, 0.0 }
 0x2ee   : > { %v1606_v2 = vadd.f32 %v1605_v59, %v1604_v37  ;;  %v1917_v37 = vld [vmem:[#allocation13 + $0x40] sm:$0xff] }
 0x2ef   : > { %v5958_v59 = vld [vmem:[#allocation3 + $0x1] sm:$0xff]  ;;  %1960 = vmatpush.msrb.mxu0 %v1917_v37 }
 0x2f0   : > { %v1607_v8 = vrot.slane %v1606_v2, 4  ;;  %v2262_v37 = vld [vmem:[#allocation13 + $0xc0] sm:$0xff] }
 0x2f2   : > { %v1608_v63 = vadd.f32 %v1607_v8, %v1606_v2  ;;  %v1908_v2 = vld [vmem:[#allocation3 + $0x2] sm:$0xff]  ;;  %v2092_v8 = vld [vmem:[#allocation13 + $0x98] sm:$0xff] }
 0x2f4   : > { %v1609_v9 = vrot.slane %v1608_v63, 2 }
 0x2f6   : > { %v1610_v56 = vadd.f32 %v1609_v9, %v1608_v63  ;;  %v2005_v63 = vld [vmem:[#allocation13 + $0x70] sm:$0xff]  ;;  %v2004_v9 = vld [vmem:[#allocation13 + $0x68] sm:$0xff] }
 0x2f7   : > { %2044 = vmatpush.msrb.mxu2 %v2005_v63  ;;  %v2350_v63 = vld [vmem:[#allocation13 + $0xf0] sm:$0xff] }
 0x2f8   : > { %v1611_v3 = vrot.slane %v1610_v56, 1 }
 0x2f9   : > { %2045 = vmatpush.msrb.mxu2 %v2004_v9  ;;  %v2349_v9 = vld [vmem:[#allocation13 + $0xe8] sm:$0xff] }
 0x2fa   : > { %v1612_v10 = vadd.f32 %v1611_v3, %v1610_v56  ;;  %v2003_v56 = vld [vmem:[#allocation13 + $0x60] sm:$0xff] }
 0x2fb   : > { %2046 = vmatpush.msrb.mxu2 %v2003_v56  ;;  %v2348_v56 = vld [vmem:[#allocation13 + $0xe0] sm:$0xff] }
 0x2fc   : > { %4480 = vmatmul.msk.f32.vlgmr.msra.gmra.mxu3 %vm651_vm5, %v1612_v10 }
 0x2fd   : > { %2388 = vmatpush.msra.mxu2 %v2351_v57 }
 0x2ff   : > { %2389 = vmatpush.msra.mxu2 %v2350_v63 }
 0x301   : > { %2390 = vmatpush.msra.mxu2 %v2349_v9 }
 0x303   : > { %2391 = vmatpush.msra.mxu2 %v2348_v56 }
 0x304   : > { %4490 = vmatmul.msk.f32.vlgmr.msrb.gmra.mxu3 %vm651_vm5, %v5942_v62 }
 0x37f   : > { %v1637_v60 = vpop.f32.mrf.mxu3 }
 0x380   : > { %v1640_v12 = vperm.slane %v1637_v60, 0 }
 0x382   : > { %v5899_v13 = vsub.f32 %v1584_v21, %v1640_v12  ;;  %v5901_v24 = vsub.f32 %v1585_v19, %v1640_v12  ;;  %v5903_v49 = vsub.f32 %v1586_v15, %v1640_v12  ;;  %v5905_v61 = vsub.f32 %v1587_v30, %v1640_v12 }
 0x383   : > { %v5907_v11 = vsub.f32 %v1588_v27, %v1640_v12  ;;  %v5915_v5 = vsub.f32 %v1589_v6, %v1640_v12  ;;  %v5921_v47 = vsub.f32 %v1590_v34, %v1640_v12  ;;  %v5926_v21 = vsub.f32 %v1591_v0, %v1640_v12  ;;  %v1774_v34 = vld [vmem:[#allocation13 + $0x20] sm:$0xff] }
 0x384   : > { %v1649_v18 = vmul.f32 %v5899_v13, %v5899_v13  ;;  %v1650_v50 = vmul.f32 %v5901_v24, %v5901_v24  ;;  %v1651_v23 = vmul.f32 %v5903_v49, %v5903_v49  ;;  %v1652_v26 = vmul.f32 %v5905_v61, %v5905_v61  ;;  %1817 = vmatpush.msrb.mxu1 %v1774_v34 }
 0x385   : > { %v1653_v20 = vmul.f32 %v5907_v11, %v5907_v11  ;;  %v1654_v15 = vmul.f32 %v5915_v5, %v5915_v5  ;;  %v1655_v29 = vmul.f32 %v5921_v47, %v5921_v47  ;;  %v1656_v32 = vmul.f32 %v5926_v21, %v5926_v21  ;;  %4482 = vmatmul.msk.f32.vlgmr.msrb.gmra.mxu1 %vm651_vm5, %v5958_v59 }
 0x386   : > { %v1657_v19 = vsel %vm651_vm5, %v1649_v18, 0.0  ;;  %v1658_v38 = vsel %vm651_vm5, %v1650_v50, 0.0  ;;  %v1660_v4 = vsel %vm651_vm5, %v1651_v23, 0.0  ;;  %v1662_v25 = vsel %vm651_vm5, %v1652_v26, 0.0  ;;  %2129 = vmatpush.msra.mxu1 %v2092_v8  ;;  %v4853_v23 = vld [vmem:[%s6888_s6] ss:$0 sm:$0xff] }
 0x387   : > { %v1659_v16 = vadd.f32 %v1658_v38, %v1657_v19  ;;  %v1664_v31 = vsel %vm651_vm5, %v1653_v20, 0.0  ;;  %v1666_v39 = vsel %vm651_vm5, %v1654_v15, 0.0  ;;  %v1668_v43 = vsel %vm651_vm5, %v1655_v29, 0.0  ;;  %v2178_v26 = vld [vmem:[#allocation13 + $0xb8] sm:$0xff] }
 0x388   : > { %v1670_v48 = vsel %vm651_vm5, %v1656_v32, 0.0  ;;  %2130 = vmatpush.msra.mxu1 %v2091_v17  ;;  %2215 = vmatpush.msra.mxu3 %v2178_v26  ;;  %v2437_v8 = vld [vmem:[#allocation13 + $0x118] sm:$0xff]  ;;  %v2684_v26 = vld [vmem:[#allocation15 + $0x8] sm:$0xff] }
 0x389   : > { %v1661_v14 = vadd.f32 %v1660_v4, %v1659_v16  ;;  %v4854_v4 = vld [vmem:[%s6889_s7] ss:$0 sm:$0xff] }
 0x38b   : > { %v1663_v28 = vadd.f32 %v1662_v25, %v1661_v14 }
 0x38d   : > { %v1665_v30 = vadd.f32 %v1664_v31, %v1663_v28 }
 0x38f   : > { %v1667_v40 = vadd.f32 %v1666_v39, %v1665_v30 }
 0x391   : > { %v1669_v33 = vadd.f32 %v1668_v43, %v1667_v40 }
 0x393   : > { %v1671_v22 = vadd.f32 %v1670_v48, %v1669_v33 }
 0x395   : > { %v1672_v27 = vrot.slane %v1671_v22, 4 }
 0x397   : > { %v1673_v42 = vadd.f32 %v1672_v27, %v1671_v22 }
 0x399   : > { %v1674_v53 = vrot.slane %v1673_v42, 2 }
 0x39b   : > { %v1675_v44 = vadd.f32 %v1674_v53, %v1673_v42  ;;  %v2177_v53 = vld [vmem:[#allocation13 + $0xb0] sm:$0xff] }
 0x39c   : > { %2216 = vmatpush.msra.mxu3 %v2177_v53 }
 0x39d   : > { %v1676_v45 = vrot.slane %v1675_v44, 1 }
 0x39e   : > { %2217 = vmatpush.msra.mxu3 %v2176_v51  ;;  %v4904_v51 = vld [vmem:[%s5474_s28 + $0x38] sm:$0xff] }
 0x39f   : > { %v1677_v6 = vadd.f32 %v1676_v45, %v1675_v44 }
 0x3a0   : > { %2218 = vmatpush.msra.mxu3 %v2175_v36 }
 0x3a1   : > { %4481 = vmatmul.msk.f32.vlgmr.msra.gmra.mxu0 %vm651_vm5, %v1677_v6 }
 0x3a2   : > { %2302 = vmatpush.msra.mxu0 %v2265_v52  ;;  %2727 = vmatpush.msrb.mxu3 %v2684_v26 }
 0x3a4   : > { %2303 = vmatpush.msra.mxu0 %v2264_v58 }
 0x3a6   : > { %2304 = vmatpush.msra.mxu0 %v2263_v55 }
 0x3a8   : > { %2305 = vmatpush.msra.mxu0 %v2262_v37 }
 0x3a9   : > { %4498 = vmatmul.msk.f32.vlgmr.msrb.gmra.mxu0 %vm651_vm5, %v1908_v2 }
 0x41e   : > { %v1698_v54 = vpop.f32.mrf.mxu0 }
 0x41f   : > { %v1699_v0 = vadd.f32 1e-06, %v1698_v54 }
 0x421   : > { %4863 = vrsqrt.f32 %v1699_v0  ;;  %vm1707_vm8 = vweird.f32 %v1699_v0 }
 0x427   : > { %v4864_v3 = vpop.eup %4863 }
 0x428   : > { %v1702_v10 = vmul.f32 %v4864_v3, %v1699_v0  ;;  %vm1708_vm7 = vweird.f32 %v4864_v3 }
 0x429   : > { %vm1709_vm9 = vmor %vm1707_vm8, %vm1708_vm7 }
 0x42a   : > { %v1703_v60 = vmul.f32 %v4864_v3, %v1702_v10 }
 0x42c   : > { %v1704_v12 = vmul.f32 0.5, %v1703_v60 }
 0x42e   : > { %v1705_v1 = vsub.f32 1.5, %v1704_v12 }
 0x430   : > { %v1706_v7 = vmul.f32 %v4864_v3, %v1705_v1 }
 0x432   : > { %v1710_v18 = vsel %vm1709_vm9, %v4864_v3, %v1706_v7  ;;  %v2436_v7 = vld [vmem:[#allocation13 + $0x110] sm:$0xff] }
 0x433   : > { %v1711_v50 = vperm.slane %v1710_v18, 0 }
 0x435   : > { %v1712_v19 = vmul.f32 %v1711_v50, %v5899_v13  ;;  %v1713_v38 = vmul.f32 %v1711_v50, %v5901_v24  ;;  %v1714_v16 = vmul.f32 %v1711_v50, %v5903_v49  ;;  %v1715_v20 = vmul.f32 %v1711_v50, %v5905_v61 }
 0x436   : > { %v1716_v14 = vmul.f32 %v1711_v50, %v5907_v11  ;;  %v1717_v15 = vmul.f32 %v1711_v50, %v5915_v5  ;;  %v1718_v25 = vmul.f32 %v1711_v50, %v5921_v47  ;;  %v1719_v28 = vmul.f32 %v1711_v50, %v5926_v21  ;;  %v2090_v5 = vld [vmem:[#allocation13 + $0x88] sm:$0xff] }
 0x437   : > { %v1724_v13 = vmul.f32 %v4853_v23, %v1712_v19  ;;  %v1725_v29 = vmul.f32 %v4853_v23, %v1713_v38  ;;  %v1726_v24 = vmul.f32 %v4853_v23, %v1714_v16  ;;  %v1727_v31 = vmul.f32 %v4853_v23, %v1715_v20  ;;  %2131 = vmatpush.msra.mxu1 %v2090_v5  ;;  %v2435_v38 = vld [vmem:[#allocation13 + $0x108] sm:$0xff]  ;;  %v2434_v16 = vld [vmem:[#allocation13 + $0x100] sm:$0xff] }
 0x438   : > { %v1728_v49 = vmul.f32 %v4853_v23, %v1716_v14  ;;  %v1729_v30 = vmul.f32 %v4853_v23, %v1717_v15  ;;  %v1730_v61 = vmul.f32 %v4853_v23, %v1718_v25  ;;  %v1731_v43 = vmul.f32 %v4853_v23, %v1719_v28  ;;  %v2683_v20 = vld [vmem:[#allocation15] sm:$0xff]  ;;  %v6103_v25 = vpop.f32.mrf.mxu1  ;;  %v2346_v28 = vld [vmem:[#allocation3 + $0x91] sm:$0xff] }
 0x439   : > { %v1736_v32 = vadd.f32 %v4854_v4, %v1724_v13  ;;  %v1737_v39 = vadd.f32 %v4854_v4, %v1725_v29  ;;  %v1738_v40 = vadd.f32 %v4854_v4, %v1726_v24  ;;  %v1739_v33 = vadd.f32 %v4854_v4, %v1727_v31  ;;  %2132 = vmatpush.msra.mxu1 %v2089_v35  ;;  %v4897_v13 = vld [vmem:[%s5474_s28] sm:$0xff]  ;;  %v6110_v29 = vpop.f32.mrf.mxu3  ;;  %v4898_v31 = vld [vmem:[%s5474_s28 + $0x8] sm:$0xff]  ;;  %v4903_v35 = vld [vmem:[%s5474_s28 + $0x30] sm:$0xff] }
 0x43a   : > { %v1740_v48 = vadd.f32 %v4854_v4, %v1728_v49  ;;  %v1741_v11 = vadd.f32 %v4854_v4, %v1729_v30  ;;  %v1742_v47 = vadd.f32 %v4854_v4, %v1730_v61  ;;  %v1743_v21 = vadd.f32 %v4854_v4, %v1731_v43  ;;  %2728 = vmatpush.msrb.mxu3 %v2683_v20  ;;  %v2260_v4 = vld [vmem:[#allocation3 + $0x90] sm:$0xff]  ;;  %v6134_v43 = vpop.f32.mrf.mxu0  ;;  %v4901_v5 = vld [vmem:[%s5474_s28 + $0x20] sm:$0xff] }
 0x43b   : > { %1745 = vst.msk [vmem:[#allocation3 + $0x11] sm:$0xff] %vm651_vm5, %v1736_v32  ;;  %2474 = vmatpush.msrb.mxu1 %v2437_v8  ;;  %v4899_v61 = vld [vmem:[%s5474_s28 + $0x10] sm:$0xff] }
 0x43c   : > { %1746 = vst.msk [vmem:[#allocation3 + $0x21] sm:$0xff] %vm651_vm5, %v1737_v39  ;;  %v3023_v8 = vld [vmem:[#allocation16 + $0x78] sm:$0xff] }
 0x43d   : > { %1747 = vst.msk [vmem:[#allocation3 + $0x31] sm:$0xff] %vm651_vm5, %v1738_v40  ;;  %2475 = vmatpush.msrb.mxu1 %v2436_v7  ;;  %v4900_v40 = vld [vmem:[%s5474_s28 + $0x18] sm:$0xff] }
 0x43e   : > { %1748 = vst.msk [vmem:[#allocation3 + $0x41] sm:$0xff] %vm651_vm5, %v1739_v33 }
 0x43f   : > { %1749 = vst.msk [vmem:[#allocation3 + $0x51] sm:$0xff] %vm651_vm5, %v1740_v48  ;;  %2476 = vmatpush.msrb.mxu1 %v2435_v38 }
 0x440   : > { %1750 = vst.msk [vmem:[#allocation3 + $0x61] sm:$0xff] %vm651_vm5, %v1741_v11 }
 0x441   : > { %1751 = vst.msk [vmem:[#allocation3 + $0x71] sm:$0xff] %vm651_vm5, %v1742_v47  ;;  %2477 = vmatpush.msrb.mxu1 %v2434_v16 }
 0x442   : > { %1752 = vst.msk [vmem:[#allocation3 + $0x81] sm:$0xff] %vm651_vm5, %v1743_v21  ;;  %v5991_v22 = vld [vmem:[#allocation3 + $0x11] sm:$0xff] }
 0x443   : > { %v1754_v27 = vld [vmem:[#allocation3 + $0x10] sm:$0xff]  ;;  %4483 = vmatmul.msk.f32.gmra.mxu1 %vm651_vm5, %v5991_v22  ;;  %v6001_v44 = vld [vmem:[#allocation3 + $0x21] sm:$0xff] }
 0x444   : > { %v5993_v42 = vld [vmem:[#allocation3 + $0x12] sm:$0xff]  ;;  %4491 = vmatmul.msk.f32.gmra.mxu3 %vm651_vm5, %v1754_v27  ;;  %4506 = vmatmul.msk.f32.vlgmr.msrb.gmra.mxu2 %vm651_vm5, %v1754_v27  ;;  %v6003_v45 = vld [vmem:[#allocation3 + $0x20] sm:$0xff] }
 0x445   : > { %4499 = vmatmul.msk.f32.gmra.mxu0 %vm651_vm5, %v5993_v42  ;;  %v6009_v6 = vld [vmem:[#allocation3 + $0x22] sm:$0xff]  ;;  %v6015_v41 = vld [vmem:[#allocation3 + $0x31] sm:$0xff] }
 0x446   : > { %v6017_v46 = vld [vmem:[#allocation3 + $0x30] sm:$0xff]  ;;  %v1769_v54 = vld [vmem:[#allocation3 + $0x41] sm:$0xff] }
 0x447   : > { %v6023_v34 = vld [vmem:[#allocation3 + $0x32] sm:$0xff]  ;;  %v1757_v0 = vld [vmem:[#allocation3 + $0x40] sm:$0xff] }
 0x448   : > { %v6031_v2 = vld [vmem:[#allocation3 + $0x42] sm:$0xff]  ;;  %v1770_v3 = vld [vmem:[#allocation3 + $0x51] sm:$0xff] }
 0x449   : > { %v1758_v10 = vld [vmem:[#allocation3 + $0x50] sm:$0xff]  ;;  %v1771_v12 = vld [vmem:[#allocation3 + $0x61] sm:$0xff] }
 0x44a   : > { %v6038_v60 = vld [vmem:[#allocation3 + $0x52] sm:$0xff]  ;;  %v1759_v17 = vld [vmem:[#allocation3 + $0x60] sm:$0xff] }
 0x44b   : > { %4484 = vmatmul.msk.f32.gmra.mxu1 %vm651_vm5, %v6001_v44  ;;  %v6045_v1 = vld [vmem:[#allocation3 + $0x62] sm:$0xff]  ;;  %v1772_v18 = vld [vmem:[#allocation3 + $0x71] sm:$0xff] }
 0x44c   : > { %4492 = vmatmul.msk.f32.gmra.mxu3 %vm651_vm5, %v6003_v45  ;;  %4507 = vmatmul.msk.f32.gmra.mxu2 %vm651_vm5, %v6003_v45  ;;  %v1760_v50 = vld [vmem:[#allocation3 + $0x70] sm:$0xff]  ;;  %v2001_v19 = vld [vmem:[#allocation3 + $0x80] sm:$0xff] }
 0x44d   : > { %4500 = vmatmul.msk.f32.gmra.mxu0 %vm651_vm5, %v6009_v6  ;;  %v6052_v23 = vld [vmem:[#allocation3 + $0x72] sm:$0xff]  ;;  %v2087_v14 = vld [vmem:[#allocation3 + $0x81] sm:$0xff] }
 0x44e   : > { %v2173_v15 = vld [vmem:[#allocation3 + $0x82] sm:$0xff] }
 0x453   : > { %4485 = vmatmul.msk.f32.gmra.mxu1 %vm651_vm5, %v6015_v41 }
 0x454   : > { %4493 = vmatmul.msk.f32.gmra.mxu3 %vm651_vm5, %v6017_v46  ;;  %4508 = vmatmul.msk.f32.gmra.mxu2 %vm651_vm5, %v6017_v46 }
 0x455   : > { %4501 = vmatmul.msk.f32.gmra.mxu0 %vm651_vm5, %v6023_v34 }
 0x45b   : > { %4486 = vmatmul.msk.f32.gmra.mxu1 %vm651_vm5, %v1769_v54 }
 0x45c   : > { %4494 = vmatmul.msk.f32.gmra.mxu3 %vm651_vm5, %v1757_v0  ;;  %4509 = vmatmul.msk.f32.gmra.mxu2 %vm651_vm5, %v1757_v0 }
 0x45d   : > { %4502 = vmatmul.msk.f32.gmra.mxu0 %vm651_vm5, %v6031_v2 }
 0x463   : > { %4487 = vmatmul.msk.f32.gmra.mxu1 %vm651_vm5, %v1770_v3 }
 0x464   : > { %4495 = vmatmul.msk.f32.gmra.mxu3 %vm651_vm5, %v1758_v10  ;;  %4510 = vmatmul.msk.f32.gmra.mxu2 %vm651_vm5, %v1758_v10 }
 0x465   : > { %4503 = vmatmul.msk.f32.gmra.mxu0 %vm651_vm5, %v6038_v60 }
 0x46b   : > { %4488 = vmatmul.msk.f32.gmra.mxu1 %vm651_vm5, %v1771_v12 }
 0x46c   : > { %4496 = vmatmul.msk.f32.gmra.mxu3 %vm651_vm5, %v1759_v17  ;;  %4511 = vmatmul.msk.f32.gmra.mxu2 %vm651_vm5, %v1759_v17 }
 0x46d   : > { %4504 = vmatmul.msk.f32.gmra.mxu0 %vm651_vm5, %v6045_v1 }
 0x473   : > { %4489 = vmatmul.msk.f32.gmra.mxu1 %vm651_vm5, %v1772_v18 }
 0x474   : > { %4497 = vmatmul.msk.f32.gmra.mxu3 %vm651_vm5, %v1760_v50  ;;  %4512 = vmatmul.msk.f32.gmra.mxu2 %vm651_vm5, %v1760_v50 }
 0x475   : > { %4505 = vmatmul.msk.f32.gmra.mxu0 %vm651_vm5, %v6052_v23 }
 0x47b   : > { %4514 = vmatmul.msk.f32.vlgmr.msra.gmra.mxu1 %vm651_vm5, %v5991_v22 }
 0x47c   : > { %4522 = vmatmul.msk.f32.vlgmr.msra.gmra.mxu3 %vm651_vm5, %v5993_v42  ;;  %4513 = vmatmul.msk.f32.gmra.mxu2 %vm651_vm5, %v2001_v19  ;;  %v4902_v42 = vld [vmem:[%s5474_s28 + $0x28] sm:$0xff]  ;;  %s4405_s28 = sshll.u32 %s5470_s24, 7 }
 0x47d   : > { %4530 = vmatmul.msk.f32.vlgmr.msra.gmra.mxu0 %vm651_vm5, %v6003_v45  ;;  %3060 = vmatpush.msra.mxu3 %v3023_v8  ;;  %v2779_v8 = vld [vmem:[#allocation16 + $0x8] sm:$0xff]  ;;  %s6608_s17 = scalar_lea.vmem [#allocation18], %s4405_s28 }
 0x47e   : > { %s4240_s22 = sshll.u32 %s6608_s17, 4  ;;  %s4241_s22 = int_to_ptr.vmem [resolvable:$true] %s4240_s22 }
 0x483   : > { %4515 = vmatmul.msk.f32.gmra.mxu1 %vm651_vm5, %v6001_v44 }
 0x484   : > { %4523 = vmatmul.msk.f32.gmra.mxu3 %vm651_vm5, %v6009_v6  ;;  %4538 = vmatmul.msk.f32.vlgmr.msra.gmra.mxu2 %vm651_vm5, %v6001_v44 }
 0x485   : > { %4531 = vmatmul.msk.f32.gmra.mxu0 %vm651_vm5, %v6017_v46 }
 0x48b   : > { %4516 = vmatmul.msk.f32.gmra.mxu1 %vm651_vm5, %v6015_v41 }
 0x48c   : > { %4524 = vmatmul.msk.f32.gmra.mxu3 %vm651_vm5, %v6023_v34  ;;  %4539 = vmatmul.msk.f32.gmra.mxu2 %vm651_vm5, %v6015_v41 }
 0x48d   : > { %4532 = vmatmul.msk.f32.gmra.mxu0 %vm651_vm5, %v1757_v0 }
 0x493   : > { %4517 = vmatmul.msk.f32.gmra.mxu1 %vm651_vm5, %v1769_v54 }
 0x494   : > { %4525 = vmatmul.msk.f32.gmra.mxu3 %vm651_vm5, %v6031_v2  ;;  %4540 = vmatmul.msk.f32.gmra.mxu2 %vm651_vm5, %v1769_v54 }
 0x495   : > { %4533 = vmatmul.msk.f32.gmra.mxu0 %vm651_vm5, %v1758_v10  ;;  %v2794_v10 = vld [vmem:[#allocation16 + $0x38] sm:$0xff] }
 0x496   : > { %2831 = vmatpush.msrb.mxu0 %v2794_v10 }
 0x49b   : > { %4518 = vmatmul.msk.f32.gmra.mxu1 %vm651_vm5, %v1770_v3 }
 0x49c   : > { %4526 = vmatmul.msk.f32.gmra.mxu3 %vm651_vm5, %v6038_v60  ;;  %4541 = vmatmul.msk.f32.gmra.mxu2 %vm651_vm5, %v1770_v3 }
 0x49d   : > { %4534 = vmatmul.msk.f32.gmra.mxu0 %vm651_vm5, %v1759_v17 }
 0x4a3   : > { %4519 = vmatmul.msk.f32.gmra.mxu1 %vm651_vm5, %v1771_v12 }
 0x4a4   : > { %4527 = vmatmul.msk.f32.gmra.mxu3 %vm651_vm5, %v6045_v1  ;;  %4542 = vmatmul.msk.f32.gmra.mxu2 %vm651_vm5, %v1771_v12 }
 0x4a5   : > { %4535 = vmatmul.msk.f32.gmra.mxu0 %vm651_vm5, %v1760_v50  ;;  %v3022_v50 = vld [vmem:[#allocation16 + $0x70] sm:$0xff] }
 0x4a6   : > { %3061 = vmatpush.msra.mxu3 %v3022_v50  ;;  %v6233_v50 = vld [vmem:[%s6892_s10] ss:$0 sm:$0xff] }
 0x4ab   : > { %4520 = vmatmul.msk.f32.gmra.mxu1 %vm651_vm5, %v1772_v18 }
 0x4ac   : > { %4528 = vmatmul.msk.f32.gmra.mxu3 %vm651_vm5, %v6052_v23  ;;  %4543 = vmatmul.msk.f32.gmra.mxu2 %vm651_vm5, %v1772_v18  ;;  %v2780_v18 = vld [vmem:[#allocation16 + $0x10] sm:$0xff] }
 0x4ad   : > { %4536 = vmatmul.msk.f32.gmra.mxu0 %vm651_vm5, %v2001_v19  ;;  %v2793_v19 = vld [vmem:[#allocation16 + $0x30] sm:$0xff] }
 0x4ae   : > { %2832 = vmatpush.msrb.mxu0 %v2793_v19  ;;  %v2935_v19 = vld [vmem:[#allocation16 + $0x48] sm:$0xff] }
 0x4b3   : > { %4521 = vmatmul.msk.f32.gmra.mxu1 %vm651_vm5, %v2087_v14 }
 0x4b4   : > { %4529 = vmatmul.msk.f32.gmra.mxu3 %vm651_vm5, %v2173_v15  ;;  %4544 = vmatmul.msk.f32.gmra.mxu2 %vm651_vm5, %v2087_v14 }
 0x4b5   : > { %4537 = vmatmul.msk.f32.gmra.mxu0 %vm651_vm5, %v2260_v4 }
 0x4bb   : > { %4546 = vmatmul.msk.f32.vlgmr.msrb.gmra.mxu1 %vm651_vm5, %v6009_v6 }
 0x4bc   : > { %4562 = vmatmul.msk.f32.vlgmr.msrb.gmra.mxu3 %vm629_vm0, %v4897_v13  ;;  %4545 = vmatmul.msk.f32.gmra.mxu2 %vm651_vm5, %v2346_v28  ;;  %v1885_v28 = vadd.f32 %v6110_v29, %v6103_v25  ;;  %v3021_v25 = vld [vmem:[#allocation16 + $0x68] sm:$0xff] }
 0x4bd   : > { %v2792_v29 = vld [vmem:[#allocation16 + $0x28] sm:$0xff]  ;;  %3062 = vmatpush.msra.mxu3 %v3021_v25  ;;  %v2791_v25 = vld [vmem:[#allocation16 + $0x20] sm:$0xff] }
 0x4be   : > { %2833 = vmatpush.msrb.mxu0 %v2792_v29 }
 0x4c0   : > { %v6112_v24 = vpop.f32.mrf.mxu1  ;;  %2834 = vmatpush.msrb.mxu0 %v2791_v25 }
 0x4c1   : > { %4570 = vmatmul.msk.f32.vlgmr.msrb.gmra.mxu0 %vm651_vm5, %v5958_v59  ;;  %v2934_v59 = vld [vmem:[#allocation16 + $0x40] sm:$0xff] }
 0x4c2   : > { %v6148_v21 = vpop.f32.mrf.mxu0 }
 0x4c3   : > { %4547 = vmatmul.msk.f32.gmra.mxu1 %vm651_vm5, %v6023_v34  ;;  %v2432_v34 = vld [vmem:[#allocation3 + $0x92] sm:$0xff] }
 0x4c4   : > { %4563 = vmatmul.msk.f32.gmra.mxu3 %vm629_vm0, %v4898_v31  ;;  %v2936_v31 = vld [vmem:[#allocation16 + $0x50] sm:$0xff] }
 0x4c7   : > { %v6118_v49 = vpop.f32.mrf.mxu3  ;;  %v6136_v33 = vpop.f32.mrf.mxu2 }
 0x4c8   : > { %v6120_v30 = vpop.f32.mrf.mxu1 }
 0x4ca   : > { %v6162_v45 = vpop.f32.mrf.mxu0 }
 0x4cb   : > { %4548 = vmatmul.msk.f32.gmra.mxu1 %vm651_vm5, %v6031_v2  ;;  %v2781_v2 = vld [vmem:[#allocation16 + $0x18] sm:$0xff] }
 0x4cc   : > { %4564 = vmatmul.msk.f32.gmra.mxu3 %vm629_vm0, %v4899_v61  ;;  %2896 = vmatpush.msrb.mxu2 %v2781_v2 }
 0x4ce   : > { %2897 = vmatpush.msrb.mxu2 %v2780_v18 }
 0x4cf   : > { %v6126_v32 = vpop.f32.mrf.mxu3  ;;  %v6150_v22 = vpop.f32.mrf.mxu2 }
 0x4d0   : > { %v6128_v39 = vpop.f32.mrf.mxu1  ;;  %2898 = vmatpush.msrb.mxu2 %v2779_v8  ;;  %v2778_v8 = vld [vmem:[#allocation16] sm:$0xff] }
 0x4d2   : > { %v6173_v57 = vpop.f32.mrf.mxu0  ;;  %2899 = vmatpush.msrb.mxu2 %v2778_v8 }
 0x4d3   : > { %4549 = vmatmul.msk.f32.gmra.mxu1 %vm651_vm5, %v6038_v60  ;;  %v2937_v60 = vld [vmem:[#allocation16 + $0x58] sm:$0xff]  ;;  %4578 = vmatmul.msk.f32.vlgmr.msrb.gmra.mxu2 %vm651_vm5, %v5942_v62 }
 0x4d4   : > { %4565 = vmatmul.msk.f32.gmra.mxu3 %vm629_vm0, %v4900_v40  ;;  %2974 = vmatpush.msra.mxu1 %v2937_v60  ;;  %v1986_v40 = vadd.f32 %v6134_v43, %v1885_v28 }
 0x4d6   : > { %2975 = vmatpush.msra.mxu1 %v2936_v31 }
 0x4d7   : > { %v6138_v48 = vpop.f32.mrf.mxu3  ;;  %v6164_v6 = vpop.f32.mrf.mxu2 }
 0x4d8   : > { %v6140_v11 = vpop.f32.mrf.mxu1  ;;  %2976 = vmatpush.msra.mxu1 %v2935_v19 }
 0x4da   : > { %v6182_v55 = vpop.f32.mrf.mxu0  ;;  %2977 = vmatpush.msra.mxu1 %v2934_v59 }
 0x4db   : > { %4550 = vmatmul.msk.f32.gmra.mxu1 %vm651_vm5, %v6045_v1 }
 0x4dc   : > { %4566 = vmatmul.msk.f32.gmra.mxu3 %vm629_vm0, %v4901_v5  ;;  %v2072_v5 = vadd.f32 %v6136_v33, %v1986_v40 }
 0x4df   : > { %v6146_v47 = vpop.f32.mrf.mxu3  ;;  %v6175_v52 = vpop.f32.mrf.mxu2 }
 0x4e0   : > { %v6152_v27 = vpop.f32.mrf.mxu1 }
 0x4e2   : > { %v6186_v9 = vpop.f32.mrf.mxu0 }
 0x4e3   : > { %4551 = vmatmul.msk.f32.gmra.mxu1 %vm651_vm5, %v6052_v23 }
 0x4e4   : > { %4567 = vmatmul.msk.f32.gmra.mxu3 %vm629_vm0, %v4902_v42  ;;  %v1888_v42 = vadd.f32 %v6118_v49, %v6112_v24  ;;  %v1891_v24 = vadd.f32 %v6126_v32, %v6120_v30 }
 0x4e6   : > { %v1987_v60 = vadd.f32 %v6148_v21, %v1888_v42 }
 0x4e7   : > { %v6158_v53 = vpop.f32.mrf.mxu3  ;;  %v6184_v54 = vpop.f32.mrf.mxu2 }
 0x4e8   : > { %v6160_v44 = vpop.f32.mrf.mxu1  ;;  %v2073_v33 = vadd.f32 %v6150_v22, %v1987_v60  ;;  %v1988_v22 = vadd.f32 %v6162_v45, %v1891_v24  ;;  %v3020_v45 = vld [vmem:[#allocation16 + $0x60] sm:$0xff] }
 0x4e9   : > { %3063 = vmatpush.msra.mxu3 %v3020_v45 }
 0x4ea   : > { %v6196_v1 = vpop.f32.mrf.mxu0  ;;  %v2074_v30 = vadd.f32 %v6164_v6, %v1988_v22 }
 0x4eb   : > { %4552 = vmatmul.msk.f32.gmra.mxu1 %vm651_vm5, %v2173_v15 }
 0x4ec   : > { %4568 = vmatmul.msk.f32.gmra.mxu3 %vm629_vm0, %v4903_v35 }
 0x4ef   : > { %v6169_v41 = vpop.f32.mrf.mxu3  ;;  %v6188_v56 = vpop.f32.mrf.mxu2 }
 0x4f0   : > { %v6171_v46 = vpop.f32.mrf.mxu1 }
 0x4f2   : > { %v6204_v38 = vpop.f32.mrf.mxu0 }
 0x4f3   : > { %4553 = vmatmul.msk.f32.gmra.mxu1 %vm651_vm5, %v2432_v34 }
 0x4f4   : > { %4569 = vmatmul.msk.f32.gmra.mxu3 %vm629_vm0, %v4904_v51 }
 0x4f7   : > { %v6180_v58 = vpop.f32.mrf.mxu3  ;;  %v6198_v7 = vpop.f32.mrf.mxu2 }
 0x4f8   : > { %v2134_v36 = vpop.f32.mrf.mxu1 }
 0x4f9   : > { %v2158_v35 = vadd.f32 %v2134_v36, %v2072_v5  ;;  %v1894_v5 = vadd.f32 %v6138_v48, %v6128_v39 }
 0x4fa   : > { %v2307_v14 = vpop.f32.mrf.mxu0 }
 0x4fb   : > { %v1989_v6 = vadd.f32 %v6173_v57, %v1894_v5  ;;  %v3129_v5 = vld [vmem:[#allocation16 + $0x98] sm:$0xff] }
 0x4fc   : > { %3244 = vmatpush.msra.mxu2 %v3129_v5 }
 0x4ff   : > { %v2220_v0 = vpop.f32.mrf.mxu3  ;;  %v6206_v16 = vpop.f32.mrf.mxu2 }
 0x500   : > { %v2137_v37 = vpop.f32.mrf.mxu1  ;;  %v2244_v10 = vadd.f32 %v2220_v0, %v2158_v35 }
 0x501   : > { %v2159_v49 = vadd.f32 %v2137_v37, %v2073_v33  ;;  %v1897_v33 = vadd.f32 %v6146_v47, %v6140_v11  ;;  %v1900_v11 = vadd.f32 %v6158_v53, %v6152_v27 }
 0x502   : > { %v2310_v34 = vpop.f32.mrf.mxu0  ;;  %v2331_v18 = vadd.f32 %v2307_v14, %v2244_v10 }
 0x507   : > { %v2223_v63 = vpop.f32.mrf.mxu3  ;;  %v2393_v15 = vpop.f32.mrf.mxu2 }
 0x508   : > { %v6190_v3 = vpop.f32.mrf.mxu1  ;;  %v2417_v36 = vadd.f32 %v2393_v15, %v2331_v18  ;;  %v2245_v28 = vadd.f32 %v2223_v63, %v2159_v49 }
 0x509   : > { %v2160_v63 = vadd.f32 %v6190_v3, %v2074_v30 }
 0x50a   : > { %v2313_v31 = vpop.f32.mrf.mxu0  ;;  %v2332_v32 = vadd.f32 %v2310_v34, %v2245_v28 }
 0x50f   : > { %v6192_v12 = vpop.f32.mrf.mxu3  ;;  %v2396_v51 = vpop.f32.mrf.mxu2 }
 0x510   : > { %v6194_v17 = vpop.f32.mrf.mxu1  ;;  %v2418_v42 = vadd.f32 %v2396_v51, %v2332_v32  ;;  %v2246_v29 = vadd.f32 %v6192_v12, %v2160_v63  ;;  %v2075_v12 = vadd.f32 %v6175_v52, %v1989_v6  ;;  %v3371_v63 = vld [vmem:[#allocation16 + $0xf8] sm:$0xff] }
 0x511   : > { %3408 = vmatpush.msrb.mxu3 %v3371_v63 }
 0x512   : > { %v2316_v39 = vpop.f32.mrf.mxu0  ;;  %v2333_v51 = vadd.f32 %v2313_v31, %v2246_v29  ;;  %v2161_v18 = vadd.f32 %v6194_v17, %v2075_v12 }
 0x517   : > { %v6200_v23 = vpop.f32.mrf.mxu3  ;;  %v2399_v21 = vpop.f32.mrf.mxu2 }
 0x518   : > { %v6202_v26 = vpop.f32.mrf.mxu1  ;;  %v2419_v24 = vadd.f32 %v2399_v21, %v2333_v51 }
 0x51a   : > { %v2319_v28 = vpop.f32.mrf.mxu0 }
 0x51f   : > { %v6208_v20 = vpop.f32.mrf.mxu3  ;;  %v2402_v48 = vpop.f32.mrf.mxu2 }
 0x520   : > { %v6210_v4 = vpop.f32.mrf.mxu1 }
 0x527   : > { %v6216_v61 = vpop.f32.mrf.mxu3  ;;  %v2405_v21 = vpop.f32.mrf.mxu2 }
 0x528   : > { %v6214_v13 = vpop.f32.mrf.mxu1 }
 0x52f   : > { %v6225_v43 = vpop.f32.mrf.mxu3 }
 0x530   : > { %v6222_v2 = vpop.f32.mrf.mxu1 }
 0x537   : > { %v6241_v15 = vpop.f32.mrf.mxu3 }
 0x538   : > { %v2479_v0 = vpop.f32.mrf.mxu1 }
 0x539   : > { %v2503_v40 = vadd.f32 %v2479_v0, %v2417_v36  ;;  %v2247_v36 = vadd.f32 %v6200_v23, %v2161_v18  ;;  %v1990_v0 = vadd.f32 %v6182_v55, %v1897_v33 }
 0x53b   : > { %v6237_v14 = vadd.f32 %v6233_v50, %v2503_v40  ;;  %v2076_v47 = vadd.f32 %v6184_v54, %v1990_v0  ;;  %v2334_v31 = vadd.f32 %v2316_v39, %v2247_v36 }
 0x53d   : > { %v4554_v37 = vmul.f32 -1.442695, %v6237_v14  ;;  %v2162_v23 = vadd.f32 %v6202_v26, %v2076_v47  ;;  %v2420_v55 = vadd.f32 %v2402_v48, %v2334_v31  ;;  %v3142_v26 = vld [vmem:[#allocation16 + $0xb8] sm:$0xff] }
 0x53e   : > { %3179 = vmatpush.msra.mxu0 %v3142_v26  ;;  %v3370_v26 = vld [vmem:[#allocation16 + $0xf0] sm:$0xff] }
 0x53f   : > { %4865 = vpow2.f32 %v4554_v37  ;;  %v2730_v57 = vpop.f32.mrf.mxu3  ;;  %v1991_v37 = vadd.f32 %v6186_v9, %v1900_v11  ;;  %v2248_v27 = vadd.f32 %v6208_v20, %v2162_v23  ;;  %v6286_v9 = vld [vmem:[%s6934_s11] ss:$0 sm:$0xff]  ;;  %3409 = vmatpush.msrb.mxu3 %v3370_v26 }
 0x540   : > { %v2482_v35 = vpop.f32.mrf.mxu1  ;;  %v2731_v18 = vadd.f32 %v6286_v9, %v2730_v57 }
 0x541   : > { %v2504_v10 = vadd.f32 %v2482_v35, %v2418_v42  ;;  %v2077_v8 = vadd.f32 %v6188_v56, %v1991_v37  ;;  %v2335_v6 = vadd.f32 %v2319_v28, %v2248_v27 }
 0x543   : > { %v6251_v3 = vadd.f32 %v6233_v50, %v2504_v10  ;;  %v1903_v10 = vadd.f32 %v6169_v41, %v6160_v44  ;;  %v2163_v39 = vadd.f32 %v6210_v4, %v2077_v8  ;;  %v2421_v51 = vadd.f32 %v2405_v21, %v2335_v6  ;;  %v3284_v6 = vld [vmem:[#allocation16 + $0xd0] sm:$0xff] }
 0x545   : > { %v4866_v34 = vpop.eup %4865  ;;  %v4555_v60 = vmul.f32 -1.442695, %v6251_v3  ;;  %v1992_v4 = vadd.f32 %v6196_v1, %v1903_v10  ;;  %v2249_v59 = vadd.f32 %v6216_v61, %v2163_v39  ;;  %v3141_v10 = vld [vmem:[#allocation16 + $0xb0] sm:$0xff] }
 0x546   : > { %v6259_v62 = vadd.f32 1.0, %v4866_v34  ;;  %3180 = vmatpush.msra.mxu0 %v3141_v10 }
 0x547   : > { %4867 = vpow2.f32 %v4555_v60  ;;  %v6279_v54 = vpop.f32.mrf.mxu3  ;;  %v2078_v47 = vadd.f32 %v6198_v7, %v1992_v4 }
 0x548   : > { %4869 = vrcp.f32 %v6259_v62  ;;  %v2485_v49 = vpop.f32.mrf.mxu1  ;;  %v2566_v45 = vand.u32 2147483648, %v6259_v62  ;;  %v2564_v29 = vand.u32 2147483647, %v6259_v62  ;;  %vm2560_vm11 = vweird.f32 %v6259_v62 }
 0x549   : > { %v2505_v52 = vadd.f32 %v2485_v49, %v2419_v24  ;;  %v2322_v24 = vpop.f32.mrf.mxu0  ;;  %v2408_v49 = vpop.f32.mrf.mxu2  ;;  %v2164_v23 = vadd.f32 %v6214_v13, %v2078_v47 }
 0x54a   : > { %v2567_v33 = vor.u32 1.1754944e-38, %v2566_v45  ;;  %vm2565_vm13 = vcmp.eq.f32.partialorder %v2564_v29, 8.507059e+37 }
 0x54b   : > { %v6266_v19 = vadd.f32 %v6233_v50, %v2505_v52  ;;  %v3285_v52 = vld [vmem:[#allocation16 + $0xd8] sm:$0xff] }
 0x54c   : > { %3322 = vmatpush.msrb.mxu1 %v3285_v52 }
 0x54d   : > { %v4868_v17 = vpop.eup %4867  ;;  %v4556_v40 = vmul.f32 -1.442695, %v6266_v19 }
 0x54e   : > { %v4870_v22 = vpop.eup %4869  ;;  %v6273_v30 = vadd.f32 1.0, %v4868_v17  ;;  %3323 = vmatpush.msrb.mxu1 %v3284_v6 }
 0x54f   : > { %4871 = vpow2.f32 %v4556_v40  ;;  %v2556_v32 = vmul.f32 %v4870_v22, %v6259_v62  ;;  %vm2561_vm10 = vweird.f32 %v4870_v22  ;;  %v6308_v31 = vpop.f32.mrf.mxu3  ;;  %v1906_v40 = vadd.f32 %v6180_v58, %v6171_v46 }
 0x550   : > { %4873 = vrcp.f32 %v6273_v30  ;;  %v2488_v53 = vpop.f32.mrf.mxu1  ;;  %vm2562_vm12 = vmor %vm2560_vm11, %vm2561_vm10  ;;  %v2579_v17 = vand.u32 2147483647, %v6273_v30  ;;  %v2581_v28 = vand.u32 2147483648, %v6273_v30  ;;  %vm2575_vm15 = vweird.f32 %v6273_v30 }
 0x551   : > { %v2506_v42 = vadd.f32 %v2488_v53, %v2420_v55  ;;  %v2557_v35 = vsub.f32 1.0, %v2556_v32  ;;  %v2734_v46 = vadd.f32 %v6286_v9, %v6279_v54  ;;  %v1993_v5 = vadd.f32 %v6204_v38, %v1906_v40  ;;  %v2325_v8 = vpop.f32.mrf.mxu0  ;;  %v2411_v45 = vpop.f32.mrf.mxu2 }
 0x552   : > { %v2582_v53 = vor.u32 1.1754944e-38, %v2581_v28  ;;  %vm2580_vm1 = vcmp.eq.f32.partialorder %v2579_v17, 8.507059e+37 }
 0x553   : > { %v6289_v20 = vadd.f32 %v6233_v50, %v2506_v42  ;;  %v2558_v25 = vmul.f32 %v4870_v22, %v2557_v35  ;;  %v3128_v35 = vld [vmem:[#allocation16 + $0x90] sm:$0xff]  ;;  %v2079_v38 = vadd.f32 %v6206_v16, %v1993_v5 }
 0x554   : > { %3245 = vmatpush.msra.mxu2 %v3128_v35 }
 0x555   : > { %v4872_v56 = vpop.eup %4871  ;;  %v4557_v48 = vmul.f32 -1.442695, %v6289_v20  ;;  %v2559_v34 = vadd.f32 %v4870_v22, %v2558_v25 }
 0x556   : > { %v4874_v12 = vpop.eup %4873  ;;  %v6297_v60 = vadd.f32 1.0, %v4872_v56 }
 0x557   : > { %4875 = vpow2.f32 %v4557_v48  ;;  %v2563_v44 = vsel %vm2562_vm12, %v4870_v22, %v2559_v34  ;;  %v2571_v41 = vmul.f32 %v4874_v12, %v6273_v30  ;;  %vm2576_vm14 = vweird.f32 %v4874_v12  ;;  %v2739_v16 = vpop.f32.mrf.mxu3 }
 0x558   : > { %4877 = vrcp.f32 %v6297_v60  ;;  %v2491_v62 = vpop.f32.mrf.mxu1  ;;  %v2568_v36 = vsel %vm2565_vm13, %v2567_v33, %v2563_v44  ;;  %vm2577_vm0 = vmor %vm2575_vm15, %vm2576_vm14  ;;  %v2250_v30 = vadd.f32 %v6225_v43, %v2164_v23  ;;  %v2594_v43 = vand.u32 2147483647, %v6297_v60  ;;  %v3127_v44 = vld [vmem:[#allocation16 + $0x88] sm:$0xff] }
 0x559   : > { %v2507_v0 = vadd.f32 %v2491_v62, %v2421_v51  ;;  %v2675_v11 = vmul.f32 %v2568_v36, %v6237_v14  ;;  %v2572_v57 = vsub.f32 1.0, %v2571_v41  ;;  %v2336_v14 = vadd.f32 %v2322_v24, %v2249_v59  ;;  %v3369_v36 = vld [vmem:[#allocation16 + $0xe8] sm:$0xff]  ;;  %3246 = vmatpush.msra.mxu2 %v3127_v44  ;;  %v2328_v17 = vpop.f32.mrf.mxu0  ;;  %v3368_v44 = vld [vmem:[#allocation16 + $0xe0] sm:$0xff] }
 0x55a   : > { %v2596_v56 = vand.u32 2147483648, %v6297_v60  ;;  %vm2590_vm3 = vweird.f32 %v6297_v60  ;;  %v2737_v62 = vadd.f32 %v6286_v9, %v6308_v31  ;;  %vm2595_vm6 = vcmp.eq.f32.partialorder %v2594_v43, 8.507059e+37  ;;  %3410 = vmatpush.msrb.mxu3 %v3369_v36 }
 0x55b   : > { %v6311_v1 = vadd.f32 %v6233_v50, %v2507_v0  ;;  %v2754_v61 = vadd.f32 %v2731_v18, %v2675_v11  ;;  %v2573_v21 = vmul.f32 %v4874_v12, %v2572_v57  ;;  %v2422_v37 = vadd.f32 %v2408_v49, %v2336_v14  ;;  %v2414_v14 = vpop.f32.mrf.mxu2 }
 0x55c   : > { %v2165_v18 = vadd.f32 %v6222_v2, %v2079_v38  ;;  %v2597_v2 = vor.u32 1.1754944e-38, %v2596_v56  ;;  %3411 = vmatpush.msrb.mxu3 %v3368_v44 }
 0x55d   : > { %v4876_v22 = vpop.eup %4875  ;;  %v4558_v7 = vmul.f32 -1.442695, %v6311_v1  ;;  %2762 = vst.msk [vmem:[#allocation3 + $0x11] sm:$0xff] %vm651_vm5, %v2754_v61  ;;  %v2574_v55 = vadd.f32 %v4874_v12, %v2573_v21 }
 0x55e   : > { %v6319_v32 = vpop.eup %4877  ;;  %v6321_v27 = vadd.f32 1.0, %v4876_v22  ;;  %v2251_v11 = vadd.f32 %v6241_v15, %v2165_v18 }
 0x55f   : > { %4879 = vpow2.f32 %v4558_v7  ;;  %v2578_v58 = vsel %vm2577_vm0, %v4874_v12, %v2574_v55  ;;  %v2586_v13 = vmul.f32 %v6319_v32, %v6297_v60  ;;  %vm2591_vm2 = vweird.f32 %v6319_v32  ;;  %v3140_v60 = vld [vmem:[#allocation16 + $0xa8] sm:$0xff] }
 0x560   : > { %4881 = vrcp.f32 %v6321_v27  ;;  %v2494_v63 = vpop.f32.mrf.mxu1  ;;  %v2583_v42 = vsel %vm2580_vm1, %v2582_v53, %v2578_v58  ;;  %vm2592_vm4 = vmor %vm2590_vm3, %vm2591_vm2  ;;  %3181 = vmatpush.msra.mxu0 %v3140_v60  ;;  %v2609_v21 = vand.u32 2147483647, %v6321_v27  ;;  %v2611_v40 = vand.u32 2147483648, %v6321_v27 }
 0x561   : > { %v2508_v25 = vadd.f32 %v2494_v63, %v2422_v37  ;;  %v2676_v54 = vmul.f32 %v2583_v42, %v6251_v3  ;;  %v2587_v29 = vsub.f32 1.0, %v2586_v13  ;;  %v2337_v3 = vadd.f32 %v2325_v8, %v2250_v30  ;;  %v2742_v42 = vpop.f32.mrf.mxu3 }
 0x562   : > { %v2338_v7 = vadd.f32 %v2328_v17, %v2251_v11  ;;  %vm2605_vm8 = vweird.f32 %v6321_v27  ;;  %v2612_v30 = vor.u32 1.1754944e-38, %v2611_v40  ;;  %v2740_v63 = vadd.f32 %v6286_v9, %v2739_v16  ;;  %v3126_v16 = vld [vmem:[#allocation16 + $0x80] sm:$0xff] }
 0x563   : > { %v6335_v39 = vadd.f32 %v6233_v50, %v2508_v25  ;;  %v2755_v48 = vadd.f32 %v2734_v46, %v2676_v54  ;;  %v2588_v34 = vmul.f32 %v6319_v32, %v2587_v29  ;;  %v2423_v4 = vadd.f32 %v2411_v45, %v2337_v3  ;;  %v3283_v46 = vld [vmem:[#allocation16 + $0xc8] sm:$0xff]  ;;  %3247 = vmatpush.msra.mxu2 %v3126_v16 }
 0x564   : > { %v6339_v12 = vld [vmem:[#allocation3 + $0x11] sm:$0xff]  ;;  %v2424_v13 = vadd.f32 %v2414_v14, %v2338_v7  ;;  %vm2610_vm10 = vcmp.eq.f32.partialorder %v2609_v21, 8.507059e+37  ;;  %3324 = vmatpush.msrb.mxu1 %v3283_v46 }
 0x565   : > { %v6341_v51 = vld [vmem:[#allocation3 + $0x10] sm:$0xff]  ;;  %v4880_v33 = vpop.eup %4879  ;;  %v4559_v24 = vmul.f32 -1.442695, %v6335_v39  ;;  %2763 = vst.msk [vmem:[#allocation3 + $0x21] sm:$0xff] %vm651_vm5, %v2755_v48  ;;  %4571 = vmatmul.msk.f32.gmra.mxu0 %vm651_vm5, %v6339_v12  ;;  %v2589_v49 = vadd.f32 %v6319_v32, %v2588_v34  ;;  %4594 = vmatmul.msk.f32.vlgmr.msra.gmra.mxu3 %vm651_vm5, %v6339_v12 }
 0x566   : > { %4579 = vmatmul.msk.f32.gmra.mxu2 %vm651_vm5, %v6341_v51  ;;  %v4882_v41 = vpop.eup %4881  ;;  %v6352_v59 = vadd.f32 1.0, %v4880_v33  ;;  %4586 = vmatmul.msk.f32.vlgmr.msra.gmra.mxu1 %vm651_vm5, %v6341_v51  ;;  %v3510_v14 = vld [vmem:[#allocation16 + $0x118] sm:$0xff] }
 0x567   : > { %4883 = vpow2.f32 %v4559_v24  ;;  %v2593_v52 = vsel %vm2592_vm4, %v6319_v32, %v2589_v49  ;;  %v2601_v0 = vmul.f32 %v4882_v41, %v6321_v27  ;;  %vm2606_vm7 = vweird.f32 %v4882_v41  ;;  %3625 = vmatpush.msrb.mxu2 %v3510_v14  ;;  %v3507_v14 = vld [vmem:[#allocation16 + $0x100] sm:$0xff] }
 0x568   : > { %4885 = vrcp.f32 %v6352_v59  ;;  %v2497_v57 = vpop.f32.mrf.mxu1  ;;  %v2598_v47 = vsel %vm2595_vm6, %v2597_v2, %v2593_v52  ;;  %vm2607_vm9 = vmor %vm2605_vm8, %vm2606_vm7  ;;  %v2626_v29 = vand.u32 2147483648, %v6352_v59  ;;  %v2624_v43 = vand.u32 2147483647, %v6352_v59 }
 0x569   : > { %v2509_v28 = vadd.f32 %v2497_v57, %v2423_v4  ;;  %v2677_v31 = vmul.f32 %v2598_v47, %v6266_v19  ;;  %v2602_v61 = vsub.f32 1.0, %v2601_v0  ;;  %vm2620_vm12 = vweird.f32 %v6352_v59  ;;  %v3282_v4 = vld [vmem:[#allocation16 + $0xc0] sm:$0xff]  ;;  %v2745_v36 = vpop.f32.mrf.mxu3 }
 0x56a   : > { %v2627_v24 = vor.u32 1.1754944e-38, %v2626_v29  ;;  %v2743_v49 = vadd.f32 %v6286_v9, %v2742_v42  ;;  %vm2625_vm14 = vcmp.eq.f32.partialorder %v2624_v43, 8.507059e+37  ;;  %3325 = vmatpush.msrb.mxu1 %v3282_v4 }
 0x56b   : > { %v6370_v22 = vadd.f32 %v6233_v50, %v2509_v28  ;;  %v2756_v23 = vadd.f32 %v2737_v62, %v2677_v31  ;;  %v2603_v15 = vmul.f32 %v4882_v41, %v2602_v61 }
 0x56c   : > { %v6372_v55 = vld [vmem:[#allocation3 + $0x21] sm:$0xff] }
 0x56d   : > { %v6374_v32 = vld [vmem:[#allocation3 + $0x20] sm:$0xff]  ;;  %v4884_v37 = vpop.eup %4883  ;;  %v4560_v19 = vmul.f32 -1.442695, %v6370_v22  ;;  %2764 = vst.msk [vmem:[#allocation3 + $0x31] sm:$0xff] %vm651_vm5, %v2756_v23  ;;  %4572 = vmatmul.msk.f32.gmra.mxu0 %vm651_vm5, %v6372_v55  ;;  %v2604_v53 = vadd.f32 %v4882_v41, %v2603_v15  ;;  %4595 = vmatmul.msk.f32.gmra.mxu3 %vm651_vm5, %v6372_v55  ;;  %v2746_v15 = vadd.f32 %v6286_v9, %v2745_v36 }
 0x56e   : > { %4580 = vmatmul.msk.f32.gmra.mxu2 %vm651_vm5, %v6374_v32  ;;  %v4886_v58 = vpop.eup %4885  ;;  %v6383_v5 = vadd.f32 1.0, %v4884_v37  ;;  %4587 = vmatmul.msk.f32.gmra.mxu1 %vm651_vm5, %v6374_v32 }
 0x56f   : > { %4887 = vpow2.f32 %v4560_v19  ;;  %v2608_v35 = vsel %vm2607_vm9, %v4882_v41, %v2604_v53  ;;  %v2616_v27 = vmul.f32 %v4886_v58, %v6352_v59  ;;  %vm2621_vm11 = vweird.f32 %v4886_v58  ;;  %v3139_v41 = vld [vmem:[#allocation16 + $0xa0] sm:$0xff] }
 0x570   : > { %4889 = vrcp.f32 %v6383_v5  ;;  %v2500_v26 = vpop.f32.mrf.mxu1  ;;  %v2613_v8 = vsel %vm2610_vm10, %v2612_v30, %v2608_v35  ;;  %vm6411_vm13 = vmor %vm2620_vm12, %vm2621_vm11  ;;  %3182 = vmatpush.msra.mxu0 %v3139_v41  ;;  %v2641_v0 = vand.u32 2147483648, %v6383_v5  ;;  %v2639_v47 = vand.u32 2147483647, %v6383_v5 }
 0x571   : > { %v2510_v45 = vadd.f32 %v2500_v26, %v2424_v13  ;;  %v2678_v25 = vmul.f32 %v2613_v8, %v6289_v20  ;;  %v2617_v54 = vsub.f32 1.0, %v2616_v27  ;;  %vm2635_vm0 = vweird.f32 %v6383_v5  ;;  %v3752_v26 = vld [vmem:[#allocation16 + $0x178] sm:$0xff] }
 0x572   : > { %v2642_v40 = vor.u32 1.1754944e-38, %v2641_v0  ;;  %vm2640_vm2 = vcmp.eq.f32.partialorder %v2639_v47, 8.507059e+37  ;;  %v3523_v8 = vld [vmem:[#allocation16 + $0x138] sm:$0xff]  ;;  %3789 = vmatpush.msra.mxu3 %v3752_v26  ;;  %v3117_v0 = vld [vmem:[#allocation3 + $0x1] sm:$0xff]  ;;  %vm3489_vm12 = vcmask 523520  }
 0x573   : > { %v6396_v10 = vadd.f32 %v6233_v50, %v2510_v45  ;;  %v2757_v6 = vadd.f32 %v2740_v63, %v2678_v25  ;;  %v2618_v38 = vmul.f32 %v4886_v58, %v2617_v54  ;;  %v3666_v45 = vld [vmem:[#allocation16 + $0x158] sm:$0xff]  ;;  %3560 = vmatpush.msrb.mxu0 %v3523_v8  ;;  %v3508_v47 = vld [vmem:[#allocation16 + $0x108] sm:$0xff]  ;;  %v3871_v26 = vld [vmem:[#allocation16 + $0x1b0] sm:$0xff]  ;;  %v2836_v8 = vpop.f32.mrf.mxu0 }
 0x574   : > { %v6399_v56 = vld [vmem:[#allocation3 + $0x31] sm:$0xff]  ;;  %3703 = vmatpush.msra.mxu1 %v3666_v45 }
 0x575   : > { %v6401_v48 = vld [vmem:[#allocation3 + $0x30] sm:$0xff]  ;;  %v4888_v34 = vpop.eup %4887  ;;  %v4561_v20 = vmul.f32 -1.442695, %v6396_v10  ;;  %2765 = vst.msk [vmem:[#allocation3 + $0x41] sm:$0xff] %vm651_vm5, %v2757_v6  ;;  %4573 = vmatmul.msk.f32.gmra.mxu0 %vm651_vm5, %v6399_v56  ;;  %v2619_v50 = vadd.f32 %v4886_v58, %v2618_v38  ;;  %4596 = vmatmul.msk.f32.gmra.mxu3 %vm651_vm5, %v6399_v56 }
 0x576   : > { %4581 = vmatmul.msk.f32.gmra.mxu2 %vm651_vm5, %v6401_v48  ;;  %v4890_v33 = vpop.eup %4889  ;;  %v6415_v18 = vadd.f32 1.0, %v4888_v34  ;;  %4588 = vmatmul.msk.f32.gmra.mxu1 %vm651_vm5, %v6401_v48 }
 0x577   : > { %4891 = vpow2.f32 %v4561_v20  ;;  %v2623_v59 = vsel %vm6411_vm13, %v4886_v58, %v2619_v50  ;;  %v2631_v2 = vmul.f32 %v4890_v33, %v6383_v5  ;;  %vm2636_vm15 = vweird.f32 %v4890_v33  ;;  %v2748_v58 = vpop.f32.mrf.mxu3 }
 0x578   : > { %4893 = vrcp.f32 %v6415_v18  ;;  %v2628_v62 = vsel %vm2625_vm14, %v2627_v24, %v2623_v59  ;;  %vm2637_vm1 = vmor %vm2635_vm0, %vm2636_vm15  ;;  %v2656_v46 = vand.u32 2147483648, %v6415_v18  ;;  %v2654_v30 = vand.u32 2147483647, %v6415_v18 }
 0x579   : > { %v2679_v60 = vmul.f32 %v2628_v62, %v6311_v1  ;;  %v2632_v52 = vsub.f32 1.0, %v2631_v2  ;;  %vm2650_vm4 = vweird.f32 %v6415_v18  ;;  %v2749_v54 = vadd.f32 %v6286_v9, %v2748_v58  ;;  %v4101_v58 = vld [vmem:[#allocation16 + $0x1f8] sm:$0xff] }
 0x57a   : > { %v2657_v27 = vor.u32 1.1754944e-38, %v2656_v46  ;;  %vm2655_vm7 = vcmp.eq.f32.partialorder %v2654_v30, 8.507059e+37  ;;  %v4015_v30 = vld [vmem:[#allocation16 + $0x1d8] sm:$0xff] }
 0x57b   : > { %v2758_v11 = vadd.f32 %v2743_v49, %v2679_v60  ;;  %v2633_v57 = vmul.f32 %v4890_v33, %v2632_v52  ;;  %v3509_v49 = vld [vmem:[#allocation16 + $0x110] sm:$0xff] }
 0x57c   : > { %v6429_v17 = vld [vmem:[#allocation3 + $0x41] sm:$0xff]  ;;  %3626 = vmatpush.msrb.mxu2 %v3509_v49 }
 0x57d   : > { %v6431_v28 = vld [vmem:[#allocation3 + $0x40] sm:$0xff]  ;;  %v4892_v31 = vpop.eup %4891  ;;  %2766 = vst.msk [vmem:[#allocation3 + $0x51] sm:$0xff] %vm651_vm5, %v2758_v11  ;;  %4574 = vmatmul.msk.f32.gmra.mxu0 %vm651_vm5, %v6429_v17  ;;  %v2634_v1 = vadd.f32 %v4890_v33, %v2633_v57  ;;  %4597 = vmatmul.msk.f32.gmra.mxu3 %vm651_vm5, %v6429_v17 }
 0x57e   : > { %4582 = vmatmul.msk.f32.gmra.mxu2 %vm651_vm5, %v6431_v28  ;;  %v4894_v61 = vpop.eup %4893  ;;  %v6439_v21 = vadd.f32 1.0, %v4892_v31  ;;  %4589 = vmatmul.msk.f32.gmra.mxu1 %vm651_vm5, %v6431_v28  ;;  %v3665_v60 = vld [vmem:[#allocation16 + $0x150] sm:$0xff]  ;;  %v6509_v31 = vld [vmem:[#allocation3 + $0x12] sm:$0xff] }
 0x57f   : > { %v2638_v23 = vsel %vm2637_vm1, %v4890_v33, %v2634_v1  ;;  %v2646_v7 = vmul.f32 %v4894_v61, %v6415_v18  ;;  %vm2651_vm3 = vweird.f32 %v4894_v61  ;;  %v2751_v18 = vpop.f32.mrf.mxu3  ;;  %3704 = vmatpush.msra.mxu1 %v3665_v60  ;;  %v3130_v52 = vld [vmem:[#allocation3 + $0x2] sm:$0xff]  ;;  %3627 = vmatpush.msrb.mxu2 %v3508_v47  ;;  %v3750_v1 = vld [vmem:[#allocation16 + $0x168] sm:$0xff]  ;;  %v4098_v47 = vld [vmem:[#allocation16 + $0x1e0] sm:$0xff] }
 0x580   : > { %4895 = vrcp.f32 %v6439_v21  ;;  %v2643_v37 = vsel %vm2640_vm2, %v2642_v40, %v2638_v23  ;;  %vm2652_vm6 = vmor %vm2650_vm4, %vm2651_vm3  ;;  %v2671_v34 = vand.u32 2147483648, %v6439_v21  ;;  %v2669_v3 = vand.u32 2147483647, %v6439_v21  ;;  %v6519_v40 = vld [vmem:[#allocation3 + $0x22] sm:$0xff]  ;;  %v6529_v23 = vld [vmem:[#allocation3 + $0x32] sm:$0xff] }
 0x581   : > { %v2680_v19 = vmul.f32 %v2643_v37, %v6335_v39  ;;  %v2647_v53 = vsub.f32 1.0, %v2646_v7  ;;  %vm2665_vm9 = vweird.f32 %v6439_v21  ;;  %v2752_v41 = vadd.f32 %v6286_v9, %v2751_v18  ;;  %v3751_v9 = vld [vmem:[#allocation16 + $0x170] sm:$0xff]  ;;  %3628 = vmatpush.msrb.mxu2 %v3507_v14  ;;  %v3520_v7 = vld [vmem:[#allocation16 + $0x120] sm:$0xff] }
 0x582   : > { %v2672_v24 = vor.u32 1.1754944e-38, %v2671_v34  ;;  %vm2670_vm11 = vcmp.eq.f32.partialorder %v2669_v3, 8.507059e+37  ;;  %3790 = vmatpush.msra.mxu3 %v3751_v9  ;;  %v3663_v37 = vld [vmem:[#allocation16 + $0x140] sm:$0xff]  ;;  %v3870_v34 = vld [vmem:[#allocation16 + $0x1a8] sm:$0xff] }
 0x583   : > { %v2759_v13 = vadd.f32 %v2746_v15, %v2680_v19  ;;  %v2648_v5 = vmul.f32 %v4894_v61, %v2647_v53  ;;  %v3749_v15 = vld [vmem:[#allocation16 + $0x160] sm:$0xff]  ;;  %v6539_v19 = vld [vmem:[#allocation3 + $0x42] sm:$0xff]  ;;  %v3859_v53 = vld [vmem:[#allocation16 + $0x198] sm:$0xff] }
 0x584   : > { %v6451_v63 = vld [vmem:[#allocation3 + $0x51] sm:$0xff]  ;;  %3791 = vmatpush.msra.mxu3 %v3750_v1  ;;  %v6601_v3 = vld [vmem:[%s6937_s30] ss:$0 sm:$0xff] }
 0x585   : > { %v6453_v42 = vld [vmem:[#allocation3 + $0x50] sm:$0xff]  ;;  %2767 = vst.msk [vmem:[#allocation3 + $0x61] sm:$0xff] %vm651_vm5, %v2759_v13  ;;  %4575 = vmatmul.msk.f32.gmra.mxu0 %vm651_vm5, %v6451_v63  ;;  %v2649_v39 = vadd.f32 %v4894_v61, %v2648_v5  ;;  %4598 = vmatmul.msk.f32.gmra.mxu3 %vm651_vm5, %v6451_v63 }
 0x586   : > { %4583 = vmatmul.msk.f32.gmra.mxu2 %vm651_vm5, %v6453_v42  ;;  %v4896_v35 = vpop.eup %4895  ;;  %4590 = vmatmul.msk.f32.gmra.mxu1 %vm651_vm5, %v6453_v42  ;;  %v6549_v46 = vld [vmem:[#allocation3 + $0x52] sm:$0xff]  ;;  %v3872_v13 = vld [vmem:[#allocation16 + $0x1b8] sm:$0xff] }
 0x587   : > { %v2653_v25 = vsel %vm2652_vm6, %v4894_v61, %v2649_v39  ;;  %v2661_v29 = vmul.f32 %v4896_v35, %v6439_v21  ;;  %vm2666_vm8 = vweird.f32 %v4896_v35  ;;  %v3521_v61 = vld [vmem:[#allocation16 + $0x128] sm:$0xff]  ;;  %3792 = vmatpush.msra.mxu3 %v3749_v15  ;;  %v3869_v1 = vld [vmem:[#allocation16 + $0x1a0] sm:$0xff] }
 0x588   : > { %v2658_v6 = vsel %vm2655_vm7, %v2657_v27, %v2653_v25  ;;  %vm2667_vm10 = vmor %vm2665_vm9, %vm2666_vm8  ;;  %v3664_v21 = vld [vmem:[#allocation16 + $0x148] sm:$0xff]  ;;  %v4100_v27 = vld [vmem:[#allocation16 + $0x1f0] sm:$0xff]  ;;  %v2901_v25 = vpop.f32.mrf.mxu2 }
 0x589   : > { %v2681_v38 = vmul.f32 %v2658_v6, %v6370_v22  ;;  %v2662_v43 = vsub.f32 1.0, %v2661_v29  ;;  %3705 = vmatpush.msra.mxu1 %v3664_v21 }
 0x58b   : > { %v2760_v20 = vadd.f32 %v2749_v54, %v2681_v38  ;;  %v2663_v50 = vmul.f32 %v4896_v35, %v2662_v43  ;;  %3706 = vmatpush.msra.mxu1 %v3663_v37  ;;  %v4014_v54 = vld [vmem:[#allocation16 + $0x1d0] sm:$0xff]  ;;  %v2902_v38 = vadd.f32 %v2901_v25, %v2836_v8  ;;  %v4099_v43 = vld [vmem:[#allocation16 + $0x1e8] sm:$0xff] }
 0x58c   : > { %v6470_v16 = vld [vmem:[#allocation3 + $0x61] sm:$0xff] }
 0x58d   : > { %v6472_v33 = vld [vmem:[#allocation3 + $0x60] sm:$0xff]  ;;  %2768 = vst.msk [vmem:[#allocation3 + $0x71] sm:$0xff] %vm651_vm5, %v2760_v20  ;;  %4576 = vmatmul.msk.f32.gmra.mxu0 %vm651_vm5, %v6470_v16  ;;  %v2664_v22 = vadd.f32 %v4896_v35, %v2663_v50  ;;  %4599 = vmatmul.msk.f32.gmra.mxu3 %vm651_vm5, %v6470_v16 }
 0x58e   : > { %4584 = vmatmul.msk.f32.gmra.mxu2 %vm651_vm5, %v6472_v33  ;;  %4591 = vmatmul.msk.f32.gmra.mxu1 %vm651_vm5, %v6472_v33  ;;  %v6559_v5 = vld [vmem:[#allocation3 + $0x62] sm:$0xff] }
 0x58f   : > { %v2668_v44 = vsel %vm2667_vm10, %v4896_v35, %v2664_v22  ;;  %v3858_v35 = vld [vmem:[#allocation16 + $0x190] sm:$0xff] }
 0x590   : > { %v2673_v4 = vsel %vm2670_vm11, %v2672_v24, %v2668_v44 }
 0x591   : > { %v2682_v59 = vmul.f32 %v2673_v4, %v6396_v10  ;;  %v3522_v10 = vld [vmem:[#allocation16 + $0x130] sm:$0xff] }
 0x592   : > { %3561 = vmatpush.msrb.mxu0 %v3522_v10 }
 0x593   : > { %v2761_v2 = vadd.f32 %v2752_v41, %v2682_v59  ;;  %v4013_v41 = vld [vmem:[#allocation16 + $0x1c8] sm:$0xff] }
 0x594   : > { %v6486_v62 = vld [vmem:[#allocation3 + $0x71] sm:$0xff]  ;;  %3562 = vmatpush.msrb.mxu0 %v3521_v61 }
 0x595   : > { %v6488_v36 = vld [vmem:[#allocation3 + $0x70] sm:$0xff]  ;;  %2769 = vst.msk [vmem:[#allocation3 + $0x81] sm:$0xff] %vm651_vm5, %v2761_v2  ;;  %4577 = vmatmul.msk.f32.gmra.mxu0 %vm651_vm5, %v6486_v62  ;;  %4600 = vmatmul.msk.f32.gmra.mxu3 %vm651_vm5, %v6486_v62 }
 0x596   : > { %4585 = vmatmul.msk.f32.gmra.mxu2 %vm651_vm5, %v6488_v36  ;;  %4592 = vmatmul.msk.f32.gmra.mxu1 %vm651_vm5, %v6488_v36  ;;  %v6569_v39 = vld [vmem:[#allocation3 + $0x72] sm:$0xff] }
 0x597   : > { %3563 = vmatpush.msrb.mxu0 %v3520_v7 }
 0x59c   : > { %v6499_v11 = vld [vmem:[#allocation3 + $0x80] sm:$0xff] }
 0x59d   : > { %v6501_v57 = vld [vmem:[#allocation3 + $0x81] sm:$0xff]  ;;  %4602 = vmatmul.msk.f32.vlgmr.msra.gmra.mxu0 %vm651_vm5, %v3130_v52 }
 0x59e   : > { %4610 = vmatmul.msk.f32.vlgmr.msra.gmra.mxu2 %vm651_vm5, %v3117_v0  ;;  %4593 = vmatmul.msk.f32.gmra.mxu1 %vm651_vm5, %v6499_v11  ;;  %v6579_v45 = vld [vmem:[#allocation3 + $0x82] sm:$0xff] }
 0x59f   : > { %4601 = vmatmul.msk.f32.gmra.mxu3 %vm651_vm5, %v6501_v57  ;;  %3974 = vmatpush.msra.mxu2 %v3859_v53 }
 0x5a0   : > { %3909 = vmatpush.msra.mxu0 %v3872_v13 }
 0x5a1   : > { %3975 = vmatpush.msra.mxu2 %v3858_v35 }
 0x5a2   : > { %3910 = vmatpush.msra.mxu0 %v3871_v26 }
 0x5a4   : > { %3911 = vmatpush.msra.mxu0 %v3870_v34 }
 0x5a5   : > { %4603 = vmatmul.msk.f32.gmra.mxu0 %vm651_vm5, %v6509_v31 }
 0x5a6   : > { %4611 = vmatmul.msk.f32.gmra.mxu2 %vm651_vm5, %v6339_v12  ;;  %4618 = vmatmul.msk.f32.vlgmr.msrb.gmra.mxu1 %vm651_vm5, %v6339_v12 }
 0x5a7   : > { %4626 = vmatmul.msk.f32.vlgmr.msrb.gmra.mxu3 %vm651_vm5, %v6509_v31  ;;  %4052 = vmatpush.msrb.mxu1 %v4015_v30 }
 0x5a8   : > { %4138 = vmatpush.msrb.mxu3 %v4101_v58  ;;  %3912 = vmatpush.msra.mxu0 %v3869_v1 }
 0x5a9   : > { %4053 = vmatpush.msrb.mxu1 %v4014_v54 }
 0x5aa   : > { %4139 = vmatpush.msrb.mxu3 %v4100_v27 }
 0x5ab   : > { %4054 = vmatpush.msrb.mxu1 %v4013_v41 }
 0x5ac   : > { %4140 = vmatpush.msrb.mxu3 %v4099_v43 }
 0x5ad   : > { %4604 = vmatmul.msk.f32.gmra.mxu0 %vm651_vm5, %v6519_v40 }
 0x5ae   : > { %4612 = vmatmul.msk.f32.gmra.mxu2 %vm651_vm5, %v6372_v55  ;;  %4619 = vmatmul.msk.f32.gmra.mxu1 %vm651_vm5, %v6372_v55 }
 0x5af   : > { %4627 = vmatmul.msk.f32.gmra.mxu3 %vm651_vm5, %v6519_v40 }
 0x5b0   : > { %4141 = vmatpush.msrb.mxu3 %v4098_v47 }
 0x5b5   : > { %4605 = vmatmul.msk.f32.gmra.mxu0 %vm651_vm5, %v6529_v23 }
 0x5b6   : > { %4613 = vmatmul.msk.f32.gmra.mxu2 %vm651_vm5, %v6399_v56  ;;  %4620 = vmatmul.msk.f32.gmra.mxu1 %vm651_vm5, %v6399_v56 }
 0x5b7   : > { %4628 = vmatmul.msk.f32.gmra.mxu3 %vm651_vm5, %v6529_v23 }
 0x5bd   : > { %4606 = vmatmul.msk.f32.gmra.mxu0 %vm651_vm5, %v6539_v19 }
 0x5be   : > { %4614 = vmatmul.msk.f32.gmra.mxu2 %vm651_vm5, %v6429_v17  ;;  %4621 = vmatmul.msk.f32.gmra.mxu1 %vm651_vm5, %v6429_v17 }
 0x5bf   : > { %4629 = vmatmul.msk.f32.gmra.mxu3 %vm651_vm5, %v6539_v19 }
 0x5c5   : > { %4607 = vmatmul.msk.f32.gmra.mxu0 %vm651_vm5, %v6549_v46 }
 0x5c6   : > { %4615 = vmatmul.msk.f32.gmra.mxu2 %vm651_vm5, %v6451_v63  ;;  %4622 = vmatmul.msk.f32.gmra.mxu1 %vm651_vm5, %v6451_v63 }
 0x5c7   : > { %4630 = vmatmul.msk.f32.gmra.mxu3 %vm651_vm5, %v6549_v46 }
 0x5cd   : > { %4608 = vmatmul.msk.f32.gmra.mxu0 %vm651_vm5, %v6559_v5 }
 0x5ce   : > { %4616 = vmatmul.msk.f32.gmra.mxu2 %vm651_vm5, %v6470_v16  ;;  %4623 = vmatmul.msk.f32.gmra.mxu1 %vm651_vm5, %v6470_v16 }
 0x5cf   : > { %4631 = vmatmul.msk.f32.gmra.mxu3 %vm651_vm5, %v6559_v5 }
 0x5d5   : > { %4609 = vmatmul.msk.f32.gmra.mxu0 %vm651_vm5, %v6569_v39 }
 0x5d6   : > { %4617 = vmatmul.msk.f32.gmra.mxu2 %vm651_vm5, %v6486_v62  ;;  %4624 = vmatmul.msk.f32.gmra.mxu1 %vm651_vm5, %v6486_v62 }
 0x5d7   : > { %4632 = vmatmul.msk.f32.gmra.mxu3 %vm651_vm5, %v6569_v39 }
 0x5dd   : > { %4634 = vmatmul.msk.f32.vlgmr.msrb.gmra.mxu0 %vm651_vm5, %v6339_v12 }
 0x5de   : > { %4642 = vmatmul.msk.f32.vlgmr.msrb.gmra.mxu2 %vm651_vm5, %v6341_v51  ;;  %4625 = vmatmul.msk.f32.gmra.mxu1 %vm651_vm5, %v6501_v57  ;;  %v3857_v51 = vld [vmem:[#allocation16 + $0x188] sm:$0xff] }
 0x5df   : > { %4633 = vmatmul.msk.f32.gmra.mxu3 %vm651_vm5, %v6579_v45  ;;  %3976 = vmatpush.msra.mxu2 %v3857_v51 }
 0x5e2   : > { %v2839_v29 = vpop.f32.mrf.mxu0 }
 0x5e3   : > { %v2979_v6 = vpop.f32.mrf.mxu1 }
 0x5e4   : > { %v3003_v20 = vadd.f32 %v2979_v6, %v2902_v38 }
 0x5e5   : > { %4635 = vmatmul.msk.f32.gmra.mxu0 %vm651_vm5, %v6372_v55 }
 0x5e6   : > { %4643 = vmatmul.msk.f32.gmra.mxu2 %vm651_vm5, %v6374_v32  ;;  %4650 = vmatmul.msk.f32.vlgmr.msra.gmra.mxu1 %vm651_vm5, %v6374_v32 }
 0x5e7   : > { %4658 = vmatmul.msk.f32.vlgmr.msra.gmra.mxu3 %vm651_vm5, %v6372_v55 }
 0x5e8   : > { %v3065_v18 = vpop.f32.mrf.mxu3 }
 0x5e9   : > { %v2904_v50 = vpop.f32.mrf.mxu2  ;;  %v3089_v22 = vadd.f32 %v3065_v18, %v3003_v20 }
 0x5ea   : > { %v2842_v32 = vpop.f32.mrf.mxu0  ;;  %v2905_v49 = vadd.f32 %v2904_v50, %v2839_v29 }
 0x5eb   : > { %v2982_v24 = vpop.f32.mrf.mxu1  ;;  %v3101_v44 = vadd.f32 %v6601_v3, %v3089_v22 }
 0x5ec   : > { %v3004_v4 = vadd.f32 %v2982_v24, %v2905_v49 }
 0x5ed   : > { %4636 = vmatmul.msk.f32.gmra.mxu0 %vm651_vm5, %v6399_v56  ;;  %3109 = vst.msk [vmem:[%s6608_s17] sm:$0xff] %vm651_vm5, %v3101_v44 }
 0x5ee   : > { %4644 = vmatmul.msk.f32.gmra.mxu2 %vm651_vm5, %v6401_v48  ;;  %4651 = vmatmul.msk.f32.gmra.mxu1 %vm651_vm5, %v6401_v48  ;;  %v3856_v48 = vld [vmem:[#allocation16 + $0x180] sm:$0xff] }
 0x5ef   : > { %4659 = vmatmul.msk.f32.gmra.mxu3 %vm651_vm5, %v6399_v56  ;;  %3977 = vmatpush.msra.mxu2 %v3856_v48 }
 0x5f0   : > { %v3068_v2 = vpop.f32.mrf.mxu3 }
 0x5f1   : > { %v2907_v59 = vpop.f32.mrf.mxu2  ;;  %v3090_v9 = vadd.f32 %v3068_v2, %v3004_v4 }
 0x5f2   : > { %v2845_v10 = vpop.f32.mrf.mxu0  ;;  %v2908_v52 = vadd.f32 %v2907_v59, %v2842_v32 }
 0x5f3   : > { %v2985_v60 = vpop.f32.mrf.mxu1  ;;  %v3102_v0 = vadd.f32 %v6601_v3, %v3090_v9 }
 0x5f4   : > { %v3005_v61 = vadd.f32 %v2985_v60, %v2908_v52  ;;  %v6671_v60 = vld [vmem:[#allocation3 + $0x91] sm:$0xff] }
 0x5f5   : > { %4637 = vmatmul.msk.f32.gmra.mxu0 %vm651_vm5, %v6429_v17  ;;  %3110 = vst.msk [vmem:[%s6608_s17 + $0x10] sm:$0xff] %vm651_vm5, %v3102_v0 }
 0x5f6   : > { %4645 = vmatmul.msk.f32.gmra.mxu2 %vm651_vm5, %v6431_v28  ;;  %4652 = vmatmul.msk.f32.gmra.mxu1 %vm651_vm5, %v6431_v28  ;;  %v4012_v28 = vld [vmem:[#allocation16 + $0x1c0] sm:$0xff] }
 0x5f7   : > { %4660 = vmatmul.msk.f32.gmra.mxu3 %vm651_vm5, %v6429_v17  ;;  %4055 = vmatpush.msrb.mxu1 %v4012_v28 }
 0x5f8   : > { %v3071_v14 = vpop.f32.mrf.mxu3 }
 0x5f9   : > { %v2910_v21 = vpop.f32.mrf.mxu2  ;;  %v3091_v15 = vadd.f32 %v3071_v14, %v3005_v61 }
 0x5fa   : > { %v2848_v7 = vpop.f32.mrf.mxu0  ;;  %v2911_v53 = vadd.f32 %v2910_v21, %v2845_v10  ;;  %v3661_v10 = vld [vmem:[#allocation3 + $0x90] sm:$0xff] }
 0x5fb   : > { %v2988_v37 = vpop.f32.mrf.mxu1  ;;  %v3103_v58 = vadd.f32 %v6601_v3, %v3091_v15 }
 0x5fc   : > { %v3006_v13 = vadd.f32 %v2988_v37, %v2911_v53 }
 0x5fd   : > { %4638 = vmatmul.msk.f32.gmra.mxu0 %vm651_vm5, %v6451_v63  ;;  %3111 = vst.msk [vmem:[%s6608_s17 + $0x20] sm:$0xff] %vm651_vm5, %v3103_v58 }
 0x5fe   : > { %4646 = vmatmul.msk.f32.gmra.mxu2 %vm651_vm5, %v6453_v42  ;;  %4653 = vmatmul.msk.f32.gmra.mxu1 %vm651_vm5, %v6453_v42 }
 0x5ff   : > { %4661 = vmatmul.msk.f32.gmra.mxu3 %vm651_vm5, %v6451_v63 }
 0x600   : > { %v3074_v35 = vpop.f32.mrf.mxu3 }
 0x601   : > { %v2913_v30 = vpop.f32.mrf.mxu2  ;;  %v3092_v27 = vadd.f32 %v3074_v35, %v3006_v13 }
 0x602   : > { %v2851_v26 = vpop.f32.mrf.mxu0  ;;  %v2914_v25 = vadd.f32 %v2913_v30, %v2848_v7 }
 0x603   : > { %v2991_v8 = vpop.f32.mrf.mxu1  ;;  %v3104_v54 = vadd.f32 %v6601_v3, %v3092_v27 }
 0x604   : > { %v3007_v42 = vadd.f32 %v2991_v8, %v2914_v25 }
 0x605   : > { %4639 = vmatmul.msk.f32.gmra.mxu0 %vm651_vm5, %v6470_v16  ;;  %3112 = vst.msk [vmem:[%s6608_s17 + $0x30] sm:$0xff] %vm651_vm5, %v3104_v54 }
 0x606   : > { %4647 = vmatmul.msk.f32.gmra.mxu2 %vm651_vm5, %v6472_v33  ;;  %4654 = vmatmul.msk.f32.gmra.mxu1 %vm651_vm5, %v6472_v33 }
 0x607   : > { %4662 = vmatmul.msk.f32.gmra.mxu3 %vm651_vm5, %v6470_v16 }
 0x608   : > { %v3077_v6 = vpop.f32.mrf.mxu3 }
 0x609   : > { %v2916_v29 = vpop.f32.mrf.mxu2  ;;  %v3093_v38 = vadd.f32 %v3077_v6, %v3007_v42 }
 0x60a   : > { %v2854_v51 = vpop.f32.mrf.mxu0  ;;  %v2917_v34 = vadd.f32 %v2916_v29, %v2851_v26 }
 0x60b   : > { %v2994_v43 = vpop.f32.mrf.mxu1  ;;  %v3105_v20 = vadd.f32 %v6601_v3, %v3093_v38 }
 0x60c   : > { %v3008_v33 = vadd.f32 %v2994_v43, %v2917_v34 }
 0x60d   : > { %4640 = vmatmul.msk.f32.gmra.mxu0 %vm651_vm5, %v6486_v62  ;;  %3113 = vst.msk [vmem:[%s6608_s17 + $0x40] sm:$0xff] %vm651_vm5, %v3105_v20 }
 0x60e   : > { %4648 = vmatmul.msk.f32.gmra.mxu2 %vm651_vm5, %v6488_v36  ;;  %4655 = vmatmul.msk.f32.gmra.mxu1 %vm651_vm5, %v6488_v36 }
 0x60f   : > { %4663 = vmatmul.msk.f32.gmra.mxu3 %vm651_vm5, %v6486_v62 }
 0x610   : > { %v3080_v18 = vpop.f32.mrf.mxu3 }
 0x611   : > { %v2919_v50 = vpop.f32.mrf.mxu2  ;;  %v3094_v22 = vadd.f32 %v3080_v18, %v3008_v33 }
 0x612   : > { %v2857_v32 = vpop.f32.mrf.mxu0  ;;  %v2920_v49 = vadd.f32 %v2919_v50, %v2854_v51 }
 0x613   : > { %v2997_v24 = vpop.f32.mrf.mxu1  ;;  %v3106_v44 = vadd.f32 %v6601_v3, %v3094_v22 }
 0x614   : > { %v3009_v36 = vadd.f32 %v2997_v24, %v2920_v49 }
 0x615   : > { %4641 = vmatmul.msk.f32.gmra.mxu0 %vm651_vm5, %v6501_v57  ;;  %3114 = vst.msk [vmem:[%s6608_s17 + $0x50] sm:$0xff] %vm651_vm5, %v3106_v44 }
 0x616   : > { %4649 = vmatmul.msk.f32.gmra.mxu2 %vm651_vm5, %v6499_v11  ;;  %4656 = vmatmul.msk.f32.gmra.mxu1 %vm651_vm5, %v6499_v11 }
 0x617   : > { %4664 = vmatmul.msk.f32.gmra.mxu3 %vm651_vm5, %v6501_v57 }
 0x618   : > { %v3083_v4 = vpop.f32.mrf.mxu3 }
 0x619   : > { %v2922_v41 = vpop.f32.mrf.mxu2  ;;  %v3095_v59 = vadd.f32 %v3083_v4, %v3009_v36 }
 0x61a   : > { %v3184_v2 = vpop.f32.mrf.mxu0  ;;  %v2923_v52 = vadd.f32 %v2922_v41, %v2857_v32 }
 0x61b   : > { %v3000_v9 = vpop.f32.mrf.mxu1  ;;  %v3107_v0 = vadd.f32 %v6601_v3, %v3095_v59 }
 0x61c   : > { %v3010_v11 = vadd.f32 %v3000_v9, %v2923_v52 }
 0x61d   : > { %4674 = vmatmul.msk.f32.vlgmr.msra.gmra.mxu0 %vm651_vm5, %v6509_v31  ;;  %3115 = vst.msk [vmem:[%s6608_s17 + $0x60] sm:$0xff] %vm651_vm5, %v3107_v0 }
 0x61e   : > { %4682 = vmatmul.msk.f32.vlgmr.msra.gmra.mxu2 %vm651_vm5, %v6339_v12  ;;  %4657 = vmatmul.msk.f32.gmra.mxu1 %vm651_vm5, %v3661_v10 }
 0x61f   : > { %4665 = vmatmul.msk.f32.gmra.mxu3 %vm651_vm5, %v6671_v60 }
 0x621   : > { %v3249_v48 = vpop.f32.mrf.mxu2 }
 0x622   : > { %v3086_v47 = vpop.f32.mrf.mxu3  ;;  %v3187_v61 = vpop.f32.mrf.mxu0  ;;  %v3250_v15 = vadd.f32 %v3249_v48, %v3184_v2 }
 0x623   : > { %v3096_v1 = vadd.f32 %v3086_v47, %v3010_v11  ;;  %v3327_v21 = vpop.f32.mrf.mxu1  ;;  %v4096_v47 = vld [vmem:[#allocation3 + $0x92] sm:$0xff] }
 0x624   : > { %v3351_v12 = vadd.f32 %v3327_v21, %v3250_v15 }
 0x625   : > { %v3108_v14 = vadd.f32 %v6601_v3, %v3096_v1  ;;  %4675 = vmatmul.msk.f32.gmra.mxu0 %vm651_vm5, %v6519_v40  ;;  %v6697_v3 = vld [vmem:[%s6937_s30] ss:$0 sm:$0xff] }
 0x626   : > { %4683 = vmatmul.msk.f32.gmra.mxu2 %vm651_vm5, %v6372_v55  ;;  %4690 = vmatmul.msk.f32.vlgmr.msrb.gmra.mxu1 %vm651_vm5, %v6372_v55 }
 0x627   : > { %3116 = vst.msk [vmem:[%s6608_s17 + $0x70] sm:$0xff] %vm651_vm5, %v3108_v14  ;;  %4698 = vmatmul.msk.f32.vlgmr.msrb.gmra.mxu3 %vm651_vm5, %v6519_v40 }
 0x629   : > { %v3252_v31 = vpop.f32.mrf.mxu2 }
 0x62a   : > { %v3413_v7 = vpop.f32.mrf.mxu3  ;;  %v3190_v53 = vpop.f32.mrf.mxu0  ;;  %v3253_v28 = vadd.f32 %v3252_v31, %v3187_v61 }
 0x62b   : > { %v3437_v37 = vadd.f32 %v3413_v7, %v3351_v12  ;;  %v3330_v58 = vpop.f32.mrf.mxu1 }
 0x62c   : > { %v3352_v55 = vadd.f32 %v3330_v58, %v3253_v28 }
 0x62d   : > { %v3449_v13 = vadd.f32 %v6697_v3, %v3437_v37  ;;  %4676 = vmatmul.msk.f32.gmra.mxu0 %vm651_vm5, %v6529_v23 }
 0x62e   : > { %4684 = vmatmul.msk.f32.gmra.mxu2 %vm651_vm5, %v6399_v56  ;;  %4691 = vmatmul.msk.f32.gmra.mxu1 %vm651_vm5, %v6399_v56 }
 0x62f   : > { %4699 = vmatmul.msk.f32.gmra.mxu3 %vm651_vm5, %v6529_v23  ;;  %3465 = vrot.lane.b32.xlu0 %v3449_v13, %s5239_s29 }
 0x631   : > { %v3255_v40 = vpop.f32.mrf.mxu2 }
 0x632   : > { %v3416_v30 = vpop.f32.mrf.mxu3  ;;  %v3193_v27 = vpop.f32.mrf.mxu0  ;;  %v3256_v8 = vadd.f32 %v3255_v40, %v3190_v53 }
 0x633   : > { %v3438_v35 = vadd.f32 %v3416_v30, %v3352_v55  ;;  %v3333_v26 = vpop.f32.mrf.mxu1 }
 0x634   : > { %v3353_v56 = vadd.f32 %v3333_v26, %v3256_v8 }
 0x635   : > { %v3450_v25 = vadd.f32 %v6697_v3, %v3438_v35  ;;  %4677 = vmatmul.msk.f32.gmra.mxu0 %vm651_vm5, %v6539_v19 }
 0x636   : > { %4685 = vmatmul.msk.f32.gmra.mxu2 %vm651_vm5, %v6429_v17  ;;  %4692 = vmatmul.msk.f32.gmra.mxu1 %vm651_vm5, %v6429_v17 }
 0x637   : > { %4700 = vmatmul.msk.f32.gmra.mxu3 %vm651_vm5, %v6539_v19  ;;  %3467 = vrot.lane.b32.xlu0 %v3450_v25, %s5239_s29 }
 0x639   : > { %v3258_v23 = vpop.f32.mrf.mxu2 }
 0x63a   : > { %v3419_v54 = vpop.f32.mrf.mxu3  ;;  %v3196_v29 = vpop.f32.mrf.mxu0  ;;  %v3259_v38 = vadd.f32 %v3258_v23, %v3193_v27 }
 0x63b   : > { %v3439_v42 = vadd.f32 %v3419_v54, %v3353_v56  ;;  %v3336_v6 = vpop.f32.mrf.mxu1 }
 0x63c   : > { %v3354_v17 = vadd.f32 %v3336_v6, %v3259_v38 }
 0x63d   : > { %v3451_v51 = vadd.f32 %v6697_v3, %v3439_v42  ;;  %4678 = vmatmul.msk.f32.gmra.mxu0 %vm651_vm5, %v6549_v46 }
 0x63e   : > { %4686 = vmatmul.msk.f32.gmra.mxu2 %vm651_vm5, %v6451_v63  ;;  %4693 = vmatmul.msk.f32.gmra.mxu1 %vm651_vm5, %v6451_v63 }
 0x63f   : > { %4701 = vmatmul.msk.f32.gmra.mxu3 %vm651_vm5, %v6549_v46  ;;  %3469 = vrot.lane.b32.xlu1 %v3451_v51, %s5239_s29 }
 0x641   : > { %v3261_v19 = vpop.f32.mrf.mxu2 }
 0x642   : > { %v3422_v43 = vpop.f32.mrf.mxu3  ;;  %v3199_v20 = vpop.f32.mrf.mxu0  ;;  %v3262_v50 = vadd.f32 %v3261_v19, %v3196_v29 }
 0x643   : > { %v3440_v34 = vadd.f32 %v3422_v43, %v3354_v17  ;;  %v3339_v33 = vpop.f32.mrf.mxu1 }
 0x644   : > { %v3355_v63 = vadd.f32 %v3339_v33, %v3262_v50 }
 0x645   : > { %v3452_v18 = vadd.f32 %v6697_v3, %v3440_v34  ;;  %4679 = vmatmul.msk.f32.gmra.mxu0 %vm651_vm5, %v6559_v5 }
 0x646   : > { %4687 = vmatmul.msk.f32.gmra.mxu2 %vm651_vm5, %v6470_v16  ;;  %4694 = vmatmul.msk.f32.gmra.mxu1 %vm651_vm5, %v6470_v16 }
 0x647   : > { %4702 = vmatmul.msk.f32.gmra.mxu3 %vm651_vm5, %v6559_v5  ;;  %3471 = vrot.lane.b32.xlu1 %v3452_v18, %s5239_s29 }
 0x649   : > { %v3264_v46 = vpop.f32.mrf.mxu2 }
 0x64a   : > { %v3425_v22 = vpop.f32.mrf.mxu3  ;;  %v3202_v24 = vpop.f32.mrf.mxu0  ;;  %v3265_v44 = vadd.f32 %v3264_v46, %v3199_v20 }
 0x64b   : > { %v3441_v32 = vadd.f32 %v3425_v22, %v3355_v63  ;;  %v3342_v49 = vpop.f32.mrf.mxu1 }
 0x64c   : > { %v3356_v16 = vadd.f32 %v3342_v49, %v3265_v44 }
 0x64d   : > { %v3453_v36 = vadd.f32 %v6697_v3, %v3441_v32  ;;  %4680 = vmatmul.msk.f32.gmra.mxu0 %vm651_vm5, %v6569_v39 }
 0x64e   : > { %4688 = vmatmul.msk.f32.gmra.mxu2 %vm651_vm5, %v6486_v62  ;;  %4695 = vmatmul.msk.f32.gmra.mxu1 %vm651_vm5, %v6486_v62 }
 0x64f   : > { %4703 = vmatmul.msk.f32.gmra.mxu3 %vm651_vm5, %v6569_v39  ;;  %3473 = vrot.lane.b32.xlu2 %v3453_v36, %s5239_s29 }
 0x651   : > { %v3267_v5 = vpop.f32.mrf.mxu2 }
 0x652   : > { %v3428_v41 = vpop.f32.mrf.mxu3  ;;  %v3205_v59 = vpop.f32.mrf.mxu0  ;;  %v3268_v9 = vadd.f32 %v3267_v5, %v3202_v24 }
 0x653   : > { %v3442_v4 = vadd.f32 %v3428_v41, %v3356_v16  ;;  %v3345_v2 = vpop.f32.mrf.mxu1 }
 0x654   : > { %v3357_v62 = vadd.f32 %v3345_v2, %v3268_v9 }
 0x655   : > { %v3454_v10 = vadd.f32 %v6697_v3, %v3442_v4  ;;  %4681 = vmatmul.msk.f32.gmra.mxu0 %vm651_vm5, %v6579_v45 }
 0x656   : > { %4689 = vmatmul.msk.f32.gmra.mxu2 %vm651_vm5, %v6501_v57  ;;  %4696 = vmatmul.msk.f32.gmra.mxu1 %vm651_vm5, %v6501_v57 }
 0x657   : > { %4704 = vmatmul.msk.f32.gmra.mxu3 %vm651_vm5, %v6579_v45  ;;  %3475 = vrot.lane.b32.xlu2 %v3454_v10, %s5239_s29 }
 0x659   : > { %v3270_v39 = vpop.f32.mrf.mxu2 }
 0x65a   : > { %v3431_v52 = vpop.f32.mrf.mxu3  ;;  %v3565_v11 = vpop.f32.mrf.mxu0  ;;  %v3271_v1 = vadd.f32 %v3270_v39, %v3205_v59 }
 0x65b   : > { %v3443_v0 = vadd.f32 %v3431_v52, %v3357_v62  ;;  %v3348_v48 = vpop.f32.mrf.mxu1 }
 0x65c   : > { %v3358_v57 = vadd.f32 %v3348_v48, %v3271_v1 }
 0x65d   : > { %v3455_v61 = vadd.f32 %v6697_v3, %v3443_v0 }
 0x65e   : > { %4697 = vmatmul.msk.f32.gmra.mxu1 %vm651_vm5, %v6671_v60  ;;  %v6769_v60 = vld [vmem:[%s6937_s30] ss:$0 sm:$0xff] }
 0x65f   : > { %4705 = vmatmul.msk.f32.gmra.mxu3 %vm651_vm5, %v4096_v47  ;;  %3477 = vrot.lane.b32.xlu0 %v3455_v61, %s5239_s29 }
 0x661   : > { %v3630_v45 = vpop.f32.mrf.mxu2 }
 0x662   : > { %v3434_v21 = vpop.f32.mrf.mxu3  ;;  %v3568_v15 = vpop.f32.mrf.mxu0  ;;  %v3631_v7 = vadd.f32 %v3630_v45, %v3565_v11 }
 0x663   : > { %v3444_v14 = vadd.f32 %v3434_v21, %v3358_v57  ;;  %v3708_v12 = vpop.f32.mrf.mxu1 }
 0x664   : > { %v3732_v37 = vadd.f32 %v3708_v12, %v3631_v7 }
 0x665   : > { %v3456_v31 = vadd.f32 %v6697_v3, %v3444_v14 }
 0x667   : > { %3479 = vrot.lane.b32.xlu1 %v3456_v31, %s5239_s29 }
 0x669   : > { %v3633_v53 = vpop.f32.mrf.mxu2 }
 0x66a   : > { %v3794_v58 = vpop.f32.mrf.mxu3  ;;  %v3571_v13 = vpop.f32.mrf.mxu0  ;;  %v3634_v40 = vadd.f32 %v3633_v53, %v3568_v15 }
 0x66b   : > { %v3818_v28 = vadd.f32 %v3794_v58, %v3732_v37  ;;  %v3711_v55 = vpop.f32.mrf.mxu1 }
 0x66c   : > { %v3733_v3 = vadd.f32 %v3711_v55, %v3634_v40  ;;  %v6800_v40 = vld [vmem:[%s6937_s30] ss:$0 sm:$0xff] }
 0x66d   : > { %v3830_v30 = vadd.f32 %v6769_v60, %v3818_v28 }
 0x66f   : > { %4666 = vst.msk [vmem:[%s6608_s17 + $0x8] sm:$0xff] %vm651_vm5, %v3830_v30 }
 0x671   : > { %v3636_v35 = vpop.f32.mrf.mxu2 }
 0x672   : > { %v3797_v27 = vpop.f32.mrf.mxu3  ;;  %v3574_v8 = vpop.f32.mrf.mxu0  ;;  %v3637_v56 = vadd.f32 %v3636_v35, %v3571_v13 }
 0x673   : > { %v3819_v26 = vadd.f32 %v3797_v27, %v3733_v3  ;;  %v3714_v25 = vpop.f32.mrf.mxu1 }
 0x674   : > { %v3734_v54 = vadd.f32 %v3714_v25, %v3637_v56 }
 0x675   : > { %v3831_v23 = vadd.f32 %v6769_v60, %v3819_v26 }
 0x677   : > { %4667 = vst.msk [vmem:[%s6608_s17 + $0x18] sm:$0xff] %vm651_vm5, %v3831_v23 }
 0x679   : > { %v3639_v42 = vpop.f32.mrf.mxu2 }
 0x67a   : > { %v3800_v29 = vpop.f32.mrf.mxu3  ;;  %v3577_v38 = vpop.f32.mrf.mxu0  ;;  %v3640_v17 = vadd.f32 %v3639_v42, %v3574_v8 }
 0x67b   : > { %v3820_v6 = vadd.f32 %v3800_v29, %v3734_v54  ;;  %v3717_v51 = vpop.f32.mrf.mxu1 }
 0x67c   : > { %v3735_v43 = vadd.f32 %v3717_v51, %v3640_v17 }
 0x67d   : > { %v3832_v19 = vadd.f32 %v6769_v60, %v3820_v6 }
 0x67f   : > { %4668 = vst.msk [vmem:[%s6608_s17 + $0x28] sm:$0xff] %vm651_vm5, %v3832_v19 }
 0x681   : > { %v3642_v34 = vpop.f32.mrf.mxu2 }
 0x682   : > { %v3803_v20 = vpop.f32.mrf.mxu3  ;;  %v3580_v50 = vpop.f32.mrf.mxu0  ;;  %v3643_v63 = vadd.f32 %v3642_v34, %v3577_v38 }
 0x683   : > { %v3821_v33 = vadd.f32 %v3803_v20, %v3735_v43  ;;  %v3720_v18 = vpop.f32.mrf.mxu1 }
 0x684   : > { %v3736_v22 = vadd.f32 %v3720_v18, %v3643_v63 }
 0x685   : > { %v3833_v46 = vadd.f32 %v6769_v60, %v3821_v33 }
 0x687   : > { %4669 = vst.msk [vmem:[%s6608_s17 + $0x38] sm:$0xff] %vm651_vm5, %v3833_v46 }
 0x689   : > { %v3645_v32 = vpop.f32.mrf.mxu2 }
 0x68a   : > { %v3806_v24 = vpop.f32.mrf.mxu3  ;;  %v3583_v44 = vpop.f32.mrf.mxu0  ;;  %v3646_v16 = vadd.f32 %v3645_v32, %v3580_v50 }
 0x68b   : > { %v3822_v49 = vadd.f32 %v3806_v24, %v3736_v22  ;;  %v3723_v36 = vpop.f32.mrf.mxu1 }
 0x68c   : > { %v3737_v41 = vadd.f32 %v3723_v36, %v3646_v16 }
 0x68d   : > { %v3834_v5 = vadd.f32 %v6769_v60, %v3822_v49 }
 0x68f   : > { %4670 = vst.msk [vmem:[%s6608_s17 + $0x48] sm:$0xff] %vm651_vm5, %v3834_v5 }
 0x691   : > { %v3648_v4 = vpop.f32.mrf.mxu2 }
 0x692   : > { %v3809_v59 = vpop.f32.mrf.mxu3  ;;  %v3586_v9 = vpop.f32.mrf.mxu0  ;;  %v3649_v62 = vadd.f32 %v3648_v4, %v3583_v44 }
 0x693   : > { %v3823_v2 = vadd.f32 %v3809_v59, %v3737_v41  ;;  %v3726_v10 = vpop.f32.mrf.mxu1 }
 0x694   : > { %v3738_v52 = vadd.f32 %v3726_v10, %v3649_v62 }
 0x695   : > { %v3835_v39 = vadd.f32 %v6769_v60, %v3823_v2 }
 0x697   : > { %4671 = vst.msk [vmem:[%s6608_s17 + $0x58] sm:$0xff] %vm651_vm5, %v3835_v39 }
 0x699   : > { %v3651_v0 = vpop.f32.mrf.mxu2 }
 0x69a   : > { %v3812_v11 = vpop.f32.mrf.mxu3  ;;  %v3914_v47 = vpop.f32.mrf.mxu0  ;;  %v3652_v61 = vadd.f32 %v3651_v0, %v3586_v9 }
 0x69b   : > { %v3824_v48 = vadd.f32 %v3812_v11, %v3738_v52  ;;  %v3729_v1 = vpop.f32.mrf.mxu1 }
 0x69c   : > { %v3739_v45 = vadd.f32 %v3729_v1, %v3652_v61 }
 0x69d   : > { %v3836_v57 = vadd.f32 %v6769_v60, %v3824_v48 }
 0x69f   : > { %4672 = vst.msk [vmem:[%s6608_s17 + $0x68] sm:$0xff] %vm651_vm5, %v3836_v57 }
 0x6a1   : > { %v3979_v21 = vpop.f32.mrf.mxu2  ;;  %v3466_v14 = vpop.permute.xlu0 %3465 }
 0x6a2   : > { %v3815_v15 = vpop.f32.mrf.mxu3  ;;  %3490 = vst.msk [vmem:[%s6608_s17] sm:$0xff] %vm3489_vm12, %v3466_v14  ;;  %v3917_v31 = vpop.f32.mrf.mxu0  ;;  %v3980_v53 = vadd.f32 %v3979_v21, %v3914_v47 }
 0x6a3   : > { %v3825_v12 = vadd.f32 %v3815_v15, %v3739_v45  ;;  %v4057_v7 = vpop.f32.mrf.mxu1 }
 0x6a4   : > { %v4081_v28 = vadd.f32 %v4057_v7, %v3980_v53 }
 0x6a5   : > { %v3837_v37 = vadd.f32 %v6769_v60, %v3825_v12 }
 0x6a7   : > { %4673 = vst.msk [vmem:[%s6608_s17 + $0x78] sm:$0xff] %vm651_vm5, %v3837_v37 }
 0x6a9   : > { %v3982_v58 = vpop.f32.mrf.mxu2  ;;  %v3474_v13 = vpop.permute.xlu2 %3473 }
 0x6aa   : > { %v3468_v55 = vpop.permute.xlu0 %3467  ;;  %3494 = vst.msk [vmem:[%s6608_s17 + $0x40] sm:$0xff] %vm3489_vm12, %v3474_v13  ;;  %v4143_v30 = vpop.f32.mrf.mxu3  ;;  %v3983_v27 = vadd.f32 %v3982_v58, %v3917_v31 }
 0x6ab   : > { %v3920_v3 = vpop.f32.mrf.mxu0  ;;  %3491 = vst.msk [vmem:[%s6608_s17 + $0x10] sm:$0xff] %vm3489_vm12, %v3468_v55  ;;  %v4167_v60 = vadd.f32 %v4143_v30, %v4081_v28  ;;  %v4060_v35 = vpop.f32.mrf.mxu1 }
 0x6ac   : > { %v4082_v25 = vadd.f32 %v4060_v35, %v3983_v27 }
 0x6ad   : > { %v4179_v26 = vadd.f32 %v6800_v40, %v4167_v60 }
 0x6af   : > { %4195 = vrot.lane.b32.xlu2 %v4179_v26, %s5239_s29 }
 0x6b1   : > { %v3985_v8 = vpop.f32.mrf.mxu2  ;;  %v3476_v56 = vpop.permute.xlu2 %3475 }
 0x6b2   : > { %v3470_v23 = vpop.permute.xlu1 %3469  ;;  %3495 = vst.msk [vmem:[%s6608_s17 + $0x50] sm:$0xff] %vm3489_vm12, %v3476_v56  ;;  %v4146_v54 = vpop.f32.mrf.mxu3  ;;  %v3986_v38 = vadd.f32 %v3985_v8, %v3920_v3 }
 0x6b3   : > { %3492 = vst.msk [vmem:[%s6608_s17 + $0x20] sm:$0xff] %vm3489_vm12, %v3470_v23  ;;  %v4168_v42 = vadd.f32 %v4146_v54, %v4082_v25  ;;  %v4063_v29 = vpop.f32.mrf.mxu1  ;;  %v3923_v6 = vpop.f32.mrf.mxu0 }
 0x6b4   : > { %v4083_v19 = vadd.f32 %v4063_v29, %v3986_v38 }
 0x6b5   : > { %v4180_v51 = vadd.f32 %v6800_v40, %v4168_v42 }
 0x6b7   : > { %4197 = vrot.lane.b32.xlu0 %v4180_v51, %s5239_s29 }
 0x6b9   : > { %v3988_v17 = vpop.f32.mrf.mxu2 }
 0x6ba   : > { %v3472_v43 = vpop.permute.xlu1 %3471  ;;  %v4149_v34 = vpop.f32.mrf.mxu3  ;;  %v3989_v50 = vadd.f32 %v3988_v17, %v3923_v6 }
 0x6bb   : > { %3493 = vst.msk [vmem:[%s6608_s17 + $0x30] sm:$0xff] %vm3489_vm12, %v3472_v43  ;;  %v4169_v20 = vadd.f32 %v4149_v34, %v4083_v19  ;;  %v4066_v33 = vpop.f32.mrf.mxu1  ;;  %v3926_v63 = vpop.f32.mrf.mxu0 }
 0x6bc   : > { %v4084_v22 = vadd.f32 %v4066_v33, %v3989_v50 }
 0x6bd   : > { %v4181_v18 = vadd.f32 %v6800_v40, %v4169_v20 }
 0x6bf   : > { %4199 = vrot.lane.b32.xlu1 %v4181_v18, %s5239_s29 }
 0x6c1   : > { %v3991_v46 = vpop.f32.mrf.mxu2 }
 0x6c2   : > { %v4152_v32 = vpop.f32.mrf.mxu3  ;;  %v3992_v44 = vadd.f32 %v3991_v46, %v3926_v63 }
 0x6c3   : > { %v4170_v24 = vadd.f32 %v4152_v32, %v4084_v22  ;;  %v4069_v49 = vpop.f32.mrf.mxu1  ;;  %v3929_v16 = vpop.f32.mrf.mxu0 }
 0x6c4   : > { %v4085_v41 = vadd.f32 %v4069_v49, %v3992_v44 }
 0x6c5   : > { %v4182_v36 = vadd.f32 %v6800_v40, %v4170_v24 }
 0x6c7   : > { %4201 = vrot.lane.b32.xlu2 %v4182_v36, %s5239_s29 }
 0x6c9   : > { %v3994_v5 = vpop.f32.mrf.mxu2 }
 0x6ca   : > { %v4155_v4 = vpop.f32.mrf.mxu3  ;;  %v3995_v9 = vadd.f32 %v3994_v5, %v3929_v16 }
 0x6cb   : > { %v4171_v59 = vadd.f32 %v4155_v4, %v4085_v41  ;;  %v4072_v2 = vpop.f32.mrf.mxu1  ;;  %v3932_v0 = vpop.f32.mrf.mxu0 }
 0x6cc   : > { %v4086_v39 = vadd.f32 %v4072_v2, %v3995_v9 }
 0x6cd   : > { %v4183_v10 = vadd.f32 %v6800_v40, %v4171_v59 }
 0x6cf   : > { %4203 = vrot.lane.b32.xlu0 %v4183_v10, %s5239_s29 }
 0x6d1   : > { %v3997_v62 = vpop.f32.mrf.mxu2  ;;  %v3478_v52 = vpop.permute.xlu0 %3477 }
 0x6d2   : > { %3496 = vst.msk [vmem:[%s6608_s17 + $0x60] sm:$0xff] %vm3489_vm12, %v3478_v52  ;;  %v4158_v11 = vpop.f32.mrf.mxu3  ;;  %v3998_v1 = vadd.f32 %v3997_v62, %v3932_v0 }
 0x6d3   : > { %v4172_v48 = vadd.f32 %v4158_v11, %v4086_v39  ;;  %v4075_v47 = vpop.f32.mrf.mxu1  ;;  %v3935_v12 = vpop.f32.mrf.mxu0 }
 0x6d4   : > { %v4087_v45 = vadd.f32 %v4075_v47, %v3998_v1 }
 0x6d5   : > { %v4184_v61 = vadd.f32 %v6800_v40, %v4172_v48 }
 0x6d7   : > { %4205 = vrot.lane.b32.xlu1 %v4184_v61, %s5239_s29 }
 0x6d9   : > { %v3480_v57 = vpop.permute.xlu1 %3479  ;;  %v4000_v21 = vpop.f32.mrf.mxu2 }
 0x6da   : > { %3497 = vst.msk [vmem:[%s6608_s17 + $0x70] sm:$0xff] %vm3489_vm12, %v3480_v57  ;;  %v4161_v14 = vpop.f32.mrf.mxu3  ;;  %v4001_v31 = vadd.f32 %v4000_v21, %v3935_v12 }
 0x6db   : > { %v4173_v15 = vadd.f32 %v4161_v14, %v4087_v45  ;;  %v4078_v37 = vpop.f32.mrf.mxu1 }
 0x6dc   : > { %v4088_v53 = vadd.f32 %v4078_v37, %v4001_v31 }
 0x6dd   : > { %v4185_v7 = vadd.f32 %v6800_v40, %v4173_v15 }
 0x6df   : > { %4207 = vrot.lane.b32.xlu2 %v4185_v7, %s5239_s29 }
 0x6e2   : > { %v4164_v58 = vpop.f32.mrf.mxu3 }
 0x6e3   : > { %v4174_v28 = vadd.f32 %v4164_v58, %v4088_v53 }
 0x6e5   : > { %v4186_v13 = vadd.f32 %v6800_v40, %v4174_v28 }
 0x6e7   : > { %4209 = vrot.lane.b32.xlu0 %v4186_v13, %s5239_s29  ;;  %s4228_s29 = scalar_lea.sflag [#allocation6], %s5470_s24 }
 0x709   : > { %v4196_v55 = vpop.permute.xlu2 %4195 }
 0x70a   : > { %4706 = vst.msk [vmem:[%s6608_s17 + $0x8] sm:$0xff] %vm3489_vm12, %v4196_v55 }
 0x721   : > { %v4202_v30 = vpop.permute.xlu2 %4201 }
 0x722   : > { %4709 = vst.msk [vmem:[%s6608_s17 + $0x38] sm:$0xff] %vm3489_vm12, %v4202_v30 }
 0x729   : > { %v4198_v3 = vpop.permute.xlu0 %4197 }
 0x72a   : > { %4707 = vst.msk [vmem:[%s6608_s17 + $0x18] sm:$0xff] %vm3489_vm12, %v4198_v3 }
 0x731   : > { %v4200_v60 = vpop.permute.xlu1 %4199 }
 0x732   : > { %4708 = vst.msk [vmem:[%s6608_s17 + $0x28] sm:$0xff] %vm3489_vm12, %v4200_v60 }
 0x739   : > { %v4208_v35 = vpop.permute.xlu2 %4207 }
 0x73a   : > { %4712 = vst.msk [vmem:[%s6608_s17 + $0x68] sm:$0xff] %vm3489_vm12, %v4208_v35 }
 0x741   : > { %v4204_v40 = vpop.permute.xlu0 %4203 }
 0x742   : > { %4710 = vst.msk [vmem:[%s6608_s17 + $0x48] sm:$0xff] %vm3489_vm12, %v4204_v40 }
 0x749   : > { %v4206_v27 = vpop.permute.xlu1 %4205 }
 0x74a   : > { %4711 = vst.msk [vmem:[%s6608_s17 + $0x58] sm:$0xff] %vm3489_vm12, %v4206_v27 }
 0x759   : > { %v4210_v26 = vpop.permute.xlu0 %4209 }
 0x75a   : > { %4713 = vst.msk [vmem:[%s6608_s17 + $0x78] sm:$0xff] %vm3489_vm12, %v4210_v26 }
 0x75b   : > { %5172 = shalt.err (!%p5169_p9)
}
 0x75c   : > { %s5240_s24 = smov 128   ;;  %s5241_s17 = smov 8  }
 0x75d   : > { %4757 = dma.vmem_to_hbm [thread:$0]  (%p5436_p13), %s4241_s22, 2048, %s4243_s4, %s4228_s29, %s5240_s24, %s5240_s24, %s5241_s17  }
 0x75e PF: > { %s4257_s28 = sand.u32 1, %s5215_s18   ;;  %p6939_p10 = scmp.ge.s32.totalorder %s5227_s21, 2 }
 0x75f   : > { %s4258_s26 = scalar_lea.sflag [#allocation6], %s4257_s28 }
 0x760   : > { %p4786_p11 = pnand %p6939_p10, %p5441_p5 }
 0x762   : > { %p4787_p0 = pneg %p4786_p11 }
 0x764   : > { %5210 = dma.done.wait (%p4787_p0), %s4258_s26, 2048  }
 0x765   : > { %5212 = vsyncadd (%p4787_p0), %s4258_s26, 4294965248  ;;  %p32_p2 = scmp.ge.s32.totalorder %s5416_s14, 4   ;;  %s6940_s18 = smov %s5219_s19 }
 0x766   : > { %s6941_s19 = smov %s5223_s20  ;;  %s6942_s20 = smov %s5428_s16 }
 0x767   : > { %s6943_s21 = smov %s5416_s14  ;;  %34 = sbr.rel (!%p32_p2) target bundleno = 19 (0x13), region = 189 }
 0x76c   :  { %4264 = vsyncpa [#allocation5], 1 }
 0x76d   :  { %4266 = vsyncpa [#allocation5 + $0x1], 1 }
 0x76e   :  { %4267 = vsyncpa [#allocation8], 1 }
 0x76f   :  { %4268 = vsyncpa [#allocation11], 1 }
 0x770   :  { %4269 = vsyncpa [#allocation14], 1 }
 0x771   :  { %4270 = vsyncpa [#allocation17], 1 }
 0x772   :  { %4271 = vsyncpa [#allocation6], 1 }
 0x773   :  { %4273 = vsyncpa [#allocation6 + $0x1], 1 }

</bundles_post_ra>
